<compile_context>
chip_gen: v7x
topology: tpu7x:2x2x1
jax: 0.10.0
libtpu: 0.0.40
codegen_flags: <defaults>
</compile_context>

<pallas_src>
import functools

import jax
import jax.numpy as jnp
from jax.experimental import pallas as pl
from jax.experimental.pallas import tpu as pltpu


LN_EPS = 1e-5  # PyTorch nn.LayerNorm default


def _radial_kernel(
    x_ref,      # (TM, 1)    radial distances tile
    vecs_ref,   # (9, MID)   rows: a1, c1, be1, b2, g2, be2, Vw, 2*Cov, Vb+eps
    w2_ref,     # (MID, MID)
    w3_ref,     # (MID, FINAL)
    b3_ref,     # (1, FINAL)
    o_ref,      # (TM, FINAL)
):
    x = x_ref[...].astype(jnp.float32)            # (TM, 1)
    mid = vecs_ref.shape[1]

    a1 = vecs_ref[0:1, :]
    c1 = vecs_ref[1:2, :]
    be1 = vecs_ref[2:3, :]
    b2 = vecs_ref[3:4, :]
    g2 = vecs_ref[4:5, :]
    be2 = vecs_ref[5:6, :]
    vw = vecs_ref[6:7, :]       # Var(w1 - mean)      (lane-broadcast scalar)
    cwb2 = vecs_ref[7:8, :]     # 2*Cov(w1c, b1c)     (lane-broadcast scalar)
    vbe = vecs_ref[8:9, :]      # Var(b1c) + eps      (lane-broadcast scalar)

    # Single lane-broadcast of x; reused below (JAX does not CSE broadcasts).
    xb = jnp.broadcast_to(x, (x.shape[0], mid))   # (TM, MID)

    # ---- Layer 1: Linear(1,32) + LayerNorm + ReLU, folded analytically ----
    # h1_j = x*w1_j + b1_j;  LN(h1)_j = (x*w1c_j + b1c_j) * rsqrt(var) with
    # var = x^2*Var(w1c) + 2x*Cov(w1c,b1c) + Var(b1c).  gamma folded into
    # a1/c1 in the wrapper; beta added back here.  VPU + EUP only (no XLU).
    inv_std = jax.lax.rsqrt(xb * xb * vw + xb * cwb2 + vbe)      # (TM, MID)
    h = jnp.maximum((xb * a1 + c1) * inv_std + be1, 0.0)         # (TM, MID)

    # ---- Layer 2: Linear(32,32) + LayerNorm + ReLU ----
    h = jnp.dot(h, w2_ref[...], preferred_element_type=jnp.float32) + b2
    m = jnp.mean(h, axis=-1, keepdims=True)
    v = jnp.mean((h - m) ** 2, axis=-1, keepdims=True)
    h = (h - m) * jax.lax.rsqrt(v + LN_EPS) * g2 + be2
    h = jnp.maximum(h, 0.0)

    # ---- Layer 3: Linear(32, num_freq*in_dim*out_dim) ----
    y = jnp.dot(h, w3_ref[...], preferred_element_type=jnp.float32) + b3_ref[...]
    o_ref[...] = y.astype(o_ref.dtype)


def radial_func_forward(x, params, *, num_freq, in_dim, out_dim, tm=512,
                        out_dtype=jnp.float32):
    """x: (N, 1) float32. Returns (N, out_dim, 1, in_dim, 1, num_freq)."""
    N = x.shape[0]
    assert x.shape == (N, 1)
    assert tm % 8 == 0 and tm > 0
    mid = params["w2"].shape[0]
    final = num_freq * in_dim * out_dim
    assert params["w2"].shape == (mid, mid)
    assert params["w3"].shape == (mid, final)

    f32 = jnp.float32
    w1 = params["w1"].reshape(1, mid).astype(f32)
    b1 = params["b1"].reshape(1, mid).astype(f32)
    g1 = params["g1"].reshape(1, mid).astype(f32)
    be1 = params["be1"].reshape(1, mid).astype(f32)

    # Analytic fold of Linear(1,mid) + LayerNorm(mid) (see kernel comment).
    mw = jnp.mean(w1)
    mb = jnp.mean(b1)
    wc = w1 - mw
    bc = b1 - mb
    a1 = g1 * wc
    c1 = g1 * bc
    vw = jnp.mean(wc * wc)
    cwb = jnp.mean(wc * bc)
    vb = jnp.mean(bc * bc)

    vecs = jnp.concatenate(
        [
            a1, c1, be1,
            params["b2"].reshape(1, mid).astype(f32),
            params["g2"].reshape(1, mid).astype(f32),
            params["be2"].reshape(1, mid).astype(f32),
            jnp.broadcast_to(vw, (1, mid)).astype(f32),
            jnp.broadcast_to(2.0 * cwb, (1, mid)).astype(f32),
            jnp.broadcast_to(vb + LN_EPS, (1, mid)).astype(f32),
        ],
        axis=0,
    )  # (9, mid)

    # Pad rows to a multiple of tm; padded rows produce finite garbage that is
    # sliced off below (review correctness concern #2).
    n_pad = pl.cdiv(N, tm) * tm
    if n_pad != N:
        x = jnp.pad(x, ((0, n_pad - N), (0, 0)))

    grid = (n_pad // tm,)

    def full(shape):
        return pl.BlockSpec(shape, lambda i: tuple(0 for _ in shape))

    # NOTE(v7x): with final this small the double-buffered tiles are well under
    # the 32 MiB scoped VMEM default; for large `final` re-derive tm and set
    # pltpu.CompilerParams(vmem_limit_bytes=...) with headroom.
    y = pl.pallas_call(
        _radial_kernel,
        out_shape=jax.ShapeDtypeStruct((n_pad, final), out_dtype),
        grid_spec=pltpu.PrefetchScalarGridSpec(
            num_scalar_prefetch=0,
            grid=grid,
            in_specs=[
                pl.BlockSpec((tm, 1), lambda i: (i, 0)),   # x tile
                full((9, mid)),                            # packed vectors
                full((mid, mid)),                          # w2
                full((mid, final)),                        # w3
                full((1, final)),                          # b3
            ],
            out_specs=pl.BlockSpec((tm, final), lambda i: (i, 0)),
        ),
        compiler_params=pltpu.CompilerParams(
            dimension_semantics=("parallel",),
        ),
    )(x, vecs, params["w2"].astype(f32), params["w3"].astype(f32),
      params["b3"].reshape(1, final).astype(f32))

    y = y[:N]
    # reshape glue (same semantics as y.view(-1, out_dim, 1, in_dim, 1, num_freq))
    return y.reshape(N, out_dim, 1, in_dim, 1, num_freq)


def _kaiming_uniform(key, fan_in, shape):
    # nn.init.kaiming_uniform_ with default a=0 -> bound = sqrt(6/fan_in),
    # matching the explicit calls in the PyTorch module.
    bound = jnp.sqrt(6.0 / fan_in)
    return jax.random.uniform(key, shape, jnp.float32, -bound, bound)


def init_params(key, num_freq, in_dim, out_dim, mid=32):
    final = num_freq * in_dim * out_dim
    ks = jax.random.split(key, 6)
    # weights stored as (in_features, out_features)
    w1 = _kaiming_uniform(ks[0], 1, (1, mid))
    b1 = jax.random.uniform(ks[1], (1, mid), jnp.float32, -1.0, 1.0)   # fan_in=1
    w2 = _kaiming_uniform(ks[2], mid, (mid, mid))
    b2 = jax.random.uniform(ks[3], (1, mid), jnp.float32,
                            -1.0 / jnp.sqrt(mid), 1.0 / jnp.sqrt(mid))
    w3 = _kaiming_uniform(ks[4], mid, (mid, final))
    b3 = jax.random.uniform(ks[5], (1, final), jnp.float32,
                            -1.0 / jnp.sqrt(mid), 1.0 / jnp.sqrt(mid))
    # LayerNorm affine params at PyTorch defaults (gamma=1, beta=0)
    g1 = jnp.ones((1, mid), jnp.float32)
    be1 = jnp.zeros((1, mid), jnp.float32)
    g2 = jnp.ones((1, mid), jnp.float32)
    be2 = jnp.zeros((1, mid), jnp.float32)
    return dict(w1=w1, b1=b1, g1=g1, be1=be1,
                w2=w2, b2=b2, g2=g2, be2=be2,
                w3=w3, b3=b3)


def _reference(x, p):
    """Plain-JAX reference (unfused LayerNorm) for correctness check."""
    def ln(h, g, b):
        m = jnp.mean(h, -1, keepdims=True)
        v = jnp.mean((h - m) ** 2, -1, keepdims=True)
        return (h - m) / jnp.sqrt(v + LN_EPS) * g + b
    h = x @ p["w1"] + p["b1"]
    h = jnp.maximum(ln(h, p["g1"], p["be1"]), 0.0)
    h = h @ p["w2"] + p["b2"]
    h = jnp.maximum(ln(h, p["g2"], p["be2"]), 0.0)
    return h @ p["w3"] + p["b3"]


if __name__ == "__main__":
    num_freq, in_dim, out_dim = 3, 4, 4   # final linear out = 48
    N = 1000                              # radial samples; pads to 2 tiles of 512

    key = jax.random.PRNGKey(0)
    kx, kp = jax.random.split(key)
    x = jax.random.uniform(kx, (N, 1), jnp.float32)  # radial distances
    params = init_params(kp, num_freq, in_dim, out_dim)

    fwd = jax.jit(functools.partial(
        radial_func_forward, num_freq=num_freq, in_dim=in_dim, out_dim=out_dim,
        tm=512))
    out = fwd(x, params)
    jax.block_until_ready(out)

    assert out.shape == (N, out_dim, 1, in_dim, 1, num_freq), out.shape

    ref = _reference(x, params).reshape(N, out_dim, 1, in_dim, 1, num_freq)
    err = float(jnp.max(jnp.abs(out - ref)))
    assert err < 2e-4, f"max abs err {err}"

    print("KERNEL_OK")
</pallas_src>

<mosaic_0001>
module attributes {stable_mosaic.version = 11 : i64} {
  func.func @_radial_kernel(%arg0: i32, %arg1: memref<512x1xf32, #tpu.memory_space<vmem>>, %arg2: memref<9x32xf32, #tpu.memory_space<vmem>>, %arg3: memref<32x32xf32, #tpu.memory_space<vmem>>, %arg4: memref<32x48xf32, #tpu.memory_space<vmem>>, %arg5: memref<1x48xf32, #tpu.memory_space<vmem>>, %arg6: memref<512x48xf32, #tpu.memory_space<vmem>>) attributes {dimension_semantics = [#tpu.dimension_semantics<parallel>], iteration_bounds = array<i64: 2>, scalar_prefetch = 0 : i64, scratch_operands = 0 : i64, tpu.core_type = #tpu.core_type<tc>, window_params = [{transform_indices = @transform_0, window_bounds = array<i64: 512, 1>}, {pipeline_mode = #tpu.pipeline_mode<synchronous>, transform_indices = @transform_1, window_bounds = array<i64: 9, 32>}, {pipeline_mode = #tpu.pipeline_mode<synchronous>, transform_indices = @transform_2, window_bounds = array<i64: 32, 32>}, {pipeline_mode = #tpu.pipeline_mode<synchronous>, transform_indices = @transform_3, window_bounds = array<i64: 32, 48>}, {pipeline_mode = #tpu.pipeline_mode<synchronous>, transform_indices = @transform_4, window_bounds = array<i64: 1, 48>}, {transform_indices = @transform_5, window_bounds = array<i64: 512, 48>}]} {
    %c0 = arith.constant 0 : index
    %c0_0 = arith.constant 0 : index
    %0 = vector.load %arg1[%c0, %c0_0] : memref<512x1xf32, #tpu.memory_space<vmem>>, vector<512x1xf32>
    %c0_1 = arith.constant 0 : index
    %c0_2 = arith.constant 0 : index
    %1 = vector.load %arg2[%c0_1, %c0_2] : memref<9x32xf32, #tpu.memory_space<vmem>>, vector<1x32xf32>
    %c1 = arith.constant 1 : index
    %c0_3 = arith.constant 0 : index
    %2 = vector.load %arg2[%c1, %c0_3] : memref<9x32xf32, #tpu.memory_space<vmem>>, vector<1x32xf32>
    %c2 = arith.constant 2 : index
    %c0_4 = arith.constant 0 : index
    %3 = vector.load %arg2[%c2, %c0_4] : memref<9x32xf32, #tpu.memory_space<vmem>>, vector<1x32xf32>
    %c3 = arith.constant 3 : index
    %c0_5 = arith.constant 0 : index
    %4 = vector.load %arg2[%c3, %c0_5] : memref<9x32xf32, #tpu.memory_space<vmem>>, vector<1x32xf32>
    %c4 = arith.constant 4 : index
    %c0_6 = arith.constant 0 : index
    %5 = vector.load %arg2[%c4, %c0_6] : memref<9x32xf32, #tpu.memory_space<vmem>>, vector<1x32xf32>
    %c5 = arith.constant 5 : index
    %c0_7 = arith.constant 0 : index
    %6 = vector.load %arg2[%c5, %c0_7] : memref<9x32xf32, #tpu.memory_space<vmem>>, vector<1x32xf32>
    %c6 = arith.constant 6 : index
    %c0_8 = arith.constant 0 : index
    %7 = vector.load %arg2[%c6, %c0_8] : memref<9x32xf32, #tpu.memory_space<vmem>>, vector<1x32xf32>
    %c7 = arith.constant 7 : index
    %c0_9 = arith.constant 0 : index
    %8 = vector.load %arg2[%c7, %c0_9] : memref<9x32xf32, #tpu.memory_space<vmem>>, vector<1x32xf32>
    %c8 = arith.constant 8 : index
    %c0_10 = arith.constant 0 : index
    %9 = vector.load %arg2[%c8, %c0_10] : memref<9x32xf32, #tpu.memory_space<vmem>>, vector<1x32xf32>
    %10 = vector.shape_cast %0 : vector<512x1xf32> to vector<512x1xf32>
    %11 = vector.broadcast %10 : vector<512x1xf32> to vector<512x32xf32>
    %12 = arith.mulf %11, %11 : vector<512x32xf32>
    %13 = vector.broadcast %7 : vector<1x32xf32> to vector<512x32xf32>
    %14 = arith.mulf %12, %13 : vector<512x32xf32>
    %15 = vector.broadcast %8 : vector<1x32xf32> to vector<512x32xf32>
    %16 = arith.mulf %11, %15 : vector<512x32xf32>
    %17 = arith.addf %14, %16 : vector<512x32xf32>
    %18 = vector.broadcast %9 : vector<1x32xf32> to vector<512x32xf32>
    %19 = arith.addf %17, %18 : vector<512x32xf32>
    %20 = math.rsqrt %19 : vector<512x32xf32>
    %21 = vector.broadcast %1 : vector<1x32xf32> to vector<512x32xf32>
    %22 = arith.mulf %11, %21 : vector<512x32xf32>
    %23 = vector.broadcast %2 : vector<1x32xf32> to vector<512x32xf32>
    %24 = arith.addf %22, %23 : vector<512x32xf32>
    %25 = arith.mulf %24, %20 : vector<512x32xf32>
    %26 = vector.broadcast %3 : vector<1x32xf32> to vector<512x32xf32>
    %27 = arith.addf %25, %26 : vector<512x32xf32>
    %cst = arith.constant 0.000000e+00 : f32
    %28 = vector.broadcast %cst : f32 to vector<512x32xf32>
    %29 = arith.maximumf %27, %28 : vector<512x32xf32>
    %c0_11 = arith.constant 0 : index
    %c0_12 = arith.constant 0 : index
    %30 = vector.load %arg3[%c0_11, %c0_12] : memref<32x32xf32, #tpu.memory_space<vmem>>, vector<32x32xf32>
    %cst_13 = arith.constant dense<0.000000e+00> : vector<512x32xf32>
    %31 = tpu.matmul %29, %30, %cst_13 {dimension_numbers = #tpu.dot_dimension_numbers<[1], [0], [0], [1], [0, 0, 1, 1], [], []>} : vector<512x32xf32>, vector<32x32xf32>, vector<512x32xf32> -> vector<512x32xf32>
    %32 = vector.broadcast %4 : vector<1x32xf32> to vector<512x32xf32>
    %33 = arith.addf %31, %32 : vector<512x32xf32>
    %cst_14 = arith.constant dense<0.000000e+00> : vector<512xf32>
    %34 = vector.multi_reduction <add>, %33, %cst_14 [1] : vector<512x32xf32> to vector<512xf32>
    %35 = vector.shape_cast %34 : vector<512xf32> to vector<512x1xf32>
    %cst_15 = arith.constant 3.200000e+01 : f32
    %36 = vector.broadcast %cst_15 : f32 to vector<512x1xf32>
    %37 = arith.divf %35, %36 : vector<512x1xf32>
    %38 = vector.broadcast %37 : vector<512x1xf32> to vector<512x32xf32>
    %39 = arith.subf %33, %38 : vector<512x32xf32>
    %40 = arith.mulf %39, %39 : vector<512x32xf32>
    %cst_16 = arith.constant dense<0.000000e+00> : vector<512xf32>
    %41 = vector.multi_reduction <add>, %40, %cst_16 [1] : vector<512x32xf32> to vector<512xf32>
    %42 = vector.shape_cast %41 : vector<512xf32> to vector<512x1xf32>
    %cst_17 = arith.constant 3.200000e+01 : f32
    %43 = vector.broadcast %cst_17 : f32 to vector<512x1xf32>
    %44 = arith.divf %42, %43 : vector<512x1xf32>
    %45 = vector.broadcast %37 : vector<512x1xf32> to vector<512x32xf32>
    %46 = arith.subf %33, %45 : vector<512x32xf32>
    %cst_18 = arith.constant 9.99999974E-6 : f32
    %47 = vector.broadcast %cst_18 : f32 to vector<512x1xf32>
    %48 = arith.addf %44, %47 : vector<512x1xf32>
    %49 = math.rsqrt %48 : vector<512x1xf32>
    %50 = vector.broadcast %49 : vector<512x1xf32> to vector<512x32xf32>
    %51 = arith.mulf %46, %50 : vector<512x32xf32>
    %52 = vector.broadcast %5 : vector<1x32xf32> to vector<512x32xf32>
    %53 = arith.mulf %51, %52 : vector<512x32xf32>
    %54 = vector.broadcast %6 : vector<1x32xf32> to vector<512x32xf32>
    %55 = arith.addf %53, %54 : vector<512x32xf32>
    %cst_19 = arith.constant 0.000000e+00 : f32
    %56 = vector.broadcast %cst_19 : f32 to vector<512x32xf32>
    %57 = arith.maximumf %55, %56 : vector<512x32xf32>
    %c0_20 = arith.constant 0 : index
    %c0_21 = arith.constant 0 : index
    %58 = vector.load %arg4[%c0_20, %c0_21] : memref<32x48xf32, #tpu.memory_space<vmem>>, vector<32x48xf32>
    %cst_22 = arith.constant dense<0.000000e+00> : vector<512x48xf32>
    %59 = tpu.matmul %57, %58, %cst_22 {dimension_numbers = #tpu.dot_dimension_numbers<[1], [0], [0], [1], [0, 0, 1, 1], [], []>} : vector<512x32xf32>, vector<32x48xf32>, vector<512x48xf32> -> vector<512x48xf32>
    %c0_23 = arith.constant 0 : index
    %c0_24 = arith.constant 0 : index
    %60 = vector.load %arg5[%c0_23, %c0_24] : memref<1x48xf32, #tpu.memory_space<vmem>>, vector<1x48xf32>
    %61 = vector.broadcast %60 : vector<1x48xf32> to vector<512x48xf32>
    %62 = arith.addf %59, %61 : vector<512x48xf32>
    %c0_25 = arith.constant 0 : index
    %c0_26 = arith.constant 0 : index
    %63 = vector.load %arg6[%c0_25, %c0_26] : memref<512x48xf32, #tpu.memory_space<vmem>>, vector<512x48xf32>
    tpu.vector_store %arg6[%c0_25, %c0_26], %62 {strides = array<i32>} : memref<512x48xf32, #tpu.memory_space<vmem>>, vector<512x48xf32>,
    return
  }
  func.func @transform_0(%arg0: i32) -> (i32, i32) {
    %c0_i32 = arith.constant 0 : i32
    %c0_i32_0 = arith.constant 0 : i32
    return %arg0, %c0_i32 : i32, i32
  }
  func.func @transform_1(%arg0: i32) -> (i32, i32) {
    %c0_i32 = arith.constant 0 : i32
    %c0_i32_0 = arith.constant 0 : i32
    %c0_i32_1 = arith.constant 0 : i32
    return %c0_i32, %c0_i32_0 : i32, i32
  }
  func.func @transform_2(%arg0: i32) -> (i32, i32) {
    %c0_i32 = arith.constant 0 : i32
    %c0_i32_0 = arith.constant 0 : i32
    %c0_i32_1 = arith.constant 0 : i32
    return %c0_i32, %c0_i32_0 : i32, i32
  }
  func.func @transform_3(%arg0: i32) -> (i32, i32) {
    %c0_i32 = arith.constant 0 : i32
    %c0_i32_0 = arith.constant 0 : i32
    %c0_i32_1 = arith.constant 0 : i32
    return %c0_i32, %c0_i32_0 : i32, i32
  }
  func.func @transform_4(%arg0: i32) -> (i32, i32) {
    %c0_i32 = arith.constant 0 : i32
    %c0_i32_0 = arith.constant 0 : i32
    %c0_i32_1 = arith.constant 0 : i32
    return %c0_i32, %c0_i32_0 : i32, i32
  }
  func.func @transform_5(%arg0: i32) -> (i32, i32) {
    %c0_i32 = arith.constant 0 : i32
    %c0_i32_0 = arith.constant 0 : i32
    return %arg0, %c0_i32 : i32, i32
  }
}

</mosaic_0001>

<bundles_post_ra>
// kernel: radial_func_forward.1
= control target key start
LH: loop header
LB: loop body
LE: loop exit
PB: predicated region body
PF: predicated region fallthrough
CT: control target
= control target key end

     0   :  { %s4500_s18 = smov 0   ;;  %s6828_s0 = inlined_call_operand.vmem [shape: f32[1024,1], index: 0, kind: input, shape index: {}]   ;;  %s6829_s1 = inlined_call_operand.vmem [shape: f32[9,32], index: 1, kind: input, shape index: {}]   ;;  %s6830_s2 = inlined_call_operand.vmem [shape: f32[32,32], index: 2, kind: input, shape index: {}]   ;;  %s6831_s3 = inlined_call_operand.vmem [shape: f32[32,48], index: 3, kind: input, shape index: {}]   ;;  %s6832_s4 = inlined_call_operand.vmem [shape: f32[1,48], index: 4, kind: input, shape index: {}]   ;;  %s6833_s5 = inlined_call_operand.vmem [shape: f32[1024,48], index: 5, kind: output, shape index: {}]  }
   0x1 LB: > { %s3677_s19 = sadd.s32 4294967295, %s4467_s18   ;;  %p3681_p0 = scmp.ge.s32.totalorder %s4467_s18, 1  ;;  %s4467_s18 = sphi %s4500_s18, %s15_s18  }
   0x2   : > { %p188_p1 = scmp.lt.s32.totalorder %s4467_s18, 3 }
   0x4   : > { %p189_p2 = pnand %p3681_p0, %p188_p1 }
   0x6   : > { %192 = sbr.rel (%p189_p2) target bundleno = 1130 (0x46a), region = 40 }
   0xd   : > { %s3682_s20 = sshll.u32 %s3677_s19, 6  ;;  %v4469_v0 = vmov 0   ;;  %v1349_v15 = vld [vmem:[%s6830_s2] sm:$0xff]  ;;  %v1350_v16 = vld [vmem:[%s6830_s2 + $0x8] sm:$0xff]  ;;  %v1351_v20 = vld [vmem:[%s6830_s2 + $0x10] sm:$0xff]  ;;  %vm1357_vm0 = vcmask 261120  }
   0xe   : > { %4196 = vset.pattern.permute.xlu1 %v4469_v0  ;;  %4195 = vset.pattern.permute.xlu0 %v4469_v0  ;;  %p217_p3 = scmp.lt.s32.totalorder %s3682_s20, 127  ;;  %v4170_v17 = vpack.c.bf16 %v1350_v16, %v1349_v15  ;;  %v1352_v21 = vld [vmem:[%s6830_s2 + $0x18] sm:$0xff]  ;;  %vm3556_vm1 = vcmask 392192  }
   0xf   : > { %v4174_v22 = vpack.c.bf16 %v1352_v21, %v1351_v20 }
  0x10   : > { %s6928_s20 = smov (!%p217_p3, %s3682_s20), 127  ;;  %4171 = vmatprep.subr.bf16.mxu0 %v4170_v17 }
  0x11   : > { %s3683_s21 = sshll.u32 %s6928_s20, 3  ;;  %4173 = vmatpush3.bf16.msra.mxu0 %v4170_v17 }
  0x12   : > { %s4516_s24 = scalar_lea.vmem %s6828_s0, %s3683_s21  ;;  %4175 = vmatprep.subr.bf16.mxu0 %v4174_v22  ;;  %s6631_s10 = scalar_lea.vmem %s6833_s5, %s3683_s21 }
  0x13   : > { %v230_v1 = vld [vmem:[%s4516_s24 + $0x10] sm:$0xff]  ;;  %v228_v2 = vld [vmem:[%s4516_s24] sm:$0xff]  ;;  %v231_v3 = vld [vmem:[%s4516_s24 + $0x18] sm:$0xff] }
  0x14   : > { %313 = vperm.xlu1 %4196, %v230_v1   ;;  %303 = vperm.xlu0 %4195, %v228_v2   ;;  %v229_v4 = vld [vmem:[%s4516_s24 + $0x8] sm:$0xff]  ;;  %v232_v6 = vld [vmem:[%s4516_s24 + $0x20] sm:$0xff]  ;;  %v235_v7 = vld [vmem:[%s4516_s24 + $0x38] sm:$0xff] }
  0x15   : > { %v233_v5 = vld [vmem:[%s4516_s24 + $0x28] sm:$0xff]  ;;  %v234_v8 = vld [vmem:[%s4516_s24 + $0x30] sm:$0xff]  ;;  %v236_v10 = vld [vmem:[%s4516_s24 + $0x40] sm:$0xff]  ;;  %4177 = vmatpush3.bf16.msra.mxu0 %v4174_v22 }
  0x16   : > { %v237_v9 = vld [vmem:[%s4516_s24 + $0x48] sm:$0xff]  ;;  %v239_v11 = vld [vmem:[%s4516_s24 + $0x58] sm:$0xff]  ;;  %v238_v12 = vld [vmem:[%s4516_s24 + $0x50] sm:$0xff] }
  0x17   : > { %v241_v13 = vld [vmem:[%s4516_s24 + $0x68] sm:$0xff]  ;;  %v240_v14 = vld [vmem:[%s4516_s24 + $0x60] sm:$0xff]  ;;  %v243_v18 = vld [vmem:[%s4516_s24 + $0x78] sm:$0xff] }
  0x18   : > { %318 = vperm.xlu1 %4196, %v231_v3   ;;  %308 = vperm.xlu0 %4195, %v229_v4   ;;  %v242_v19 = vld [vmem:[%s4516_s24 + $0x70] sm:$0xff]  ;;  %v245_v23 = vld [vmem:[%s4516_s24 + $0x88] sm:$0xff]  ;;  %v244_v24 = vld [vmem:[%s4516_s24 + $0x80] sm:$0xff] }
  0x19   : > { %v247_v25 = vld [vmem:[%s4516_s24 + $0x98] sm:$0xff]  ;;  %v246_v26 = vld [vmem:[%s4516_s24 + $0x90] sm:$0xff]  ;;  %v249_v27 = vld [vmem:[%s4516_s24 + $0xa8] sm:$0xff] }
  0x1a   : > { %v248_v28 = vld [vmem:[%s4516_s24 + $0xa0] sm:$0xff]  ;;  %v251_v29 = vld [vmem:[%s4516_s24 + $0xb8] sm:$0xff]  ;;  %v250_v30 = vld [vmem:[%s4516_s24 + $0xb0] sm:$0xff] }
  0x1b   : > { %v253_v31 = vld [vmem:[%s4516_s24 + $0xc8] sm:$0xff]  ;;  %v252_v32 = vld [vmem:[%s4516_s24 + $0xc0] sm:$0xff]  ;;  %v255_v33 = vld [vmem:[%s4516_s24 + $0xd8] sm:$0xff] }
  0x1c   : > { %328 = vperm.xlu1 %4196, %v233_v5   ;;  %323 = vperm.xlu0 %4195, %v232_v6   ;;  %v254_v34 = vld [vmem:[%s4516_s24 + $0xd0] sm:$0xff]  ;;  %v257_v35 = vld [vmem:[%s4516_s24 + $0xe8] sm:$0xff]  ;;  %v256_v36 = vld [vmem:[%s4516_s24 + $0xe0] sm:$0xff] }
  0x1d   : > { %v259_v37 = vld [vmem:[%s4516_s24 + $0xf8] sm:$0xff]  ;;  %v258_v38 = vld [vmem:[%s4516_s24 + $0xf0] sm:$0xff]  ;;  %v261_v39 = vld [vmem:[%s4516_s24 + $0x108] sm:$0xff] }
  0x1e   : > { %v260_v40 = vld [vmem:[%s4516_s24 + $0x100] sm:$0xff]  ;;  %v263_v41 = vld [vmem:[%s4516_s24 + $0x118] sm:$0xff]  ;;  %v262_v42 = vld [vmem:[%s4516_s24 + $0x110] sm:$0xff] }
  0x1f   : > { %v265_v43 = vld [vmem:[%s4516_s24 + $0x128] sm:$0xff]  ;;  %v264_v44 = vld [vmem:[%s4516_s24 + $0x120] sm:$0xff]  ;;  %v267_v45 = vld [vmem:[%s4516_s24 + $0x138] sm:$0xff] }
  0x20   : > { %338 = vperm.xlu1 %4196, %v235_v7   ;;  %333 = vperm.xlu0 %4195, %v234_v8   ;;  %v266_v46 = vld [vmem:[%s4516_s24 + $0x130] sm:$0xff]  ;;  %v269_v47 = vld [vmem:[%s4516_s24 + $0x148] sm:$0xff]  ;;  %v268_v48 = vld [vmem:[%s4516_s24 + $0x140] sm:$0xff] }
  0x21   : > { %v271_v49 = vld [vmem:[%s4516_s24 + $0x158] sm:$0xff]  ;;  %v270_v50 = vld [vmem:[%s4516_s24 + $0x150] sm:$0xff]  ;;  %v273_v51 = vld [vmem:[%s4516_s24 + $0x168] sm:$0xff] }
  0x22   : > { %v272_v52 = vld [vmem:[%s4516_s24 + $0x160] sm:$0xff]  ;;  %v275_v53 = vld [vmem:[%s4516_s24 + $0x178] sm:$0xff]  ;;  %v274_v54 = vld [vmem:[%s4516_s24 + $0x170] sm:$0xff] }
  0x23   : > { %v277_v55 = vld [vmem:[%s4516_s24 + $0x188] sm:$0xff]  ;;  %v276_v56 = vld [vmem:[%s4516_s24 + $0x180] sm:$0xff]  ;;  %v279_v57 = vld [vmem:[%s4516_s24 + $0x198] sm:$0xff] }
  0x24   : > { %348 = vperm.xlu1 %4196, %v237_v9   ;;  %343 = vperm.xlu0 %4195, %v236_v10   ;;  %v278_v58 = vld [vmem:[%s4516_s24 + $0x190] sm:$0xff]  ;;  %v281_v59 = vld [vmem:[%s4516_s24 + $0x1a8] sm:$0xff]  ;;  %v280_v60 = vld [vmem:[%s4516_s24 + $0x1a0] sm:$0xff] }
  0x25   : > { %v283_v61 = vld [vmem:[%s4516_s24 + $0x1b8] sm:$0xff]  ;;  %v282_v62 = vld [vmem:[%s4516_s24 + $0x1b0] sm:$0xff]  ;;  %v285_v63 = vld [vmem:[%s4516_s24 + $0x1c8] sm:$0xff] }
  0x26   : > { %v284_v0 = vld [vmem:[%s4516_s24 + $0x1c0] sm:$0xff]  ;;  %v287_v1 = vld [vmem:[%s4516_s24 + $0x1d8] sm:$0xff]  ;;  %v286_v2 = vld [vmem:[%s4516_s24 + $0x1d0] sm:$0xff] }
  0x27   : > { %v289_v3 = vld [vmem:[%s4516_s24 + $0x1e8] sm:$0xff]  ;;  %v288_v4 = vld [vmem:[%s4516_s24 + $0x1e0] sm:$0xff]  ;;  %v291_v5 = vld [vmem:[%s4516_s24 + $0x1f8] sm:$0xff] }
  0x28   : > { %358 = vperm.xlu1 %4196, %v239_v11   ;;  %353 = vperm.xlu0 %4195, %v238_v12   ;;  %v290_v6 = vld [vmem:[%s4516_s24 + $0x1f0] sm:$0xff]  ;;  %v4597_v10 = vld [vmem:[%s6829_s1 + $0x6] ss:$0 sm:$0xff]  ;;  %v4602_v12 = vld [vmem:[%s6829_s1 + $0x7] ss:$0 sm:$0xff] }
  0x2c   : > { %368 = vperm.xlu1 %4196, %v241_v13   ;;  %363 = vperm.xlu0 %4195, %v240_v14  }
  0x30   : > { %378 = vperm.xlu1 %4196, %v243_v18   ;;  %373 = vperm.xlu0 %4195, %v242_v19  }
  0x34   : > { %388 = vperm.xlu1 %4196, %v245_v23   ;;  %383 = vperm.xlu0 %4195, %v244_v24  }
  0x38   : > { %398 = vperm.xlu1 %4196, %v247_v25   ;;  %393 = vperm.xlu0 %4195, %v246_v26  }
  0x3c   : > { %408 = vperm.xlu1 %4196, %v249_v27   ;;  %403 = vperm.xlu0 %4195, %v248_v28   ;;  %v4615_v27 = vld [vmem:[%s6829_s1] ss:$0 sm:$0xff] }
  0x40   : > { %418 = vperm.xlu1 %4196, %v251_v29   ;;  %413 = vperm.xlu0 %4195, %v250_v30   ;;  %v4620_v29 = vld [vmem:[%s6829_s1 + $0x8] ss:$0 sm:$0xff] }
  0x44   : > { %428 = vperm.xlu1 %4196, %v253_v31   ;;  %423 = vperm.xlu0 %4195, %v252_v32  }
  0x48   : > { %438 = vperm.xlu1 %4196, %v255_v33   ;;  %433 = vperm.xlu0 %4195, %v254_v34  }
  0x4c   : > { %448 = vperm.xlu1 %4196, %v257_v35   ;;  %443 = vperm.xlu0 %4195, %v256_v36  }
  0x50   : > { %458 = vperm.xlu1 %4196, %v259_v37   ;;  %453 = vperm.xlu0 %4195, %v258_v38  }
  0x54   : > { %468 = vperm.xlu1 %4196, %v261_v39   ;;  %463 = vperm.xlu0 %4195, %v260_v40   ;;  %v4627_v39 = vld [vmem:[%s6829_s1 + $0x1] ss:$0 sm:$0xff] }
  0x58   : > { %478 = vperm.xlu1 %4196, %v263_v41   ;;  %473 = vperm.xlu0 %4195, %v262_v42  }
  0x5c   : > { %488 = vperm.xlu1 %4196, %v265_v43   ;;  %483 = vperm.xlu0 %4195, %v264_v44  }
  0x60   : > { %498 = vperm.xlu1 %4196, %v267_v45   ;;  %493 = vperm.xlu0 %4195, %v266_v46  }
  0x64   : > { %508 = vperm.xlu1 %4196, %v269_v47   ;;  %503 = vperm.xlu0 %4195, %v268_v48  }
  0x68   : > { %518 = vperm.xlu1 %4196, %v271_v49   ;;  %513 = vperm.xlu0 %4195, %v270_v50  }
  0x6c   : > { %528 = vperm.xlu1 %4196, %v273_v51   ;;  %523 = vperm.xlu0 %4195, %v272_v52  }
  0x70   : > { %538 = vperm.xlu1 %4196, %v275_v53   ;;  %533 = vperm.xlu0 %4195, %v274_v54  }
  0x74   : > { %548 = vperm.xlu1 %4196, %v277_v55   ;;  %543 = vperm.xlu0 %4195, %v276_v56  }
  0x78   : > { %558 = vperm.xlu1 %4196, %v279_v57   ;;  %553 = vperm.xlu0 %4195, %v278_v58  }
  0x7c   : > { %568 = vperm.xlu1 %4196, %v281_v59   ;;  %563 = vperm.xlu0 %4195, %v280_v60  }
  0x80   : > { %578 = vperm.xlu1 %4196, %v283_v61   ;;  %573 = vperm.xlu0 %4195, %v282_v62  }
  0x84   : > { %588 = vperm.xlu1 %4196, %v285_v63   ;;  %583 = vperm.xlu0 %4195, %v284_v0  }
  0x88   : > { %598 = vperm.xlu1 %4196, %v287_v1   ;;  %593 = vperm.xlu0 %4195, %v286_v2  }
  0x8c   : > { %608 = vperm.xlu1 %4196, %v289_v3   ;;  %603 = vperm.xlu0 %4195, %v288_v4  }
  0x90   : > { %618 = vperm.xlu1 %4196, %v291_v5   ;;  %613 = vperm.xlu0 %4195, %v290_v6  }
  0x93   : > { %v314_v7 = vpop.permute.xlu1 %313  ;;  %v304_v8 = vpop.permute.xlu0 %303 }
  0x94   : > { %v621_v9 = vmul.f32 %v304_v8, %v304_v8  ;;  %v623_v11 = vmul.f32 %v314_v7, %v314_v7  ;;  %v759_v19 = vmul.f32 %v4602_v12, %v314_v7  ;;  %v757_v20 = vmul.f32 %v4602_v12, %v304_v8 }
  0x95   : > { %v1023_v34 = vmul.f32 %v4615_v27, %v314_v7  ;;  %v1021_v35 = vmul.f32 %v4615_v27, %v304_v8 }
  0x96   : > { %v689_v15 = vmul.f32 %v4597_v10, %v621_v9  ;;  %v691_v18 = vmul.f32 %v4597_v10, %v623_v11 }
  0x97   : > { %v319_v13 = vpop.permute.xlu1 %318  ;;  %v309_v14 = vpop.permute.xlu0 %308  ;;  %v4636_v47 = vadd.f32 %v4627_v39, %v1023_v34  ;;  %v4644_v54 = vadd.f32 %v4627_v39, %v1021_v35 }
  0x98   : > { %v624_v16 = vmul.f32 %v319_v13, %v319_v13  ;;  %v622_v17 = vmul.f32 %v309_v14, %v309_v14  ;;  %v760_v22 = vmul.f32 %v4602_v12, %v319_v13  ;;  %v758_v24 = vmul.f32 %v4602_v12, %v309_v14 }
  0x99   : > { %v821_v28 = vadd.f32 %v757_v20, %v689_v15  ;;  %v823_v33 = vadd.f32 %v759_v19, %v691_v18  ;;  %v1024_v42 = vmul.f32 %v4615_v27, %v319_v13  ;;  %v1022_v55 = vmul.f32 %v4615_v27, %v309_v14 }
  0x9a   : > { %v692_v21 = vmul.f32 %v4597_v10, %v624_v16  ;;  %v690_v23 = vmul.f32 %v4597_v10, %v622_v17 }
  0x9b   : > { %v329_v25 = vpop.permute.xlu1 %328  ;;  %v324_v26 = vpop.permute.xlu0 %323  ;;  %v889_v40 = vadd.f32 %v4620_v29, %v821_v28  ;;  %v891_v46 = vadd.f32 %v4620_v29, %v823_v33  ;;  %v4649_v58 = vadd.f32 %v4627_v39, %v1024_v42  ;;  %v1090_v19 = vadd.f32 %v4627_v39, %v1022_v55 }
  0x9c   : > { %v822_v30 = vadd.f32 %v758_v24, %v690_v23  ;;  %v626_v31 = vmul.f32 %v329_v25, %v329_v25  ;;  %v625_v32 = vmul.f32 %v324_v26, %v324_v26  ;;  %v824_v36 = vadd.f32 %v760_v22, %v692_v21 }
  0x9d   : > { %v762_v50 = vmul.f32 %v4602_v12, %v329_v25  ;;  %v761_v51 = vmul.f32 %v4602_v12, %v324_v26  ;;  %4197 = vrsqrt.f32 %v889_v40  ;;  %v1026_v0 = vmul.f32 %v4615_v27, %v329_v25 }
  0x9e   : > { %v890_v43 = vadd.f32 %v4620_v29, %v822_v30  ;;  %v694_v44 = vmul.f32 %v4597_v10, %v626_v31  ;;  %v693_v45 = vmul.f32 %v4597_v10, %v625_v32  ;;  %v892_v49 = vadd.f32 %v4620_v29, %v824_v36 }
  0x9f   : > { %v339_v37 = vpop.permute.xlu1 %338  ;;  %v334_v38 = vpop.permute.xlu0 %333  ;;  %v1025_v1 = vmul.f32 %v4615_v27, %v324_v26  ;;  %v4673_v20 = vadd.f32 %v4627_v39, %v1026_v0 }
  0xa0   : > { %v628_v41 = vmul.f32 %v339_v37, %v339_v37  ;;  %v627_v48 = vmul.f32 %v334_v38, %v334_v38  ;;  %4199 = vrsqrt.f32 %v890_v43  ;;  %v826_v59 = vadd.f32 %v762_v50, %v694_v44 }
  0xa1   : > { %v825_v60 = vadd.f32 %v761_v51, %v693_v45  ;;  %4201 = vrsqrt.f32 %v891_v46  ;;  %v764_v61 = vmul.f32 %v4602_v12, %v339_v37  ;;  %v1028_v6 = vmul.f32 %v4615_v27, %v339_v37 }
  0xa2   : > { %v696_v56 = vmul.f32 %v4597_v10, %v628_v41  ;;  %v695_v62 = vmul.f32 %v4597_v10, %v627_v48  ;;  %4203 = vrsqrt.f32 %v892_v49  ;;  %v763_v7 = vmul.f32 %v4602_v12, %v334_v38 }
  0xa3   : > { %v349_v52 = vpop.permute.xlu1 %348  ;;  %v4641_v53 = vpop.permute.xlu0 %343  ;;  %v894_v9 = vadd.f32 %v4620_v29, %v826_v59  ;;  %v893_v11 = vadd.f32 %v4620_v29, %v825_v60  ;;  %v1027_v16 = vmul.f32 %v4615_v27, %v334_v38  ;;  %v4681_v25 = vadd.f32 %v4627_v39, %v1025_v1  ;;  %v4716_v60 = vld [vmem:[%s6829_s1 + $0x2] ss:$0 sm:$0xff] }
  0xa4   : > { %v630_v57 = vmul.f32 %v349_v52, %v349_v52  ;;  %v629_v63 = vmul.f32 %v4641_v53, %v4641_v53  ;;  %v828_v5 = vadd.f32 %v764_v61, %v696_v56  ;;  %v766_v13 = vmul.f32 %v4602_v12, %v349_v52 }
  0xa5   : > { %v827_v15 = vadd.f32 %v763_v7, %v695_v62  ;;  %v765_v17 = vmul.f32 %v4602_v12, %v4641_v53  ;;  %v4685_v28 = vadd.f32 %v4627_v39, %v1028_v6  ;;  %4205 = vrsqrt.f32 %v893_v11 }
  0xa6   : > { %v698_v2 = vmul.f32 %v4597_v10, %v630_v57  ;;  %v697_v8 = vmul.f32 %v4597_v10, %v629_v63  ;;  %v896_v26 = vadd.f32 %v4620_v29, %v828_v5  ;;  %4207 = vrsqrt.f32 %v894_v9 }
  0xa7   : > { %v359_v3 = vpop.permute.xlu1 %358  ;;  %v4658_v4 = vpop.permute.xlu0 %353  ;;  %v895_v35 = vadd.f32 %v4620_v29, %v827_v15  ;;  %v4693_v36 = vadd.f32 %v4627_v39, %v1027_v16  ;;  %v1030_v48 = vmul.f32 %v4615_v27, %v349_v52  ;;  %v1029_v50 = vmul.f32 %v4615_v27, %v4641_v53 }
  0xa8   : > { %v632_v14 = vmul.f32 %v359_v3, %v359_v3  ;;  %v631_v18 = vmul.f32 %v4658_v4, %v4658_v4  ;;  %v830_v21 = vadd.f32 %v766_v13, %v698_v2  ;;  %v829_v30 = vadd.f32 %v765_v17, %v697_v8  ;;  %v4198_v34 = vpop.eup %4197 }
  0xa9   : > { %v768_v31 = vmul.f32 %v4602_v12, %v359_v3  ;;  %v767_v42 = vmul.f32 %v4602_v12, %v4658_v4  ;;  %4209 = vrsqrt.f32 %v896_v26  ;;  %v1032_v55 = vmul.f32 %v4615_v27, %v359_v3 }
  0xaa   : > { %v700_v22 = vmul.f32 %v4597_v10, %v632_v14  ;;  %v699_v32 = vmul.f32 %v4597_v10, %v631_v18  ;;  %v4200_v38 = vpop.eup %4199  ;;  %v898_v40 = vadd.f32 %v4620_v29, %v830_v21  ;;  %v897_v49 = vadd.f32 %v4620_v29, %v829_v30 }
  0xab   : > { %v4676_v23 = vpop.permute.xlu1 %368  ;;  %v4678_v24 = vpop.permute.xlu0 %363  ;;  %v1154_v52 = vmul.f32 %v4200_v38, %v1090_v19  ;;  %4211 = vrsqrt.f32 %v895_v35  ;;  %v1153_v61 = vmul.f32 %v4198_v34, %v4644_v54  ;;  %v4733_v6 = vadd.f32 %v4627_v39, %v1030_v48 }
  0xac   : > { %v634_v33 = vmul.f32 %v4676_v23, %v4676_v23  ;;  %v633_v37 = vmul.f32 %v4678_v24, %v4678_v24  ;;  %v832_v41 = vadd.f32 %v768_v31, %v700_v22  ;;  %v4202_v46 = vpop.eup %4201  ;;  %v831_v56 = vadd.f32 %v767_v42, %v699_v32 }
  0xad   : > { %v4204_v51 = vpop.eup %4203  ;;  %v770_v57 = vmul.f32 %v4602_v12, %v4676_v23  ;;  %4213 = vrsqrt.f32 %v898_v40  ;;  %v769_v0 = vmul.f32 %v4602_v12, %v4678_v24  ;;  %v1155_v3 = vmul.f32 %v4202_v46, %v4636_v47 }
  0xae   : > { %v702_v43 = vmul.f32 %v4597_v10, %v634_v33  ;;  %v701_v59 = vmul.f32 %v4597_v10, %v633_v37  ;;  %v900_v62 = vadd.f32 %v4620_v29, %v832_v41  ;;  %4215 = vrsqrt.f32 %v897_v49 }
  0xaf   : > { %v4701_v44 = vpop.permute.xlu1 %378  ;;  %v4703_v45 = vpop.permute.xlu0 %373  ;;  %v1221_v5 = vadd.f32 %v4716_v60, %v1153_v61  ;;  %v4736_v7 = vadd.f32 %v4627_v39, %v1029_v50  ;;  %v899_v8 = vadd.f32 %v4620_v29, %v831_v56  ;;  %v1156_v11 = vmul.f32 %v4204_v51, %v4649_v58 }
  0xb0   : > { %v636_v53 = vmul.f32 %v4701_v44, %v4701_v44  ;;  %v834_v63 = vadd.f32 %v770_v57, %v702_v43  ;;  %v635_v54 = vmul.f32 %v4703_v45, %v4703_v45  ;;  %v833_v9 = vadd.f32 %v769_v0, %v701_v59  ;;  %v4206_v15 = vpop.eup %4205 }
  0xb1   : > { %v4741_v13 = vadd.f32 %v4627_v39, %v1032_v55  ;;  %v1285_v47 = vmax.f32 %v1221_v5, 0.0  ;;  %4217 = vrsqrt.f32 %v900_v62  ;;  %v1031_v16 = vmul.f32 %v4615_v27, %v4658_v4  ;;  %v4208_v58 = vpop.eup %4207 }
  0xb2   : > { %v704_v14 = vmul.f32 %v4597_v10, %v636_v53  ;;  %v902_v17 = vadd.f32 %v4620_v29, %v834_v63  ;;  %v1222_v18 = vadd.f32 %v4716_v60, %v1154_v52  ;;  %v772_v22 = vmul.f32 %v4602_v12, %v4701_v44 }
  0xb3   : > { %v4724_v1 = vpop.permute.xlu1 %388  ;;  %v4726_v2 = vpop.permute.xlu0 %383  ;;  %3970 = vmatprep.mubr.msk.f32.mxu0 %vm1357_vm0, %v1285_v47  ;;  %v703_v26 = vmul.f32 %v4597_v10, %v635_v54  ;;  %v1223_v30 = vadd.f32 %v4716_v60, %v1155_v3  ;;  %4219 = vrsqrt.f32 %v899_v8  ;;  %v1034_v31 = vmul.f32 %v4615_v27, %v4676_v23 }
  0xb4   : > { %v638_v4 = vmul.f32 %v4724_v1, %v4724_v1  ;;  %v901_v32 = vadd.f32 %v4620_v29, %v833_v9  ;;  %v1286_v33 = vmax.f32 %v1222_v18, 0.0  ;;  %v4210_v34 = vpop.eup %4209  ;;  %v1157_v35 = vmul.f32 %v4206_v15, %v4681_v25 }
  0xb5   : > { %v836_v37 = vadd.f32 %v772_v22, %v704_v14  ;;  %v771_v38 = vmul.f32 %v4602_v12, %v4703_v45  ;;  %v1287_v40 = vmax.f32 %v1223_v30, 0.0  ;;  %v1158_v41 = vmul.f32 %v4208_v58, %v4673_v20  ;;  %v4212_v25 = vpop.eup %4211 }
  0xb6   : > { %v1099_v42 = vadd.f32 %v4627_v39, %v1031_v16  ;;  %4221 = vrsqrt.f32 %v902_v17  ;;  %v1033_v43 = vmul.f32 %v4615_v27, %v4678_v24  ;;  %3971 = vmatmul.mubr.msk.f32.vlgmr.msra.gmra.mrb[0].mxu0 %vm1357_vm0, %v1286_v33  ;;  %v1036_v48 = vmul.f32 %v4615_v27, %v4701_v44 }
  0xb7   : > { %v4748_v19 = vpop.permute.xlu1 %398  ;;  %v4750_v21 = vpop.permute.xlu0 %393  ;;  %v835_v49 = vadd.f32 %v771_v38, %v703_v26  ;;  %3973 = vmatprep.mubr.msk.f32.mxu0 %vm1357_vm0, %v1287_v40  ;;  %v706_v20 = vmul.f32 %v4597_v10, %v638_v4  ;;  %v1224_v50 = vadd.f32 %v4716_v60, %v1156_v11  ;;  %v1102_v24 = vadd.f32 %v4627_v39, %v1034_v31 }
  0xb8   : > { %v4214_v51 = vpop.eup %4213  ;;  %4223 = vrsqrt.f32 %v901_v32  ;;  %v1035_v55 = vmul.f32 %v4615_v27, %v4703_v45  ;;  %v637_v56 = vmul.f32 %v4726_v2, %v4726_v2  ;;  %v904_v44 = vadd.f32 %v4620_v29, %v836_v37 }
  0xb9   : > { %v4216_v57 = vpop.eup %4215  ;;  %v774_v59 = vmul.f32 %v4602_v12, %v4724_v1  ;;  %v1288_v52 = vmax.f32 %v1224_v50, 0.0  ;;  %v1225_v61 = vadd.f32 %v4716_v60, %v1157_v35  ;;  %v1160_v53 = vmul.f32 %v4210_v34, %v4685_v28 }
  0xba   : > { %v1159_v62 = vmul.f32 %v4212_v25, %v4693_v36  ;;  %v1101_v63 = vadd.f32 %v4627_v39, %v1033_v43  ;;  %v639_v45 = vmul.f32 %v4750_v21, %v4750_v21  ;;  %v4798_v5 = vadd.f32 %v4627_v39, %v1036_v48 }
  0xbb   : > { %v4770_v23 = vpop.permute.xlu1 %408  ;;  %v4772_v46 = vpop.permute.xlu0 %403  ;;  %v903_v54 = vadd.f32 %v4620_v29, %v835_v49  ;;  %v838_v8 = vadd.f32 %v774_v59, %v706_v20  ;;  %3974 = vmatmul.mubr.msk.f32.gmra.mrb[2].mxu0 %vm1357_vm0, %v1288_v52  ;;  %v1289_v28 = vmax.f32 %v1225_v61, 0.0  ;;  %v4803_v36 = vmul.f32 %v4214_v51, %v4733_v6 }
  0xbc   : > { %v4218_v9 = vpop.eup %4217  ;;  %v1161_v11 = vmul.f32 %v4216_v57, %v4736_v7  ;;  %v705_v47 = vmul.f32 %v4597_v10, %v637_v56  ;;  %v640_v14 = vmul.f32 %v4748_v19, %v4748_v19  ;;  %4225 = vrsqrt.f32 %v904_v44 }
  0xbd   : > { %v4810_v15 = vadd.f32 %v4627_v39, %v1035_v55  ;;  %v1038_v16 = vmul.f32 %v4615_v27, %v4724_v1  ;;  %3976 = vmatprep.mubr.msk.f32.mxu0 %vm1357_vm0, %v1289_v28  ;;  %v1226_v17 = vadd.f32 %v4716_v60, %v1158_v41  ;;  %v4220_v6 = vpop.eup %4219  ;;  %v773_v7 = vmul.f32 %v4602_v12, %v4726_v2 }
  0xbe   : > { %v1037_v18 = vmul.f32 %v4615_v27, %v4726_v2  ;;  %v707_v58 = vmul.f32 %v4597_v10, %v639_v45  ;;  %v1227_v22 = vadd.f32 %v4716_v60, %v1159_v62  ;;  %4227 = vrsqrt.f32 %v903_v54 }
  0xbf   : > { %v4793_v0 = vpop.permute.xlu1 %418  ;;  %v4795_v3 = vpop.permute.xlu0 %413  ;;  %v906_v1 = vadd.f32 %v4620_v29, %v838_v8  ;;  %v1290_v30 = vmax.f32 %v1226_v17, 0.0  ;;  %v642_v4 = vmul.f32 %v4770_v23, %v4770_v23  ;;  %v837_v33 = vadd.f32 %v773_v7, %v705_v47 }
  0xc0   : > { %v4222_v32 = vpop.eup %4221  ;;  %v708_v34 = vmul.f32 %v4597_v10, %v640_v14  ;;  %v775_v2 = vmul.f32 %v4602_v12, %v4750_v21  ;;  %v1291_v35 = vmax.f32 %v1227_v22, 0.0  ;;  %v4833_v37 = vmul.f32 %v4218_v9, %v4741_v13 }
  0xc1   : > { %v1163_v38 = vmul.f32 %v4220_v6, %v1099_v42  ;;  %v4836_v40 = vadd.f32 %v4627_v39, %v1038_v16  ;;  %3977 = vmatmul.mubr.msk.f32.gmra.mrb[4].mxu0 %vm1357_vm0, %v1290_v30  ;;  %v641_v41 = vmul.f32 %v4772_v46, %v4772_v46  ;;  %v4842_v25 = vadd.f32 %v4627_v39, %v1037_v18 }
  0xc2   : > { %v4224_v43 = vpop.eup %4223  ;;  %v776_v48 = vmul.f32 %v4602_v12, %v4748_v19  ;;  %v1040_v13 = vmul.f32 %v4615_v27, %v4748_v19  ;;  %v839_v49 = vadd.f32 %v775_v2, %v707_v58  ;;  %3979 = vmatprep.mubr.msk.f32.mxu0 %vm1357_vm0, %v1291_v35  ;;  %v4851_v20 = vmul.f32 %v4222_v32, %v1102_v24 }
  0xc3   : > { %v4822_v26 = vpop.permute.xlu1 %428  ;;  %v4827_v31 = vpop.permute.xlu0 %423  ;;  %v710_v50 = vmul.f32 %v4597_v10, %v642_v4  ;;  %v1228_v51 = vadd.f32 %v4716_v60, %v1160_v53  ;;  %v1229_v55 = vadd.f32 %v4716_v60, %v1161_v11  ;;  %4229 = vrsqrt.f32 %v906_v1 }
  0xc4   : > { %v905_v56 = vadd.f32 %v4620_v29, %v837_v33  ;;  %v840_v57 = vadd.f32 %v776_v48, %v708_v34  ;;  %v644_v19 = vmul.f32 %v4793_v0, %v4793_v0  ;;  %v778_v44 = vmul.f32 %v4602_v12, %v4770_v23 }
  0xc5   : > { %v709_v59 = vmul.f32 %v4597_v10, %v641_v41  ;;  %v1292_v24 = vmax.f32 %v1228_v51, 0.0  ;;  %v1293_v52 = vmax.f32 %v1229_v55, 0.0  ;;  %v1165_v62 = vmul.f32 %v4224_v43, %v1101_v63 }
  0xc6   : > { %v4865_v53 = vadd.f32 %v4627_v39, %v1040_v13  ;;  %v907_v45 = vadd.f32 %v4620_v29, %v839_v49  ;;  %v643_v54 = vmul.f32 %v4795_v3, %v4795_v3  ;;  %v4226_v8 = vpop.eup %4225  ;;  %v1039_v28 = vmul.f32 %v4615_v27, %v4750_v21 }
  0xc7   : > { %v4849_v42 = vpop.permute.xlu1 %438  ;;  %v4862_v61 = vpop.permute.xlu0 %433  ;;  %v842_v9 = vadd.f32 %v778_v44, %v710_v50  ;;  %v777_v11 = vmul.f32 %v4602_v12, %v4772_v46  ;;  %3980 = vmatmul.mubr.msk.f32.gmra.mrb[6].mxu0 %vm1357_vm0, %v1292_v24  ;;  %v712_v63 = vmul.f32 %v4597_v10, %v644_v19  ;;  %4231 = vrsqrt.f32 %v905_v56 }
  0xc8   : > { %v908_v47 = vadd.f32 %v4620_v29, %v840_v57  ;;  %3982 = vmatprep.mubr.msk.f32.mxu0 %vm1357_vm0, %v1293_v52  ;;  %v1230_v14 = vadd.f32 %v4716_v60, %v4803_v36  ;;  %v1231_v16 = vadd.f32 %v4716_v60, %v1163_v38  ;;  %v4228_v21 = vpop.eup %4227  ;;  %v780_v7 = vmul.f32 %v4602_v12, %v4793_v0 }
  0xc9   : > { %v841_v6 = vadd.f32 %v777_v11, %v709_v59  ;;  %v711_v18 = vmul.f32 %v4597_v10, %v643_v54  ;;  %v646_v58 = vmul.f32 %v4822_v26, %v4822_v26  ;;  %4233 = vrsqrt.f32 %v907_v45 }
  0xca   : > { %v1042_v22 = vmul.f32 %v4615_v27, %v4770_v23  ;;  %v1294_v1 = vmax.f32 %v1230_v14, 0.0  ;;  %v1295_v36 = vmax.f32 %v1231_v16, 0.0  ;;  %v910_v30 = vadd.f32 %v4620_v29, %v842_v9 }
  0xcb   : > { %v4881_v17 = vpop.permute.xlu1 %448  ;;  %v844_v4 = vadd.f32 %v780_v7, %v712_v63  ;;  %v779_v32 = vmul.f32 %v4602_v12, %v4795_v3  ;;  %v645_v33 = vmul.f32 %v4827_v31, %v4827_v31  ;;  %v4895_v34 = vpop.permute.xlu0 %443  ;;  %v4898_v2 = vmul.f32 %v4226_v8, %v4798_v5 }
  0xcc   : > { %4235 = vrsqrt.f32 %v908_v47  ;;  %v1107_v35 = vadd.f32 %v4627_v39, %v1039_v28  ;;  %3983 = vmatmul.mubr.msk.f32.gmra.mrb[8].mxu0 %vm1357_vm0, %v1294_v1  ;;  %v714_v23 = vmul.f32 %v4597_v10, %v646_v58  ;;  %v1167_v38 = vmul.f32 %v4228_v21, %v4810_v15 }
  0xcd   : > { %v909_v41 = vadd.f32 %v4620_v29, %v841_v6  ;;  %v1041_v43 = vmul.f32 %v4615_v27, %v4772_v46  ;;  %v843_v48 = vadd.f32 %v779_v32, %v711_v18  ;;  %3985 = vmatprep.mubr.msk.f32.mxu0 %vm1357_vm0, %v1295_v36  ;;  %v4230_v13 = vpop.eup %4229  ;;  %v782_v5 = vmul.f32 %v4602_v12, %v4822_v26 }
  0xce   : > { %v713_v49 = vmul.f32 %v4597_v10, %v645_v33  ;;  %v1232_v50 = vadd.f32 %v4716_v60, %v4833_v37  ;;  %v1233_v51 = vadd.f32 %v4716_v60, %v1165_v62  ;;  %4237 = vrsqrt.f32 %v910_v30 }
  0xcf   : > { %v4914_v15 = vpop.permute.xlu1 %458  ;;  %v4917_v55 = vadd.f32 %v4627_v39, %v1042_v22  ;;  %v912_v46 = vadd.f32 %v4620_v29, %v844_v4  ;;  %v648_v56 = vmul.f32 %v4849_v42, %v4849_v42  ;;  %v846_v57 = vadd.f32 %v782_v5, %v714_v23  ;;  %v4933_v45 = vpop.permute.xlu0 %453 }
  0xd0   : > { %v781_v19 = vmul.f32 %v4602_v12, %v4827_v31  ;;  %v1296_v44 = vmax.f32 %v1232_v50, 0.0  ;;  %v1297_v59 = vmax.f32 %v1233_v51, 0.0  ;;  %v4925_v37 = vmul.f32 %v4230_v13, %v4836_v40 }
  0xd1   : > { %v4928_v24 = vadd.f32 %v4627_v39, %v1041_v43  ;;  %v1044_v52 = vmul.f32 %v4615_v27, %v4793_v0  ;;  %v911_v62 = vadd.f32 %v4620_v29, %v843_v48  ;;  %v4232_v54 = vpop.eup %4231  ;;  %4239 = vrsqrt.f32 %v909_v41 }
  0xd2   : > { %v845_v8 = vadd.f32 %v781_v19, %v713_v49  ;;  %3986 = vmatmul.mubr.msk.f32.gmra.mrb[10].mxu0 %vm1357_vm0, %v1296_v44  ;;  %v716_v28 = vmul.f32 %v4597_v10, %v648_v56  ;;  %v647_v40 = vmul.f32 %v4862_v61, %v4862_v61  ;;  %4241 = vrsqrt.f32 %v912_v46 }
  0xd3   : > { %v1043_v9 = vmul.f32 %v4615_v27, %v4795_v3  ;;  %3988 = vmatprep.mubr.msk.f32.mxu0 %vm1357_vm0, %v1297_v59  ;;  %v1234_v0 = vadd.f32 %v4716_v60, %v4851_v20  ;;  %v1235_v11 = vadd.f32 %v4716_v60, %v1167_v38  ;;  %v4234_v63 = vpop.eup %4233  ;;  %v914_v47 = vadd.f32 %v4620_v29, %v846_v57  ;;  %v4951_v6 = vpop.permute.xlu1 %468 }
  0xd4   : > { %v784_v14 = vmul.f32 %v4602_v12, %v4849_v42  ;;  %v715_v16 = vmul.f32 %v4597_v10, %v647_v40  ;;  %v650_v21 = vmul.f32 %v4881_v17, %v4881_v17  ;;  %v1169_v3 = vmul.f32 %v4232_v54, %v4842_v25  ;;  %v4965_v33 = vpop.permute.xlu0 %463 }
  0xd5   : > { %4243 = vrsqrt.f32 %v911_v62  ;;  %v1298_v7 = vmax.f32 %v1234_v0, 0.0  ;;  %v1299_v20 = vmax.f32 %v1235_v11, 0.0  ;;  %v913_v58 = vadd.f32 %v4620_v29, %v845_v8 }
  0xd6   : > { %v4236_v18 = vpop.eup %4235  ;;  %v848_v22 = vadd.f32 %v784_v14, %v716_v28  ;;  %v783_v1 = vmul.f32 %v4602_v12, %v4862_v61  ;;  %v649_v36 = vmul.f32 %v4895_v34, %v4895_v34  ;;  %v1112_v30 = vadd.f32 %v4627_v39, %v1044_v52 }
  0xd7   : > { %v1111_v4 = vadd.f32 %v4627_v39, %v1043_v9  ;;  %v1046_v25 = vmul.f32 %v4615_v27, %v4822_v26  ;;  %3989 = vmatmul.mubr.msk.f32.gmra.mrb[12].mxu0 %vm1357_vm0, %v1298_v7  ;;  %v718_v32 = vmul.f32 %v4597_v10, %v650_v21  ;;  %v1171_v23 = vmul.f32 %v4234_v63, %v1107_v35  ;;  %v4981_v50 = vpop.permute.xlu1 %478 }
  0xd8   : > { %4245 = vrsqrt.f32 %v914_v47  ;;  %v1045_v38 = vmul.f32 %v4615_v27, %v4827_v31  ;;  %v847_v41 = vadd.f32 %v783_v1, %v715_v16  ;;  %3991 = vmatprep.mubr.msk.f32.mxu0 %vm1357_vm0, %v1299_v20  ;;  %v4238_v43 = vpop.eup %4237  ;;  %v786_v48 = vmul.f32 %v4602_v12, %v4881_v17  ;;  %v4996_v40 = vpop.permute.xlu0 %473 }
  0xd9   : > { %v717_v26 = vmul.f32 %v4597_v10, %v649_v36  ;;  %v1236_v13 = vadd.f32 %v4716_v60, %v4898_v2  ;;  %v1237_v5 = vadd.f32 %v4716_v60, %v1169_v3  ;;  %4247 = vrsqrt.f32 %v913_v58 }
  0xda   : > { %v916_v35 = vadd.f32 %v4620_v29, %v848_v22  ;;  %v1048_v31 = vmul.f32 %v4615_v27, %v4849_v42  ;;  %v652_v49 = vmul.f32 %v4914_v15, %v4914_v15  ;;  %v850_v51 = vadd.f32 %v786_v48, %v718_v32 }
  0xdb   : > { %v785_v46 = vmul.f32 %v4602_v12, %v4895_v34  ;;  %v1300_v56 = vmax.f32 %v1236_v13, 0.0  ;;  %v1301_v57 = vmax.f32 %v1237_v5, 0.0  ;;  %v4240_v2 = vpop.eup %4239  ;;  %v1172_v19 = vmul.f32 %v4236_v18, %v4865_v53  ;;  %v5016_v3 = vpop.permute.xlu1 %488 }
  0xdc   : > { %v1114_v44 = vadd.f32 %v4627_v39, %v1046_v25  ;;  %v915_v59 = vadd.f32 %v4620_v29, %v847_v41  ;;  %v1047_v42 = vmul.f32 %v4615_v27, %v4862_v61  ;;  %v4242_v52 = vpop.eup %4241  ;;  %v4991_v62 = vmul.f32 %v4238_v43, %v4917_v55 }
  0xdd   : > { %v1113_v54 = vadd.f32 %v4627_v39, %v1045_v38  ;;  %v849_v8 = vadd.f32 %v785_v46, %v717_v26  ;;  %3992 = vmatmul.mubr.msk.f32.gmra.mrb[14].mxu0 %vm1357_vm0, %v1300_v56  ;;  %v720_v28 = vmul.f32 %v4597_v10, %v652_v49  ;;  %4249 = vrsqrt.f32 %v916_v35 }
  0xde   : > { %v4999_v53 = vadd.f32 %v4627_v39, %v1048_v31  ;;  %3994 = vmatprep.mubr.msk.f32.mxu0 %vm1357_vm0, %v1301_v57  ;;  %v651_v61 = vmul.f32 %v4933_v45, %v4933_v45  ;;  %v1238_v55 = vadd.f32 %v4716_v60, %v4925_v37  ;;  %v918_v0 = vadd.f32 %v4620_v29, %v850_v51 }
  0xdf   : > { %v4244_v9 = vpop.eup %4243  ;;  %v788_v11 = vmul.f32 %v4602_v12, %v4914_v15  ;;  %v1239_v63 = vadd.f32 %v4716_v60, %v1171_v23  ;;  %v654_v47 = vmul.f32 %v4951_v6, %v4951_v6  ;;  %v1173_v14 = vmul.f32 %v4240_v2, %v4928_v24  ;;  %v5033_v23 = vpop.permute.xlu0 %483 }
  0xe0   : > { %4251 = vrsqrt.f32 %v915_v59  ;;  %v5014_v16 = vadd.f32 %v4627_v39, %v1047_v42  ;;  %v1302_v21 = vmax.f32 %v1238_v55, 0.0  ;;  %v917_v37 = vadd.f32 %v4620_v29, %v849_v8  ;;  %v5047_v31 = vpop.permute.xlu1 %498 }
  0xe1   : > { %v852_v7 = vadd.f32 %v788_v11, %v720_v28  ;;  %v1303_v20 = vmax.f32 %v1239_v63, 0.0  ;;  %v653_v18 = vmul.f32 %v4965_v33, %v4965_v33  ;;  %v5021_v22 = vmul.f32 %v4242_v52, %v1112_v30 }
  0xe2   : > { %v4246_v58 = vpop.eup %4245  ;;  %v1050_v24 = vmul.f32 %v4615_v27, %v4881_v17  ;;  %v1049_v1 = vmul.f32 %v4615_v27, %v4895_v34  ;;  %v719_v36 = vmul.f32 %v4597_v10, %v651_v61  ;;  %3995 = vmatmul.mubr.msk.f32.gmra.mrb[16].mxu0 %vm1357_vm0, %v1302_v21  ;;  %v1175_v25 = vmul.f32 %v4244_v9, %v1111_v4 }
  0xe3   : > { %4253 = vrsqrt.f32 %v918_v0  ;;  %v1052_v32 = vmul.f32 %v4615_v27, %v4914_v15  ;;  %3997 = vmatprep.mubr.msk.f32.mxu0 %vm1357_vm0, %v1303_v20  ;;  %v722_v30 = vmul.f32 %v4597_v10, %v654_v47  ;;  %v4248_v38 = vpop.eup %4247  ;;  %v787_v17 = vmul.f32 %v4602_v12, %v4933_v45  ;;  %v5066_v8 = vpop.permute.xlu0 %493 }
  0xe4   : > { %v1051_v34 = vmul.f32 %v4615_v27, %v4933_v45  ;;  %v1240_v41 = vadd.f32 %v4716_v60, %v1172_v19  ;;  %v1241_v4 = vadd.f32 %v4716_v60, %v1173_v14  ;;  %4255 = vrsqrt.f32 %v917_v37  ;;  %v5084_v37 = vpop.permute.xlu1 %508 }
  0xe5   : > { %v920_v15 = vadd.f32 %v4620_v29, %v852_v7  ;;  %v790_v43 = vmul.f32 %v4602_v12, %v4951_v6  ;;  %v721_v48 = vmul.f32 %v4597_v10, %v653_v18  ;;  %v851_v26 = vadd.f32 %v787_v17, %v719_v36 }
  0xe6   : > { %v1304_v13 = vmax.f32 %v1240_v41, 0.0  ;;  %v1305_v5 = vmax.f32 %v1241_v4, 0.0  ;;  %v656_v35 = vmul.f32 %v4981_v50, %v4981_v50  ;;  %v1118_v45 = vadd.f32 %v4627_v39, %v1050_v24 }
  0xe7   : > { %v1117_v49 = vadd.f32 %v4627_v39, %v1049_v1  ;;  %v854_v51 = vadd.f32 %v790_v43, %v722_v30  ;;  %v789_v46 = vmul.f32 %v4602_v12, %v4965_v33  ;;  %v4250_v56 = vpop.eup %4249  ;;  %v5053_v57 = vmul.f32 %v4246_v58, %v1114_v44 }
  0xe8   : > { %v1177_v2 = vmul.f32 %v4248_v38, %v1113_v54  ;;  %v5056_v19 = vadd.f32 %v4627_v39, %v1052_v32  ;;  %3998 = vmatmul.mubr.msk.f32.gmra.mrb[18].mxu0 %vm1357_vm0, %v1304_v13  ;;  %v655_v59 = vmul.f32 %v4996_v40, %v4996_v40  ;;  %4257 = vrsqrt.f32 %v920_v15  ;;  %v5106_v38 = vpop.permute.xlu0 %503  ;;  %v5119_v13 = vpop.permute.xlu1 %518 }
  0xe9   : > { %v1054_v42 = vmul.f32 %v4615_v27, %v4951_v6  ;;  %v853_v52 = vadd.f32 %v789_v46, %v721_v48  ;;  %4000 = vmatprep.mubr.msk.f32.mxu0 %vm1357_vm0, %v1305_v5  ;;  %v1242_v44 = vadd.f32 %v4716_v60, %v4991_v62  ;;  %v919_v28 = vadd.f32 %v4620_v29, %v851_v26 }
  0xea   : > { %v4252_v54 = vpop.eup %4251  ;;  %v5070_v61 = vadd.f32 %v4627_v39, %v1051_v34  ;;  %v724_v55 = vmul.f32 %v4597_v10, %v656_v35  ;;  %v1243_v9 = vadd.f32 %v4716_v60, %v1175_v25  ;;  %v922_v6 = vadd.f32 %v4620_v29, %v854_v51 }
  0xeb   : > { %v1053_v0 = vmul.f32 %v4615_v27, %v4965_v33  ;;  %v792_v62 = vmul.f32 %v4602_v12, %v4981_v50  ;;  %v1306_v11 = vmax.f32 %v1242_v44, 0.0  ;;  %v723_v63 = vmul.f32 %v4597_v10, %v655_v59 }
  0xec   : > { %v1307_v47 = vmax.f32 %v1243_v9, 0.0  ;;  %v658_v14 = vmul.f32 %v5016_v3, %v5016_v3  ;;  %v657_v21 = vmul.f32 %v5033_v23, %v5033_v23  ;;  %v1180_v20 = vmul.f32 %v4250_v56, %v4999_v53  ;;  %v5140_v44 = vpop.permute.xlu0 %513 }
  0xed   : > { %v4254_v7 = vpop.eup %4253  ;;  %v1179_v33 = vmul.f32 %v4252_v54, %v5014_v16  ;;  %v5089_v18 = vadd.f32 %v4627_v39, %v1054_v42  ;;  %v921_v58 = vadd.f32 %v4620_v29, %v853_v52  ;;  %4001 = vmatmul.mubr.msk.f32.gmra.mrb[20].mxu0 %vm1357_vm0, %v1306_v11  ;;  %4259 = vrsqrt.f32 %v919_v28 }
  0xee   : > { %v856_v24 = vadd.f32 %v792_v62, %v724_v55  ;;  %v791_v1 = vmul.f32 %v4602_v12, %v4996_v40  ;;  %4003 = vmatprep.mubr.msk.f32.mxu0 %vm1357_vm0, %v1307_v47  ;;  %v1244_v36 = vadd.f32 %v4716_v60, %v5021_v22  ;;  %v4256_v53 = vpop.eup %4255  ;;  %v5099_v16 = vadd.f32 %v4627_v39, %v1053_v0  ;;  %v5155_v47 = vpop.permute.xlu1 %528 }
  0xef   : > { %v1056_v25 = vmul.f32 %v4615_v27, %v4981_v50  ;;  %v1245_v32 = vadd.f32 %v4716_v60, %v1177_v2  ;;  %v660_v30 = vmul.f32 %v5047_v31, %v5047_v31  ;;  %4261 = vrsqrt.f32 %v922_v6 }
  0xf0   : > { %v855_v17 = vadd.f32 %v791_v1, %v723_v63  ;;  %v726_v34 = vmul.f32 %v4597_v10, %v658_v14  ;;  %v725_v22 = vmul.f32 %v4597_v10, %v657_v21  ;;  %4263 = vrsqrt.f32 %v921_v58 }
  0xf1   : > { %v1055_v41 = vmul.f32 %v4615_v27, %v4996_v40  ;;  %v1308_v4 = vmax.f32 %v1244_v36, 0.0  ;;  %v1309_v15 = vmax.f32 %v1245_v32, 0.0  ;;  %v924_v50 = vadd.f32 %v4620_v29, %v856_v24 }
  0xf2   : > { %v794_v43 = vmul.f32 %v4602_v12, %v5016_v3  ;;  %v1058_v48 = vmul.f32 %v4615_v27, %v5016_v3  ;;  %v793_v26 = vmul.f32 %v4602_v12, %v5033_v23  ;;  %v4258_v5 = vpop.eup %4257  ;;  %v5121_v35 = vmul.f32 %v4254_v7, %v1118_v45 }
  0xf3   : > { %v1181_v51 = vmul.f32 %v4256_v53, %v1117_v49  ;;  %v5124_v40 = vadd.f32 %v4627_v39, %v1056_v25  ;;  %4004 = vmatmul.mubr.msk.f32.gmra.mrb[22].mxu0 %vm1357_vm0, %v1308_v4  ;;  %v728_v46 = vmul.f32 %v4597_v10, %v660_v30  ;;  %v923_v56 = vadd.f32 %v4620_v29, %v855_v17 }
  0xf4   : > { %v858_v2 = vadd.f32 %v794_v43, %v726_v34  ;;  %v857_v3 = vadd.f32 %v793_v26, %v725_v22  ;;  %4006 = vmatprep.mubr.msk.f32.mxu0 %vm1357_vm0, %v1309_v15  ;;  %v659_v59 = vmul.f32 %v5066_v8, %v5066_v8  ;;  %v5133_v45 = vadd.f32 %v4627_v39, %v1055_v41  ;;  %v5199_v15 = vpop.permute.xlu1 %538  ;;  %v5215_v26 = vld [vmem:[%s6829_s1 + $0x8] ss:$0 sm:$0xff] }
  0xf5   : > { %v796_v49 = vmul.f32 %v4602_v12, %v5047_v31  ;;  %v1246_v42 = vadd.f32 %v4716_v60, %v5053_v57  ;;  %v1247_v52 = vadd.f32 %v4716_v60, %v1179_v33  ;;  %v5143_v54 = vmul.f32 %v4258_v5, %v5056_v19 }
  0xf6   : > { %4265 = vrsqrt.f32 %v924_v50  ;;  %v5146_v28 = vadd.f32 %v4627_v39, %v1058_v48  ;;  %v662_v55 = vmul.f32 %v5084_v37, %v5084_v37  ;;  %v1057_v9 = vmul.f32 %v4615_v27, %v5033_v23 }
  0xf7   : > { %v860_v6 = vadd.f32 %v796_v49, %v728_v46  ;;  %v1310_v0 = vmax.f32 %v1246_v42, 0.0  ;;  %v1311_v57 = vmax.f32 %v1247_v52, 0.0  ;;  %v4260_v62 = vpop.eup %4259  ;;  %4267 = vrsqrt.f32 %v923_v56  ;;  %v5233_v52 = vld [vmem:[%s6829_s1] ss:$0 sm:$0xff] }
  0xf8   : > { %v926_v11 = vadd.f32 %v4620_v29, %v858_v2  ;;  %v925_v19 = vadd.f32 %v4620_v29, %v857_v3  ;;  %v727_v63 = vmul.f32 %v4597_v10, %v659_v59  ;;  %v730_v14 = vmul.f32 %v4597_v10, %v662_v55 }
  0xf9   : > { %4007 = vmatmul.mubr.msk.f32.gmra.mrb[24].mxu0 %vm1357_vm0, %v1310_v0  ;;  %v661_v23 = vmul.f32 %v5106_v38, %v5106_v38  ;;  %v1248_v21 = vadd.f32 %v4716_v60, %v1180_v20  ;;  %v1249_v7 = vadd.f32 %v4716_v60, %v1181_v51  ;;  %v4262_v33 = vpop.eup %4261  ;;  %v1060_v58 = vmul.f32 %v4615_v27, %v5047_v31  ;;  %v5175_v31 = vpop.permute.xlu0 %523 }
  0xfa   : > { %v795_v24 = vmul.f32 %v4602_v12, %v5066_v8  ;;  %v1059_v1 = vmul.f32 %v4615_v27, %v5066_v8  ;;  %4009 = vmatprep.mubr.msk.f32.mxu0 %vm1357_vm0, %v1311_v57  ;;  %v664_v10 = vmul.f32 %v5119_v13, %v5119_v13  ;;  %v4264_v36 = vpop.eup %4263  ;;  %v928_v20 = vadd.f32 %v4620_v29, %v860_v6  ;;  %v5184_v29 = vld [vmem:[%s6829_s1 + $0x6] ss:$0 sm:$0xff] }
  0xfb   : > { %v798_v53 = vmul.f32 %v4602_v12, %v5084_v37  ;;  %v1312_v25 = vmax.f32 %v1248_v21, 0.0  ;;  %v1313_v32 = vmax.f32 %v1249_v7, 0.0  ;;  %v1183_v30 = vmul.f32 %v4260_v62, %v5070_v61 }
  0xfc   : > { %4269 = vrsqrt.f32 %v926_v11  ;;  %v5179_v27 = vadd.f32 %v4627_v39, %v1057_v9  ;;  %v859_v8 = vadd.f32 %v795_v24, %v727_v63  ;;  %v729_v12 = vmul.f32 %v5184_v29, %v661_v23 }
  0xfd   : > { %4271 = vrsqrt.f32 %v925_v19  ;;  %v862_v17 = vadd.f32 %v798_v53, %v730_v14  ;;  %4010 = vmatmul.mubr.msk.f32.gmra.mrb[26].mxu0 %vm1357_vm0, %v1312_v25  ;;  %v663_v34 = vmul.f32 %v5140_v44, %v5140_v44  ;;  %v5191_v61 = vmul.f32 %v4262_v33, %v5089_v18  ;;  %v5207_v18 = vld [vmem:[%s6829_s1 + $0x7] ss:$0 sm:$0xff]  ;;  %v5228_v49 = vpop.permute.xlu0 %533  ;;  %v5249_v14 = vpop.permute.xlu1 %548  ;;  %v5268_v25 = vld [vmem:[%s6829_s1 + $0x1] ss:$0 sm:$0xff] }
  0xfe   : > { %v1185_v22 = vmul.f32 %v4264_v36, %v5099_v16  ;;  %v5195_v41 = vadd.f32 %v4627_v39, %v1060_v58  ;;  %4012 = vmatprep.mubr.msk.f32.mxu0 %vm1357_vm0, %v1313_v32  ;;  %v732_v4 = vmul.f32 %v5184_v29, %v664_v10  ;;  %4273 = vrsqrt.f32 %v928_v20 }
  0xff   : > { %v5202_v50 = vadd.f32 %v4627_v39, %v1059_v1  ;;  %v797_v16 = vmul.f32 %v5207_v18, %v5106_v38  ;;  %v731_v43 = vmul.f32 %v5184_v29, %v663_v34  ;;  %v927_v5 = vadd.f32 %v5215_v26, %v859_v8 }
 0x100   : > { %v4266_v48 = vpop.eup %4265  ;;  %v800_v39 = vmul.f32 %v5207_v18, %v5119_v13  ;;  %v1250_v51 = vadd.f32 %v4716_v60, %v5121_v35  ;;  %v1251_v46 = vadd.f32 %v4716_v60, %v1183_v30  ;;  %v930_v56 = vadd.f32 %v5215_v26, %v862_v17 }
 0x101   : > { %v861_v2 = vadd.f32 %v797_v16, %v729_v12  ;;  %v799_v3 = vmul.f32 %v5207_v18, %v5140_v44  ;;  %v666_v59 = vmul.f32 %v5155_v47, %v5155_v47  ;;  %v4268_v42 = vpop.eup %4267  ;;  %v1062_v35 = vmul.f32 %v5233_v52, %v5084_v37  ;;  %v5263_v53 = vpop.permute.xlu0 %543 }
 0x102   : > { %v864_v55 = vadd.f32 %v800_v39, %v732_v4  ;;  %v1314_v9 = vmax.f32 %v1250_v51, 0.0  ;;  %v1315_v6 = vmax.f32 %v1251_v46, 0.0  ;;  %v5238_v0 = vmul.f32 %v4266_v48, %v5124_v40 }
 0x103   : > { %v863_v57 = vadd.f32 %v799_v3, %v731_v43  ;;  %v734_v62 = vmul.f32 %v5184_v29, %v666_v59  ;;  %v665_v11 = vmul.f32 %v5175_v31, %v5175_v31  ;;  %4275 = vrsqrt.f32 %v927_v5  ;;  %v5289_v43 = vpop.permute.xlu1 %558 }
 0x104   : > { %v1061_v19 = vmul.f32 %v5233_v52, %v5106_v38  ;;  %4013 = vmatmul.mubr.msk.f32.gmra.mrb[28].mxu0 %vm1357_vm0, %v1314_v9  ;;  %v1252_v37 = vadd.f32 %v4716_v60, %v5143_v54  ;;  %v1253_v63 = vadd.f32 %v4716_v60, %v1185_v22  ;;  %4277 = vrsqrt.f32 %v930_v56 }
 0x105   : > { %v929_v40 = vadd.f32 %v5215_v26, %v861_v2  ;;  %4015 = vmatprep.mubr.msk.f32.mxu0 %vm1357_vm0, %v1315_v6  ;;  %v802_v23 = vmul.f32 %v5207_v18, %v5155_v47  ;;  %v733_v21 = vmul.f32 %v5184_v29, %v665_v11  ;;  %v932_v7 = vadd.f32 %v5215_v26, %v864_v55  ;;  %v5303_v3 = vpop.permute.xlu0 %553 }
 0x106   : > { %v4270_v38 = vpop.eup %4269  ;;  %v1316_v33 = vmax.f32 %v1252_v37, 0.0  ;;  %v1317_v58 = vmax.f32 %v1253_v63, 0.0  ;;  %v668_v54 = vmul.f32 %v5199_v15, %v5199_v15  ;;  %v1187_v1 = vmul.f32 %v4268_v42, %v5133_v45 }
 0x107   : > { %v4272_v24 = vpop.eup %4271  ;;  %v931_v10 = vadd.f32 %v5215_v26, %v863_v57  ;;  %v866_v36 = vadd.f32 %v802_v23, %v734_v62  ;;  %v801_v20 = vmul.f32 %v5207_v18, %v5175_v31  ;;  %v1130_v32 = vadd.f32 %v5268_v25, %v1062_v35  ;;  %v5323_v37 = vpop.permute.xlu1 %568 }
 0x108   : > { %v5272_v30 = vadd.f32 %v5268_v25, %v1061_v19  ;;  %v1064_v45 = vmul.f32 %v5233_v52, %v5119_v13  ;;  %4016 = vmatmul.mubr.msk.f32.gmra.mrb[30].mxu0 %vm1357_vm0, %v1316_v33  ;;  %v667_v8 = vmul.f32 %v5228_v49, %v5228_v49  ;;  %v4274_v17 = vpop.eup %4273  ;;  %v5280_v12 = vmul.f32 %v4270_v38, %v5146_v28 }
 0x109   : > { %4279 = vrsqrt.f32 %v929_v40  ;;  %v1063_v34 = vmul.f32 %v5233_v52, %v5140_v44  ;;  %v865_v22 = vadd.f32 %v801_v20, %v733_v21  ;;  %4018 = vmatprep.mubr.msk.f32.mxu0 %vm1357_vm0, %v1317_v58  ;;  %v1189_v4 = vmul.f32 %v4272_v24, %v5179_v27 }
 0x10a   : > { %4281 = vrsqrt.f32 %v932_v7  ;;  %v736_v13 = vmul.f32 %v5184_v29, %v668_v54  ;;  %v1254_v16 = vadd.f32 %v4716_v60, %v5191_v61  ;;  %v934_v28 = vadd.f32 %v5215_v26, %v866_v36  ;;  %v5341_v54 = vpop.permute.xlu0 %563 }
 0x10b   : > { %4283 = vrsqrt.f32 %v931_v10  ;;  %v1066_v48 = vmul.f32 %v5233_v52, %v5155_v47  ;;  %v1255_v44 = vadd.f32 %v4716_v60, %v1187_v1  ;;  %v804_v5 = vmul.f32 %v5207_v18, %v5199_v15 }
 0x10c   : > { %v735_v27 = vmul.f32 %v5184_v29, %v667_v8  ;;  %v1318_v39 = vmax.f32 %v1254_v16, 0.0  ;;  %v670_v51 = vmul.f32 %v5249_v14, %v5249_v14  ;;  %v1132_v61 = vadd.f32 %v5268_v25, %v1064_v45  ;;  %v5355_v8 = vld [vmem:[%s6829_s1 + $0x2] ss:$0 sm:$0xff] }
 0x10d   : > { %v1131_v46 = vadd.f32 %v5268_v25, %v1063_v34  ;;  %v933_v56 = vadd.f32 %v5215_v26, %v865_v22  ;;  %v1319_v2 = vmax.f32 %v1255_v44, 0.0  ;;  %v4276_v47 = vpop.eup %4275  ;;  %v5306_v59 = vmul.f32 %v4274_v17, %v5195_v41 }
 0x10e   : > { %v1065_v42 = vmul.f32 %v5233_v52, %v5175_v31  ;;  %v868_v35 = vadd.f32 %v804_v5, %v736_v13  ;;  %v803_v55 = vmul.f32 %v5207_v18, %v5228_v49  ;;  %4019 = vmatmul.mubr.msk.f32.gmra.mrb[32].mxu0 %vm1357_vm0, %v1318_v39  ;;  %v4278_v9 = vpop.eup %4277  ;;  %4285 = vrsqrt.f32 %v934_v28  ;;  %v5366_v13 = vpop.permute.xlu1 %578 }
 0x10f   : > { %v1068_v6 = vmul.f32 %v5233_v52, %v5199_v15  ;;  %4021 = vmatprep.mubr.msk.f32.mxu0 %vm1357_vm0, %v1319_v2  ;;  %v669_v41 = vmul.f32 %v5263_v53, %v5263_v53  ;;  %v1256_v57 = vadd.f32 %v4716_v60, %v5238_v0  ;;  %v1134_v31 = vadd.f32 %v5268_v25, %v1066_v48  ;;  %v5380_v2 = vpop.permute.xlu0 %573 }
 0x110   : > { %v867_v62 = vadd.f32 %v803_v55, %v735_v27  ;;  %v738_v11 = vmul.f32 %v5184_v29, %v670_v51  ;;  %v1257_v19 = vadd.f32 %v4716_v60, %v1189_v4  ;;  %v1191_v63 = vmul.f32 %v4276_v47, %v5202_v50 }
 0x111   : > { %4287 = vrsqrt.f32 %v933_v56  ;;  %v1320_v15 = vmax.f32 %v1256_v57, 0.0  ;;  %v672_v40 = vmul.f32 %v5289_v43, %v5289_v43  ;;  %v936_v23 = vadd.f32 %v5215_v26, %v868_v35 }
 0x112   : > { %v1067_v0 = vmul.f32 %v5233_v52, %v5228_v49  ;;  %v806_v21 = vmul.f32 %v5207_v18, %v5249_v14  ;;  %v1321_v38 = vmax.f32 %v1257_v19, 0.0  ;;  %v5333_v60 = vmul.f32 %v4278_v9, %v1130_v32 }
 0x113   : > { %v4280_v7 = vpop.eup %4279  ;;  %v1133_v33 = vadd.f32 %v5268_v25, %v1065_v42  ;;  %v5337_v50 = vadd.f32 %v5268_v25, %v1068_v6  ;;  %v737_v58 = vmul.f32 %v5184_v29, %v669_v41  ;;  %4022 = vmatmul.mubr.msk.f32.gmra.mrb[34].mxu0 %vm1357_vm0, %v1320_v15  ;;  %v935_v49 = vadd.f32 %v5215_v26, %v867_v62 }
 0x114   : > { %v4282_v24 = vpop.eup %4281  ;;  %v870_v1 = vadd.f32 %v806_v21, %v738_v11  ;;  %v1070_v10 = vmul.f32 %v5233_v52, %v5249_v14  ;;  %4024 = vmatprep.mubr.msk.f32.mxu0 %vm1357_vm0, %v1321_v38  ;;  %v671_v36 = vmul.f32 %v5303_v3, %v5303_v3  ;;  %v805_v32 = vmul.f32 %v5207_v18, %v5263_v53  ;;  %v5401_v11 = vpop.permute.xlu1 %588 }
 0x115   : > { %v4284_v20 = vpop.eup %4283  ;;  %v740_v45 = vmul.f32 %v5184_v29, %v672_v40  ;;  %v1258_v17 = vadd.f32 %v5355_v8, %v5280_v12  ;;  %v1259_v14 = vadd.f32 %v5355_v8, %v1191_v63  ;;  %v1193_v34 = vmul.f32 %v4280_v7, %v5272_v30  ;;  %v5417_v7 = vpop.permute.xlu0 %583 }
 0x116   : > { %4289 = vrsqrt.f32 %v936_v23  ;;  %v5362_v22 = vadd.f32 %v5268_v25, %v1067_v0  ;;  %v1069_v4 = vmul.f32 %v5233_v52, %v5263_v53  ;;  %v869_v16 = vadd.f32 %v805_v32, %v737_v58 }
 0x117   : > { %v808_v28 = vmul.f32 %v5207_v18, %v5289_v43  ;;  %v1322_v48 = vmax.f32 %v1258_v17, 0.0  ;;  %v1323_v44 = vmax.f32 %v1259_v14, 0.0  ;;  %v5370_v12 = vmul.f32 %v4282_v24, %v1132_v61 }
 0x118   : > { %v938_v5 = vadd.f32 %v5215_v26, %v870_v1  ;;  %v739_v30 = vmul.f32 %v5184_v29, %v671_v36  ;;  %v673_v27 = vmul.f32 %v5341_v54, %v5341_v54  ;;  %v4286_v39 = vpop.eup %4285  ;;  %v1195_v51 = vmul.f32 %v4284_v20, %v1131_v46  ;;  %v5433_v14 = vpop.permute.xlu1 %598 }
 0x119   : > { %4291 = vrsqrt.f32 %v935_v49  ;;  %v5377_v53 = vadd.f32 %v5268_v25, %v1070_v10  ;;  %v872_v56 = vadd.f32 %v808_v28, %v740_v45  ;;  %4025 = vmatmul.mubr.msk.f32.gmra.mrb[36].mxu0 %vm1357_vm0, %v1322_v48  ;;  %v1072_v61 = vmul.f32 %v5233_v52, %v5289_v43 }
 0x11a   : > { %v807_v47 = vmul.f32 %v5207_v18, %v5303_v3  ;;  %4027 = vmatprep.mubr.msk.f32.mxu0 %vm1357_vm0, %v1323_v44  ;;  %v674_v46 = vmul.f32 %v5323_v37, %v5323_v37  ;;  %v741_v42 = vmul.f32 %v5184_v29, %v673_v27  ;;  %v937_v55 = vadd.f32 %v5215_v26, %v869_v16 }
 0x11b   : > { %v4288_v35 = vpop.eup %4287  ;;  %v5392_v9 = vadd.f32 %v5268_v25, %v1069_v4  ;;  %v1260_v6 = vadd.f32 %v5355_v8, %v5306_v59  ;;  %v1261_v43 = vadd.f32 %v5355_v8, %v1193_v34  ;;  %v5397_v41 = vmul.f32 %v4286_v39, %v1134_v31 }
 0x11c   : > { %4293 = vrsqrt.f32 %v938_v5  ;;  %v871_v57 = vadd.f32 %v807_v47, %v739_v30  ;;  %v809_v62 = vmul.f32 %v5207_v18, %v5341_v54  ;;  %v940_v19 = vadd.f32 %v5215_v26, %v872_v56 }
 0x11d   : > { %v1071_v63 = vmul.f32 %v5233_v52, %v5303_v3  ;;  %v1324_v15 = vmax.f32 %v1260_v6, 0.0  ;;  %v1325_v40 = vmax.f32 %v1261_v43, 0.0  ;;  %v1197_v23 = vmul.f32 %v4288_v35, %v1133_v33 }
 0x11e   : > { %v5407_v59 = vadd.f32 %v5268_v25, %v1072_v61  ;;  %v742_v31 = vmul.f32 %v5184_v29, %v674_v46  ;;  %v873_v0 = vadd.f32 %v809_v62, %v741_v42  ;;  %4295 = vrsqrt.f32 %v937_v55 }
 0x11f   : > { %v810_v21 = vmul.f32 %v5207_v18, %v5323_v37  ;;  %4028 = vmatmul.mubr.msk.f32.gmra.mrb[38].mxu0 %vm1357_vm0, %v1324_v15  ;;  %v676_v38 = vmul.f32 %v5366_v13, %v5366_v13  ;;  %v675_v3 = vmul.f32 %v5380_v2, %v5380_v2  ;;  %v939_v58 = vadd.f32 %v5215_v26, %v871_v57 }
 0x120   : > { %v4290_v33 = vpop.eup %4289  ;;  %v1074_v24 = vmul.f32 %v5233_v52, %v5323_v37  ;;  %4030 = vmatprep.mubr.msk.f32.mxu0 %vm1357_vm0, %v1325_v40  ;;  %v1262_v49 = vadd.f32 %v5355_v8, %v5333_v60  ;;  %v1263_v1 = vadd.f32 %v5355_v8, %v1195_v51  ;;  %4297 = vrsqrt.f32 %v940_v19  ;;  %v5456_v51 = vpop.permute.xlu0 %593 }
 0x121   : > { %v5427_v10 = vadd.f32 %v5268_v25, %v1071_v63  ;;  %v743_v36 = vmul.f32 %v5184_v29, %v675_v3  ;;  %v811_v20 = vmul.f32 %v5207_v18, %v5380_v2  ;;  %v874_v32 = vadd.f32 %v810_v21, %v742_v31  ;;  %v5467_v19 = vpop.permute.xlu1 %608 }
 0x122   : > { %v941_v45 = vadd.f32 %v5215_v26, %v873_v0  ;;  %v1326_v37 = vmax.f32 %v1262_v49, 0.0  ;;  %v1327_v17 = vmax.f32 %v1263_v1, 0.0  ;;  %v744_v60 = vmul.f32 %v5184_v29, %v676_v38 }
 0x123   : > { %v4292_v34 = vpop.eup %4291  ;;  %v875_v4 = vadd.f32 %v811_v20, %v743_v36  ;;  %v678_v16 = vmul.f32 %v5401_v11, %v5401_v11  ;;  %v677_v28 = vmul.f32 %v5417_v7, %v5417_v7  ;;  %v5441_v48 = vmul.f32 %v4290_v33, %v5337_v50 }
 0x124   : > { %4299 = vrsqrt.f32 %v939_v58  ;;  %v5444_v44 = vadd.f32 %v5268_v25, %v1074_v24  ;;  %v1073_v5 = vmul.f32 %v5233_v52, %v5341_v54  ;;  %4031 = vmatmul.mubr.msk.f32.gmra.mrb[40].mxu0 %vm1357_vm0, %v1326_v37  ;;  %v812_v30 = vmul.f32 %v5207_v18, %v5366_v13  ;;  %v5489_v33 = vpop.permute.xlu0 %603 }
 0x125   : > { %v943_v27 = vadd.f32 %v5215_v26, %v875_v4  ;;  %4033 = vmatprep.mubr.msk.f32.mxu0 %vm1357_vm0, %v1327_v17  ;;  %v745_v39 = vmul.f32 %v5184_v29, %v677_v28  ;;  %v813_v50 = vmul.f32 %v5207_v18, %v5417_v7  ;;  %v942_v61 = vadd.f32 %v5215_v26, %v874_v32 }
 0x126   : > { %v4294_v56 = vpop.eup %4293  ;;  %4301 = vrsqrt.f32 %v941_v45  ;;  %v1264_v54 = vadd.f32 %v5355_v8, %v5370_v12  ;;  %v1265_v47 = vadd.f32 %v5355_v8, %v1197_v23  ;;  %v876_v46 = vadd.f32 %v812_v30, %v744_v60 }
 0x127   : > { %v746_v42 = vmul.f32 %v5184_v29, %v678_v16  ;;  %v877_v35 = vadd.f32 %v813_v50, %v745_v39  ;;  %v680_v55 = vmul.f32 %v5433_v14, %v5433_v14  ;;  %v1199_v6 = vmul.f32 %v4292_v34, %v5362_v22  ;;  %v5501_v34 = vpop.permute.xlu1 %618 }
 0x128   : > { %v1141_v43 = vadd.f32 %v5268_v25, %v1073_v5  ;;  %v1328_v57 = vmax.f32 %v1264_v54, 0.0  ;;  %v1329_v62 = vmax.f32 %v1265_v47, 0.0  ;;  %v4296_v63 = vpop.eup %4295  ;;  %4303 = vrsqrt.f32 %v943_v27  ;;  %v5523_v47 = vpop.permute.xlu0 %613 }
 0x129   : > { %v814_v12 = vmul.f32 %v5207_v18, %v5401_v11  ;;  %v945_v15 = vadd.f32 %v5215_v26, %v877_v35  ;;  %v748_v40 = vmul.f32 %v5184_v29, %v680_v55  ;;  %v5474_v23 = vmul.f32 %v4294_v56, %v5377_v53 }
 0x12a   : > { %4305 = vrsqrt.f32 %v942_v61  ;;  %v5478_v22 = vmul.f32 %v5233_v52, %v5366_v13  ;;  %4034 = vmatmul.mubr.msk.f32.gmra.mrb[42].mxu0 %vm1357_vm0, %v1328_v57  ;;  %v679_v31 = vmul.f32 %v5456_v51, %v5456_v51  ;;  %v4298_v0 = vpop.eup %4297  ;;  %v944_v21 = vadd.f32 %v5215_v26, %v876_v46 }
 0x12b   : > { %v878_v38 = vadd.f32 %v814_v12, %v746_v42  ;;  %4036 = vmatprep.mubr.msk.f32.mxu0 %vm1357_vm0, %v1329_v62  ;;  %v816_v53 = vmul.f32 %v5207_v18, %v5433_v14  ;;  %v1266_v3 = vadd.f32 %v5355_v8, %v5397_v41  ;;  %v815_v58 = vmul.f32 %v5207_v18, %v5456_v51 }
 0x12c   : > { %v747_v13 = vmul.f32 %v5184_v29, %v679_v31  ;;  %v1267_v24 = vadd.f32 %v5355_v8, %v1199_v6  ;;  %v682_v49 = vmul.f32 %v5467_v19, %v5467_v19  ;;  %v1201_v1 = vmul.f32 %v4296_v63, %v5392_v9 }
 0x12d   : > { %4307 = vrsqrt.f32 %v945_v15  ;;  %v880_v36 = vadd.f32 %v816_v53, %v748_v40  ;;  %v1330_v20 = vmax.f32 %v1266_v3, 0.0  ;;  %v681_v17 = vmul.f32 %v5489_v33, %v5489_v33 }
 0x12e   : > { %v4300_v32 = vpop.eup %4299  ;;  %v879_v45 = vadd.f32 %v815_v58, %v747_v13  ;;  %v1331_v41 = vmax.f32 %v1267_v24, 0.0  ;;  %v750_v37 = vmul.f32 %v5184_v29, %v682_v49  ;;  %4309 = vrsqrt.f32 %v944_v21 }
 0x12f   : > { %v1075_v60 = vmul.f32 %v5233_v52, %v5380_v2  ;;  %v946_v4 = vadd.f32 %v5215_v26, %v878_v38  ;;  %v1077_v9 = vmul.f32 %v5233_v52, %v5417_v7  ;;  %4037 = vmatmul.mubr.msk.f32.gmra.mrb[44].mxu0 %vm1357_vm0, %v1330_v20  ;;  %v818_v5 = vmul.f32 %v5207_v18, %v5467_v19 }
 0x130   : > { %v4302_v16 = vpop.eup %4301  ;;  %v947_v28 = vadd.f32 %v5215_v26, %v879_v45  ;;  %4039 = vmatprep.mubr.msk.f32.mxu0 %vm1357_vm0, %v1331_v41  ;;  %v749_v30 = vmul.f32 %v5184_v29, %v681_v17  ;;  %v817_v2 = vmul.f32 %v5207_v18, %v5489_v33  ;;  %v948_v27 = vadd.f32 %v5215_v26, %v880_v36 }
 0x131   : > { %v1268_v7 = vadd.f32 %v5355_v8, %v5441_v48  ;;  %v1269_v39 = vadd.f32 %v5355_v8, %v1201_v1  ;;  %v684_v50 = vmul.f32 %v5501_v34, %v5501_v34  ;;  %v1203_v56 = vmul.f32 %v4300_v32, %v5427_v10 }
 0x132   : > { %4311 = vrsqrt.f32 %v947_v28  ;;  %v882_v61 = vadd.f32 %v818_v5, %v750_v37  ;;  %v881_v54 = vadd.f32 %v817_v2, %v749_v30  ;;  %v4304_v46 = vpop.eup %4303  ;;  %v1204_v48 = vmul.f32 %v4298_v0, %v5407_v59 }
 0x133   : > { %4313 = vrsqrt.f32 %v946_v4  ;;  %v1332_v42 = vmax.f32 %v1268_v7, 0.0  ;;  %v1333_v35 = vmax.f32 %v1269_v39, 0.0  ;;  %v752_v55 = vmul.f32 %v5184_v29, %v684_v50 }
 0x134   : > { %v4306_v6 = vpop.eup %4305  ;;  %v1205_v57 = vmul.f32 %v4302_v16, %v1141_v43  ;;  %v1143_v62 = vadd.f32 %v5268_v25, %v1075_v60  ;;  %v949_v63 = vadd.f32 %v5215_v26, %v881_v54  ;;  %v1145_v10 = vadd.f32 %v5268_v25, %v1077_v9 }
 0x135   : > { %4315 = vrsqrt.f32 %v948_v27  ;;  %4040 = vmatmul.mubr.msk.f32.gmra.mrb[46].mxu0 %vm1357_vm0, %v1332_v42  ;;  %v820_v12 = vmul.f32 %v5207_v18, %v5501_v34  ;;  %v683_v15 = vmul.f32 %v5523_v47, %v5523_v47  ;;  %v950_v31 = vadd.f32 %v5215_v26, %v882_v61 }
 0x136   : > { %v1207_v40 = vmul.f32 %v4304_v46, %v1143_v62  ;;  %4317 = vrsqrt.f32 %v949_v63  ;;  %4042 = vmatprep.mubr.msk.f32.mxu0 %vm1357_vm0, %v1333_v35  ;;  %v1270_v59 = vadd.f32 %v5355_v8, %v5474_v23  ;;  %v819_v38 = vmul.f32 %v5207_v18, %v5523_v47 }
 0x137   : > { %v4308_v43 = vpop.eup %4307  ;;  %v884_v0 = vadd.f32 %v820_v12, %v752_v55  ;;  %v751_v21 = vmul.f32 %v5184_v29, %v683_v15  ;;  %v1271_v53 = vadd.f32 %v5355_v8, %v1203_v56  ;;  %v1206_v3 = vmul.f32 %v4306_v6, %v5444_v44 }
 0x138   : > { %v1334_v13 = vmax.f32 %v1270_v59, 0.0  ;;  %v1272_v58 = vadd.f32 %v5355_v8, %v1204_v48  ;;  %v1273_v24 = vadd.f32 %v5355_v8, %v1205_v57  ;;  %v4310_v49 = vpop.eup %4309  ;;  %v1079_v23 = vmul.f32 %v5233_v52, %v5456_v51 }
 0x139   : > { %v883_v1 = vadd.f32 %v819_v38, %v751_v21  ;;  %v1335_v36 = vmax.f32 %v1271_v53, 0.0  ;;  %v1144_v29 = vadd.f32 %v5268_v25, %v5478_v22  ;;  %v1078_v18 = vmul.f32 %v5233_v52, %v5401_v11 }
 0x13a   : > { %v1209_v20 = vmul.f32 %v4308_v43, %v1145_v10  ;;  %4319 = vrsqrt.f32 %v950_v31  ;;  %4043 = vmatmul.mubr.msk.f32.gmra.mrb[48].mxu0 %vm1357_vm0, %v1334_v13  ;;  %v952_v44 = vadd.f32 %v5215_v26, %v884_v0  ;;  %v1337_v45 = vmax.f32 %v1273_v24, 0.0  ;;  %v5600_v13 = vld [vmem:[%s6829_s1 + $0x3] ss:$0 sm:$0xff] }
 0x13b   : > { %v951_v32 = vadd.f32 %v5215_v26, %v883_v1  ;;  %4045 = vmatprep.mubr.msk.f32.mxu0 %vm1357_vm0, %v1335_v36  ;;  %v1275_v51 = vadd.f32 %v5355_v8, %v1207_v40  ;;  %v1208_v37 = vmul.f32 %v4310_v49, %v1144_v29  ;;  %v1336_v17 = vmax.f32 %v1272_v58, 0.0 }
 0x13c   : > { %v4312_v41 = vpop.eup %4311  ;;  %v1274_v22 = vadd.f32 %v5355_v8, %v1206_v3  ;;  %v1147_v11 = vadd.f32 %v5268_v25, %v1079_v23  ;;  %v1081_v4 = vmul.f32 %v5233_v52, %v5489_v33  ;;  %v1146_v9 = vadd.f32 %v5268_v25, %v1078_v18 }
 0x13d   : > { %v4314_v60 = vpop.eup %4313  ;;  %4321 = vrsqrt.f32 %v951_v32  ;;  %v1080_v26 = vmul.f32 %v5233_v52, %v5433_v14  ;;  %v1339_v5 = vmax.f32 %v1275_v51, 0.0  ;;  %v1277_v30 = vadd.f32 %v5355_v8, %v1209_v20 }
 0x13e   : > { %4046 = vmatmul.mubr.msk.f32.gmra.mrb[50].mxu0 %vm1357_vm0, %v1336_v17  ;;  %v1211_v28 = vmul.f32 %v4312_v41, %v1147_v11  ;;  %4323 = vrsqrt.f32 %v952_v44  ;;  %v1210_v27 = vmul.f32 %v4314_v60, %v1146_v9  ;;  %v1338_v7 = vmax.f32 %v1274_v22, 0.0 }
 0x13f   : > { %v4316_v16 = vpop.eup %4315  ;;  %4048 = vmatprep.mubr.msk.f32.mxu0 %vm1357_vm0, %v1337_v45  ;;  %v1276_v33 = vadd.f32 %v5355_v8, %v1208_v37  ;;  %v1149_v39 = vadd.f32 %v5268_v25, %v1081_v4  ;;  %v1148_v50 = vadd.f32 %v5268_v25, %v1080_v26  ;;  %v1082_v14 = vmul.f32 %v5233_v52, %v5467_v19 }
 0x140   : > { %v4318_v2 = vpop.eup %4317  ;;  %v1083_v56 = vmul.f32 %v5233_v52, %v5523_v47  ;;  %v1341_v54 = vmax.f32 %v1277_v30, 0.0  ;;  %v1279_v46 = vadd.f32 %v5355_v8, %v1211_v28  ;;  %v1278_v6 = vadd.f32 %v5355_v8, %v1210_v27 }
 0x141   : > { %v1213_v61 = vmul.f32 %v4318_v2, %v1149_v39  ;;  %v1212_v35 = vmul.f32 %v4316_v16, %v1148_v50  ;;  %v1340_v55 = vmax.f32 %v1276_v33, 0.0  ;;  %v1150_v48 = vadd.f32 %v5268_v25, %v1082_v14 }
 0x142   : > { %4049 = vmatmul.mubr.msk.f32.gmra.mrb[52].mxu0 %vm1357_vm0, %v1338_v7  ;;  %v1084_v19 = vmul.f32 %v5233_v52, %v5501_v34  ;;  %v1151_v47 = vadd.f32 %v5268_v25, %v1083_v56  ;;  %v1343_v62 = vmax.f32 %v1279_v46, 0.0  ;;  %v1342_v15 = vmax.f32 %v1278_v6, 0.0 }
 0x143   : > { %4051 = vmatprep.mubr.msk.f32.mxu0 %vm1357_vm0, %v1339_v5  ;;  %v1281_v63 = vadd.f32 %v5355_v8, %v1213_v61  ;;  %v1280_v40 = vadd.f32 %v5355_v8, %v1212_v35 }
 0x144   : > { %v4320_v42 = vpop.eup %4319  ;;  %v1152_v59 = vadd.f32 %v5268_v25, %v1084_v19 }
 0x145   : > { %v1214_v10 = vmul.f32 %v4320_v42, %v1150_v48  ;;  %v1345_v52 = vmax.f32 %v1281_v63, 0.0  ;;  %v1344_v0 = vmax.f32 %v1280_v40, 0.0 }
 0x146   : > { %4052 = vmatmul.mubr.msk.f32.gmra.mrb[54].mxu0 %vm1357_vm0, %v1340_v55 }
 0x147   : > { %v4322_v57 = vpop.eup %4321  ;;  %4054 = vmatprep.mubr.msk.f32.mxu0 %vm1357_vm0, %v1341_v54  ;;  %v1282_v21 = vadd.f32 %v5355_v8, %v1214_v10 }
 0x148   : > { %v1215_v12 = vmul.f32 %v4322_v57, %v1151_v47  ;;  %v4324_v31 = vpop.eup %4323 }
 0x149   : > { %v1216_v43 = vmul.f32 %v4324_v31, %v1152_v59  ;;  %v1346_v53 = vmax.f32 %v1282_v21, 0.0 }
 0x14a   : > { %4055 = vmatmul.mubr.msk.f32.gmra.mrb[56].mxu0 %vm1357_vm0, %v1342_v15  ;;  %v1283_v34 = vadd.f32 %v5355_v8, %v1215_v12 }
 0x14b   : > { %4057 = vmatprep.mubr.msk.f32.mxu0 %vm1357_vm0, %v1343_v62  ;;  %v1284_v3 = vadd.f32 %v5355_v8, %v1216_v43 }
 0x14c   : > { %v1347_v38 = vmax.f32 %v1283_v34, 0.0 }
 0x14d   : > { %v1348_v25 = vmax.f32 %v1284_v3, 0.0 }
 0x14e   : > { %4058 = vmatmul.mubr.msk.f32.gmra.mrb[58].mxu0 %vm1357_vm0, %v1344_v0 }
 0x14f   : > { %4060 = vmatprep.mubr.msk.f32.mxu0 %vm1357_vm0, %v1345_v52 }
 0x152   : > { %4061 = vmatmul.mubr.msk.f32.gmra.mrb[60].mxu0 %vm1357_vm0, %v1346_v53 }
 0x153   : > { %4063 = vmatprep.mubr.msk.f32.mxu0 %vm1357_vm0, %v1347_v38 }
 0x156   : > { %4064 = vmatmul.mubr.msk.f32.gmra.mrb[62].mxu0 %vm1357_vm0, %v1348_v25 }
 0x189   : > { %v3972_v58 = vpop.f32.mrb[0].mxu0 }
 0x18a   : > { %v5603_v24 = vadd.f32 %v3972_v58, %v5600_v13  ;;  %v1616_v49 = vpop.f32.mrb[1].mxu0 }
 0x18b   : > { %v5606_v23 = vadd.f32 %v5600_v13, %v1616_v49 }
 0x18c   : > { %v1938_v8 = vsel %vm1357_vm0, %v5603_v24, 0.0 }
 0x18d   : > { %1939 = vadd.xlane.f32.xlu1 %v1938_v8  ;;  %v1935_v1 = vsel %vm1357_vm0, %v5606_v23, 0.0 }
 0x18e   : > { %v3975_v36 = vpop.f32.mrb[2].mxu0  ;;  %1936 = vadd.xlane.f32.xlu0 %v1935_v1 }
 0x18f   : > { %v5613_v29 = vadd.f32 %v3975_v36, %v5600_v13  ;;  %v1626_v18 = vpop.f32.mrb[3].mxu0 }
 0x190   : > { %v5616_v20 = vadd.f32 %v5600_v13, %v1626_v18 }
 0x191   : > { %v1944_v44 = vsel %vm1357_vm0, %v5613_v29, 0.0 }
 0x192   : > { %1945 = vadd.xlane.f32.xlu0 %v1944_v44  ;;  %v1941_v41 = vsel %vm1357_vm0, %v5616_v20, 0.0 }
 0x194   : > { %v3978_v32 = vpop.f32.mrb[4].mxu0 }
 0x195   : > { %v5621_v45 = vadd.f32 %v3978_v32, %v5600_v13  ;;  %v1636_v51 = vpop.f32.mrb[5].mxu0 }
 0x196   : > { %v5626_v37 = vadd.f32 %v5600_v13, %v1636_v51  ;;  %1942 = vadd.xlane.f32.xlu0 %v1941_v41 }
 0x197   : > { %v1950_v22 = vsel %vm1357_vm0, %v5621_v45, 0.0 }
 0x198   : > { %v1947_v17 = vsel %vm1357_vm0, %v5626_v37, 0.0 }
 0x199   : > { %1948 = vadd.xlane.f32.xlu1 %v1947_v17 }
 0x19a   : > { %v3981_v60 = vpop.f32.mrb[6].mxu0  ;;  %1951 = vadd.xlane.f32.xlu0 %v1950_v22 }
 0x19b   : > { %v5633_v11 = vadd.f32 %v3981_v60, %v5600_v13  ;;  %v1646_v4 = vpop.f32.mrb[7].mxu0 }
 0x19c   : > { %v5636_v9 = vadd.f32 %v5600_v13, %v1646_v4 }
 0x19d   : > { %v1956_v26 = vsel %vm1357_vm0, %v5633_v11, 0.0 }
 0x19e   : > { %v1953_v16 = vsel %vm1357_vm0, %v5636_v9, 0.0  ;;  %1957 = vadd.xlane.f32.xlu0 %v1956_v26 }
 0x19f   : > { %v3984_v28 = vpop.f32.mrb[8].mxu0  ;;  %1954 = vadd.xlane.f32.xlu1 %v1953_v16 }
 0x1a0   : > { %v5643_v5 = vadd.f32 %v3984_v28, %v5600_v13  ;;  %v1656_v30 = vpop.f32.mrb[9].mxu0 }
 0x1a1   : > { %v5646_v2 = vadd.f32 %v5600_v13, %v1656_v30 }
 0x1a2   : > { %v1962_v27 = vsel %vm1357_vm0, %v5643_v5, 0.0 }
 0x1a3   : > { %v1959_v7 = vsel %vm1357_vm0, %v5646_v2, 0.0  ;;  %1963 = vadd.xlane.f32.xlu0 %v1962_v27 }
 0x1a4   : > { %1960 = vadd.xlane.f32.xlu1 %v1959_v7 }
 0x1a5   : > { %v3987_v33 = vpop.f32.mrb[10].mxu0 }
 0x1a6   : > { %v5653_v39 = vadd.f32 %v3987_v33, %v5600_v13  ;;  %v1666_v50 = vpop.f32.mrb[11].mxu0 }
 0x1a7   : > { %v5656_v14 = vadd.f32 %v5600_v13, %v1666_v50 }
 0x1a8   : > { %v1968_v56 = vsel %vm1357_vm0, %v5653_v39, 0.0 }
 0x1a9   : > { %v1965_v61 = vsel %vm1357_vm0, %v5656_v14, 0.0  ;;  %1969 = vadd.xlane.f32.xlu0 %v1968_v56 }
 0x1aa   : > { %v3990_v54 = vpop.f32.mrb[12].mxu0  ;;  %1966 = vadd.xlane.f32.xlu1 %v1965_v61 }
 0x1ab   : > { %v5663_v46 = vadd.f32 %v3990_v54, %v5600_v13  ;;  %v1676_v42 = vpop.f32.mrb[13].mxu0 }
 0x1ac   : > { %v5666_v35 = vadd.f32 %v5600_v13, %v1676_v42 }
 0x1ad   : > { %v1974_v55 = vsel %vm1357_vm0, %v5663_v46, 0.0 }
 0x1ae   : > { %v1971_v6 = vsel %vm1357_vm0, %v5666_v35, 0.0  ;;  %1975 = vadd.xlane.f32.xlu0 %v1974_v55 }
 0x1af   : > { %1972 = vadd.xlane.f32.xlu1 %v1971_v6 }
 0x1b0   : > { %v3993_v48 = vpop.f32.mrb[14].mxu0 }
 0x1b1   : > { %v5673_v19 = vadd.f32 %v3993_v48, %v5600_v13  ;;  %v1686_v47 = vpop.f32.mrb[15].mxu0 }
 0x1b2   : > { %v5676_v57 = vadd.f32 %v5600_v13, %v1686_v47 }
 0x1b3   : > { %v1980_v62 = vsel %vm1357_vm0, %v5673_v19, 0.0 }
 0x1b4   : > { %v1977_v63 = vsel %vm1357_vm0, %v5676_v57, 0.0  ;;  %1981 = vadd.xlane.f32.xlu0 %v1980_v62 }
 0x1b5   : > { %v3996_v10 = vpop.f32.mrb[16].mxu0  ;;  %1978 = vadd.xlane.f32.xlu1 %v1977_v63 }
 0x1b6   : > { %v5683_v12 = vadd.f32 %v3996_v10, %v5600_v13  ;;  %v1696_v15 = vpop.f32.mrb[17].mxu0 }
 0x1b7   : > { %v5686_v40 = vadd.f32 %v5600_v13, %v1696_v15 }
 0x1b8   : > { %v1986_v31 = vsel %vm1357_vm0, %v5683_v12, 0.0 }
 0x1b9   : > { %v1983_v59 = vsel %vm1357_vm0, %v5686_v40, 0.0  ;;  %1987 = vadd.xlane.f32.xlu0 %v1986_v31 }
 0x1ba   : > { %1984 = vadd.xlane.f32.xlu1 %v1983_v59 }
 0x1bb   : > { %v3999_v52 = vpop.f32.mrb[18].mxu0 }
 0x1bc   : > { %v5693_v34 = vadd.f32 %v3999_v52, %v5600_v13  ;;  %v1706_v43 = vpop.f32.mrb[19].mxu0 }
 0x1bd   : > { %v5696_v0 = vadd.f32 %v5600_v13, %v1706_v43 }
 0x1be   : > { %v1992_v21 = vsel %vm1357_vm0, %v5693_v34, 0.0 }
 0x1bf   : > { %v1989_v38 = vsel %vm1357_vm0, %v5696_v0, 0.0  ;;  %1993 = vadd.xlane.f32.xlu0 %v1992_v21 }
 0x1c0   : > { %v4002_v53 = vpop.f32.mrb[20].mxu0  ;;  %1990 = vadd.xlane.f32.xlu1 %v1989_v38 }
 0x1c1   : > { %v5703_v3 = vadd.f32 %v4002_v53, %v5600_v13  ;;  %v1716_v25 = vpop.f32.mrb[21].mxu0 }
 0x1c2   : > { %v5706_v58 = vadd.f32 %v5600_v13, %v1716_v25 }
 0x1c3   : > { %v1998_v49 = vsel %vm1357_vm0, %v5703_v3, 0.0 }
 0x1c4   : > { %v1995_v8 = vsel %vm1357_vm0, %v5706_v58, 0.0  ;;  %1999 = vadd.xlane.f32.xlu0 %v1998_v49 }
 0x1c5   : > { %1996 = vadd.xlane.f32.xlu1 %v1995_v8 }
 0x1c6   : > { %v4005_v1 = vpop.f32.mrb[22].mxu0 }
 0x1c7   : > { %v5713_v36 = vadd.f32 %v4005_v1, %v5600_v13  ;;  %v1726_v18 = vpop.f32.mrb[23].mxu0 }
 0x1c8   : > { %v5716_v44 = vadd.f32 %v5600_v13, %v1726_v18 }
 0x1c9   : > { %v2004_v32 = vsel %vm1357_vm0, %v5713_v36, 0.0 }
 0x1ca   : > { %v2001_v51 = vsel %vm1357_vm0, %v5716_v44, 0.0  ;;  %2005 = vadd.xlane.f32.xlu0 %v2004_v32 }
 0x1cb   : > { %2002 = vadd.xlane.f32.xlu1 %v2001_v51 }
 0x1cc   : > { %v4008_v41 = vpop.f32.mrb[24].mxu0 }
 0x1cd   : > { %v5723_v17 = vadd.f32 %v4008_v41, %v5600_v13  ;;  %v1736_v22 = vpop.f32.mrb[25].mxu0 }
 0x1ce   : > { %v5726_v60 = vadd.f32 %v5600_v13, %v1736_v22 }
 0x1cf   : > { %v2010_v4 = vsel %vm1357_vm0, %v5723_v17, 0.0 }
 0x1d0   : > { %v4011_v26 = vpop.f32.mrb[26].mxu0  ;;  %v2007_v16 = vsel %vm1357_vm0, %v5726_v60, 0.0  ;;  %2011 = vadd.xlane.f32.xlu0 %v2010_v4 }
 0x1d1   : > { %v5733_v28 = vadd.f32 %v4011_v26, %v5600_v13  ;;  %2008 = vadd.xlane.f32.xlu1 %v2007_v16  ;;  %v1746_v30 = vpop.f32.mrb[27].mxu0 }
 0x1d2   : > { %v5736_v27 = vadd.f32 %v5600_v13, %v1746_v30 }
 0x1d3   : > { %v2016_v7 = vsel %vm1357_vm0, %v5733_v28, 0.0 }
 0x1d4   : > { %v2013_v33 = vsel %vm1357_vm0, %v5736_v27, 0.0  ;;  %2017 = vadd.xlane.f32.xlu0 %v2016_v7 }
 0x1d5   : > { %2014 = vadd.xlane.f32.xlu1 %v2013_v33 }
 0x1d7   : > { %v4014_v50 = vpop.f32.mrb[28].mxu0 }
 0x1d8   : > { %v5743_v56 = vadd.f32 %v4014_v50, %v5600_v13  ;;  %v1756_v61 = vpop.f32.mrb[29].mxu0 }
 0x1d9   : > { %v5746_v54 = vadd.f32 %v5600_v13, %v1756_v61 }
 0x1da   : > { %v2022_v42 = vsel %vm1357_vm0, %v5743_v56, 0.0 }
 0x1db   : > { %v4017_v55 = vpop.f32.mrb[30].mxu0  ;;  %v2019_v6 = vsel %vm1357_vm0, %v5746_v54, 0.0  ;;  %2023 = vadd.xlane.f32.xlu0 %v2022_v42 }
 0x1dc   : > { %v5753_v48 = vadd.f32 %v4017_v55, %v5600_v13  ;;  %2020 = vadd.xlane.f32.xlu1 %v2019_v6  ;;  %v1766_v47 = vpop.f32.mrb[31].mxu0 }
 0x1dd   : > { %v5756_v62 = vadd.f32 %v5600_v13, %v1766_v47 }
 0x1de   : > { %v2028_v63 = vsel %vm1357_vm0, %v5753_v48, 0.0 }
 0x1df   : > { %v2025_v10 = vsel %vm1357_vm0, %v5756_v62, 0.0  ;;  %2029 = vadd.xlane.f32.xlu0 %v2028_v63 }
 0x1e0   : > { %2026 = vadd.xlane.f32.xlu1 %v2025_v10 }
 0x1e1   : > { %v4020_v15 = vpop.f32.mrb[32].mxu0 }
 0x1e2   : > { %v5763_v31 = vadd.f32 %v4020_v15, %v5600_v13  ;;  %v1776_v59 = vpop.f32.mrb[33].mxu0 }
 0x1e3   : > { %v5766_v52 = vadd.f32 %v5600_v13, %v1776_v59 }
 0x1e4   : > { %v2034_v43 = vsel %vm1357_vm0, %v5763_v31, 0.0 }
 0x1e5   : > { %v2031_v21 = vsel %vm1357_vm0, %v5766_v52, 0.0  ;;  %2035 = vadd.xlane.f32.xlu0 %v2034_v43 }
 0x1e6   : > { %v4023_v38 = vpop.f32.mrb[34].mxu0  ;;  %2032 = vadd.xlane.f32.xlu1 %v2031_v21 }
 0x1e7   : > { %v5773_v53 = vadd.f32 %v4023_v38, %v5600_v13  ;;  %v1786_v25 = vpop.f32.mrb[35].mxu0 }
 0x1e8   : > { %v5776_v49 = vadd.f32 %v5600_v13, %v1786_v25 }
 0x1e9   : > { %v2040_v8 = vsel %vm1357_vm0, %v5773_v53, 0.0 }
 0x1ea   : > { %v2037_v1 = vsel %vm1357_vm0, %v5776_v49, 0.0  ;;  %2041 = vadd.xlane.f32.xlu0 %v2040_v8 }
 0x1eb   : > { %2038 = vadd.xlane.f32.xlu1 %v2037_v1 }
 0x1ec   : > { %v4026_v18 = vpop.f32.mrb[36].mxu0 }
 0x1ed   : > { %v5783_v32 = vadd.f32 %v4026_v18, %v5600_v13  ;;  %v1796_v51 = vpop.f32.mrb[37].mxu0 }
 0x1ee   : > { %v5786_v41 = vadd.f32 %v5600_v13, %v1796_v51 }
 0x1ef   : > { %v2046_v22 = vsel %vm1357_vm0, %v5783_v32, 0.0 }
 0x1f0   : > { %v2043_v4 = vsel %vm1357_vm0, %v5786_v41, 0.0  ;;  %2047 = vadd.xlane.f32.xlu0 %v2046_v22 }
 0x1f1   : > { %2044 = vadd.xlane.f32.xlu1 %v2043_v4 }
 0x1f2   : > { %v4029_v26 = vpop.f32.mrb[38].mxu0 }
 0x1f3   : > { %v5793_v16 = vadd.f32 %v4029_v26, %v5600_v13  ;;  %v1806_v30 = vpop.f32.mrb[39].mxu0 }
 0x1f4   : > { %v5796_v7 = vadd.f32 %v5600_v13, %v1806_v30 }
 0x1f5   : > { %v2052_v33 = vsel %vm1357_vm0, %v5793_v16, 0.0 }
 0x1f6   : > { %v2049_v50 = vsel %vm1357_vm0, %v5796_v7, 0.0  ;;  %2053 = vadd.xlane.f32.xlu0 %v2052_v33 }
 0x1f7   : > { %v4032_v61 = vpop.f32.mrb[40].mxu0  ;;  %2050 = vadd.xlane.f32.xlu1 %v2049_v50 }
 0x1f8   : > { %v5803_v42 = vadd.f32 %v4032_v61, %v5600_v13  ;;  %v1816_v55 = vpop.f32.mrb[41].mxu0 }
 0x1f9   : > { %v5806_v6 = vadd.f32 %v5600_v13, %v1816_v55 }
 0x1fa   : > { %v2058_v47 = vsel %vm1357_vm0, %v5803_v42, 0.0 }
 0x1fb   : > { %6865 = vst [vmem:[#allocation2_spill] sm:$0xff] %v5806_v6  ;;  %2059 = vadd.xlane.f32.xlu0 %v2058_v47  ;;  %v2055_v59 = vsel %vm1357_vm0, %v5806_v6, 0.0 }
 0x1fd   : > { %v4035_v63 = vpop.f32.mrb[42].mxu0 }
 0x1fe   : > { %v5811_v10 = vadd.f32 %v4035_v63, %v5600_v13  ;;  %v1826_v15 = vpop.f32.mrb[43].mxu0 }
 0x1ff   : > { %2056 = vadd.xlane.f32.xlu0 %v2055_v59  ;;  %v5816_v43 = vadd.f32 %v5600_v13, %v1826_v15 }
 0x200   : > { %v2064_v38 = vsel %vm1357_vm0, %v5811_v10, 0.0 }
 0x201   : > { %6866 = vst [vmem:[#allocation3_spill] sm:$0xff] %v5816_v43  ;;  %v2061_v1 = vsel %vm1357_vm0, %v5816_v43, 0.0 }
 0x202   : > { %v4038_v21 = vpop.f32.mrb[44].mxu0 }
 0x203   : > { %v1836_v25 = vpop.f32.mrb[45].mxu0  ;;  %2065 = vadd.xlane.f32.xlu0 %v2064_v38  ;;  %v5821_v8 = vadd.f32 %v4038_v21, %v5600_v13 }
 0x204   : > { %v5826_v22 = vadd.f32 %v5600_v13, %v1836_v25 }
 0x205   : > { %6867 = vst [vmem:[#allocation4_spill] sm:$0xff] %v5821_v8  ;;  %v2070_v4 = vsel %vm1357_vm0, %v5821_v8, 0.0 }
 0x206   : > { %6868 = vst [vmem:[#allocation5_spill] sm:$0xff] %v5826_v22  ;;  %v2067_v50 = vsel %vm1357_vm0, %v5826_v22, 0.0 }
 0x207   : > { %2062 = vadd.xlane.f32.xlu0 %v2061_v1 }
 0x208   : > { %v4041_v18 = vpop.f32.mrb[46].mxu0 }
 0x209   : > { %v1846_v51 = vpop.f32.mrb[47].mxu0  ;;  %v5831_v30 = vadd.f32 %v4041_v18, %v5600_v13 }
 0x20a   : > { %v5836_v55 = vadd.f32 %v5600_v13, %v1846_v51 }
 0x20b   : > { %2071 = vadd.xlane.f32.xlu0 %v2070_v4  ;;  %6869 = vst [vmem:[#allocation6_spill] sm:$0xff] %v5831_v30  ;;  %v2076_v63 = vsel %vm1357_vm0, %v5831_v30, 0.0 }
 0x20c   : > { %6870 = vst [vmem:[#allocation7_spill] sm:$0xff] %v5836_v55  ;;  %v2073_v38 = vsel %vm1357_vm0, %v5836_v55, 0.0 }
 0x20d   : > { %v4044_v26 = vpop.f32.mrb[48].mxu0 }
 0x20e   : > { %v1856_v33 = vpop.f32.mrb[49].mxu0  ;;  %v5841_v59 = vadd.f32 %v4044_v26, %v5600_v13 }
 0x20f   : > { %2068 = vadd.xlane.f32.xlu0 %v2067_v50  ;;  %v5846_v1 = vadd.f32 %v5600_v13, %v1856_v33 }
 0x210   : > { %6871 = vst [vmem:[#allocation8_spill] sm:$0xff] %v5841_v59  ;;  %v2082_v51 = vsel %vm1357_vm0, %v5841_v59, 0.0 }
 0x211   : > { %v4047_v61 = vpop.f32.mrb[50].mxu0  ;;  %6872 = vst [vmem:[#allocation9_spill] sm:$0xff] %v5846_v1  ;;  %v2079_v55 = vsel %vm1357_vm0, %v5846_v1, 0.0 }
 0x212   : > { %v1866_v47 = vpop.f32.mrb[51].mxu0 }
 0x213   : > { %2077 = vadd.xlane.f32.xlu0 %v2076_v63 }
 0x215   : > { %v4050_v15 = vpop.f32.mrb[52].mxu0 }
 0x216   : > { %v1876_v21 = vpop.f32.mrb[53].mxu0 }
 0x217   : > { %2074 = vadd.xlane.f32.xlu0 %v2073_v38  ;;  %v5858_v38 = vadd.f32 %v4047_v61, %v5600_v13  ;;  %v5905_v6 = vadd.f32 %v5600_v13, %v1876_v21 }
 0x219   : > { %v4053_v25 = vpop.f32.mrb[54].mxu0  ;;  %6874 = vst [vmem:[#allocation11_spill] sm:$0xff] %v5858_v38 }
 0x21a   : > { %v5848_v18 = vpop.f32.mrb[55].mxu0  ;;  %v1940_v4 = vpop.xlane.xlu1 %1939 }
 0x21b   : > { %2083 = vadd.xlane.f32.xlu0 %v2082_v51  ;;  %v2129_v50 = vmul.f32 0.03125, %v1940_v4  ;;  %v1937_v63 = vpop.xlane.xlu0 %1936 }
 0x21c   : > { %v2128_v26 = vmul.f32 0.03125, %v1937_v63 }
 0x21d   : > { %v5852_v30 = vpop.f32.mrb[56].mxu0  ;;  %v5855_v22 = vsub.f32 %v5603_v24, %v2129_v50  ;;  %v5875_v50 = vadd.f32 %v5600_v13, %v1866_v47 }
 0x21e   : > { %v5860_v33 = vpop.f32.mrb[57].mxu0  ;;  %v5865_v59 = vsub.f32 %v5606_v23, %v2128_v26  ;;  %v2088_v23 = vsel %vm1357_vm0, %v5858_v38, 0.0 }
 0x21f   : > { %6873 = vst [vmem:[#allocation10_spill] sm:$0xff] %v5855_v22  ;;  %2080 = vadd.xlane.f32.xlu0 %v2079_v55  ;;  %v1946_v51 = vpop.xlane.xlu0 %1945  ;;  %v2257_v4 = vmul.f32 %v5855_v22, %v5855_v22  ;;  %6876 = vst [vmem:[#allocation13_spill] sm:$0xff] %v5875_v50 }
 0x220   : > { %6875 = vst [vmem:[#allocation12_spill] sm:$0xff] %v5865_v59  ;;  %v2131_v63 = vmul.f32 0.03125, %v1946_v51  ;;  %v2256_v61 = vmul.f32 %v5865_v59, %v5865_v59  ;;  %v5890_v59 = vadd.f32 %v4050_v15, %v5600_v13 }
 0x221   : > { %v5869_v43 = vpop.f32.mrb[58].mxu0  ;;  %v2323_v24 = vsel %vm1357_vm0, %v2257_v4, 0.0 }
 0x222   : > { %v5877_v1 = vpop.f32.mrb[59].mxu0  ;;  %v5882_v55 = vsub.f32 %v5613_v29, %v2131_v63  ;;  %2324 = vadd.xlane.f32.xlu1 %v2323_v24  ;;  %v2320_v4 = vsel %vm1357_vm0, %v2256_v61, 0.0  ;;  %v2085_v29 = vsel %vm1357_vm0, %v5875_v50, 0.0 }
 0x223   : > { %2089 = vadd.xlane.f32.xlu0 %v2088_v23  ;;  %v1943_v26 = vpop.xlane.xlu0 %1942 }
 0x224   : > { %6877 = vst [vmem:[#allocation14_spill] sm:$0xff] %v5882_v55  ;;  %v2130_v51 = vmul.f32 0.03125, %v1943_v26  ;;  %v2259_v47 = vmul.f32 %v5882_v55, %v5882_v55 }
 0x225   : > { %v5884_v22 = vpop.f32.mrb[60].mxu0 }
 0x226   : > { %v5892_v8 = vpop.f32.mrb[61].mxu0  ;;  %v1949_v63 = vpop.xlane.xlu1 %1948  ;;  %v5897_v24 = vsub.f32 %v5616_v20, %v2130_v51  ;;  %2321 = vadd.xlane.f32.xlu1 %v2320_v4  ;;  %v2329_v55 = vsel %vm1357_vm0, %v2259_v47, 0.0  ;;  %v2094_v20 = vsel %vm1357_vm0, %v5890_v59, 0.0 }
 0x227   : > { %2086 = vadd.xlane.f32.xlu0 %v2085_v29  ;;  %v1952_v23 = vpop.xlane.xlu0 %1951  ;;  %v2132_v38 = vmul.f32 0.03125, %v1949_v63 }
 0x228   : > { %6878 = vst [vmem:[#allocation15_spill] sm:$0xff] %v5897_v24  ;;  %v2133_v26 = vmul.f32 0.03125, %v1952_v23  ;;  %v2258_v15 = vmul.f32 %v5897_v24, %v5897_v24  ;;  %v5921_v24 = vadd.f32 %v4053_v25, %v5600_v13 }
 0x229   : > { %v5899_v61 = vpop.f32.mrb[62].mxu0  ;;  %v5915_v29 = vsub.f32 %v5626_v37, %v2132_v38 }
 0x22a   : > { %v5907_v50 = vpop.f32.mrb[63].mxu0  ;;  %v5912_v51 = vsub.f32 %v5621_v45, %v2133_v26  ;;  %2330 = vadd.xlane.f32.xlu1 %v2329_v55  ;;  %v2326_v23 = vsel %vm1357_vm0, %v2258_v15, 0.0  ;;  %v2091_v45 = vsel %vm1357_vm0, %v5905_v6, 0.0  ;;  %v2100_v25 = vsel %vm1357_vm0, %v5921_v24, 0.0 }
 0x22b   : > { %2095 = vadd.xlane.f32.xlu0 %v2094_v20  ;;  %v1958_v4 = vpop.xlane.xlu0 %1957  ;;  %v2260_v15 = vmul.f32 %v5915_v29, %v5915_v29  ;;  %v5933_v20 = vadd.f32 %v5600_v13, %v5848_v18 }
 0x22c   : > { %v1955_v47 = vpop.xlane.xlu1 %1954  ;;  %v2135_v63 = vmul.f32 0.03125, %v1958_v4  ;;  %v2261_v21 = vmul.f32 %v5912_v51, %v5912_v51 }
 0x22d   : > { %v2134_v26 = vmul.f32 0.03125, %v1955_v47  ;;  %v2097_v18 = vsel %vm1357_vm0, %v5933_v20, 0.0 }
 0x22e   : > { %2327 = vadd.xlane.f32.xlu1 %v2326_v23  ;;  %v5926_v37 = vsub.f32 %v5633_v11, %v2135_v63  ;;  %v2335_v38 = vsel %vm1357_vm0, %v2261_v21, 0.0  ;;  %v2332_v63 = vsel %vm1357_vm0, %v2260_v15, 0.0  ;;  %v5945_v21 = vadd.f32 %v5852_v30, %v5600_v13 }
 0x22f   : > { %2092 = vadd.xlane.f32.xlu0 %v2091_v45  ;;  %v5938_v47 = vsub.f32 %v5636_v9, %v2134_v26  ;;  %v5957_v30 = vadd.f32 %v5600_v13, %v5860_v33 }
 0x230   : > { %v1964_v55 = vpop.xlane.xlu0 %1963  ;;  %v2263_v23 = vmul.f32 %v5926_v37, %v5926_v37  ;;  %v2106_v15 = vsel %vm1357_vm0, %v5945_v21, 0.0 }
 0x231   : > { %v1961_v4 = vpop.xlane.xlu1 %1960  ;;  %v2137_v11 = vmul.f32 0.03125, %v1964_v55  ;;  %v2262_v26 = vmul.f32 %v5938_v47, %v5938_v47  ;;  %v2103_v33 = vsel %vm1357_vm0, %v5957_v30, 0.0 }
 0x232   : > { %2336 = vadd.xlane.f32.xlu1 %v2335_v38  ;;  %v2136_v38 = vmul.f32 0.03125, %v1961_v4  ;;  %v2341_v55 = vsel %vm1357_vm0, %v2263_v23, 0.0 }
 0x233   : > { %2101 = vadd.xlane.f32.xlu0 %v2100_v25  ;;  %v5950_v9 = vsub.f32 %v5643_v5, %v2137_v11  ;;  %v2338_v11 = vsel %vm1357_vm0, %v2262_v26, 0.0 }
 0x234   : > { %v5962_v4 = vsub.f32 %v5646_v2, %v2136_v38 }
 0x235   : > { %6879 = vst [vmem:[#allocation16_spill] sm:$0xff] %v5950_v9  ;;  %v2265_v23 = vmul.f32 %v5950_v9, %v5950_v9 }
 0x236   : > { %v1970_v45 = vpop.xlane.xlu0 %1969  ;;  %2333 = vadd.xlane.f32.xlu1 %v2332_v63  ;;  %6880 = vst [vmem:[#allocation17_spill] sm:$0xff] %v5962_v4  ;;  %v2264_v26 = vmul.f32 %v5962_v4, %v5962_v4 }
 0x237   : > { %2098 = vadd.xlane.f32.xlu0 %v2097_v18  ;;  %v1967_v25 = vpop.xlane.xlu1 %1966  ;;  %v2139_v5 = vmul.f32 0.03125, %v1970_v45  ;;  %v5969_v18 = vadd.f32 %v5869_v43, %v5600_v13  ;;  %v2347_v38 = vsel %vm1357_vm0, %v2265_v23, 0.0  ;;  %v5981_v43 = vadd.f32 %v5600_v13, %v5877_v1 }
 0x239   : > { %v5974_v2 = vsub.f32 %v5653_v39, %v2139_v5  ;;  %v2112_v9 = vsel %vm1357_vm0, %v5969_v18, 0.0  ;;  %v2109_v1 = vsel %vm1357_vm0, %v5981_v43, 0.0 }
 0x23a   : > { %2342 = vadd.xlane.f32.xlu1 %v2341_v55 }
 0x23b   : > { %2107 = vadd.xlane.f32.xlu0 %v2106_v15  ;;  %v1976_v63 = vpop.xlane.xlu0 %1975  ;;  %v2138_v15 = vmul.f32 0.03125, %v1967_v25  ;;  %v2267_v23 = vmul.f32 %v5974_v2, %v5974_v2 }
 0x23c   : > { %v1973_v55 = vpop.xlane.xlu1 %1972  ;;  %v2141_v5 = vmul.f32 0.03125, %v1976_v63 }
 0x23d   : > { %v5986_v25 = vsub.f32 %v5656_v14, %v2138_v15  ;;  %v2353_v63 = vsel %vm1357_vm0, %v2267_v23, 0.0 }
 0x23e   : > { %2339 = vadd.xlane.f32.xlu1 %v2338_v11  ;;  %v2344_v11 = vsel %vm1357_vm0, %v2264_v26, 0.0  ;;  %v5998_v14 = vsub.f32 %v5663_v46, %v2141_v5 }
 0x23f   : > { %2104 = vadd.xlane.f32.xlu0 %v2103_v33  ;;  %v5993_v33 = vadd.f32 %v5884_v22, %v5600_v13  ;;  %v2266_v15 = vmul.f32 %v5986_v25, %v5986_v25 }
 0x240   : > { %6881 = vst [vmem:[#allocation18_spill] sm:$0xff] %v5998_v14  ;;  %v2269_v23 = vmul.f32 %v5998_v14, %v5998_v14 }
 0x241   : > { %v1982_v45 = vpop.xlane.xlu0 %1981  ;;  %v2118_v22 = vsel %vm1357_vm0, %v5993_v33, 0.0  ;;  %v2350_v5 = vsel %vm1357_vm0, %v2266_v15, 0.0 }
 0x242   : > { %2348 = vadd.xlane.f32.xlu1 %v2347_v38  ;;  %v1979_v39 = vpop.xlane.xlu1 %1978  ;;  %v6005_v38 = vadd.f32 %v5600_v13, %v5892_v8  ;;  %v2143_v46 = vmul.f32 0.03125, %v1982_v45  ;;  %v6017_v8 = vadd.f32 %v5899_v61, %v5600_v13  ;;  %v6029_v61 = vadd.f32 %v5600_v13, %v5907_v50 }
 0x243   : > { %2113 = vadd.xlane.f32.xlu0 %v2112_v9  ;;  %v2140_v9 = vmul.f32 0.03125, %v1973_v55 }
 0x244   : > { %v2124_v14 = vsel %vm1357_vm0, %v6017_v8, 0.0 }
 0x245   : > { %v6010_v55 = vsub.f32 %v5666_v35, %v2140_v9  ;;  %v2359_v9 = vsel %vm1357_vm0, %v2269_v23, 0.0  ;;  %v2121_v23 = vsel %vm1357_vm0, %v6029_v61, 0.0 }
 0x246   : > { %v1988_v4 = vpop.xlane.xlu0 %1987  ;;  %2345 = vadd.xlane.f32.xlu1 %v2344_v11 }
 0x247   : > { %2110 = vadd.xlane.f32.xlu0 %v2109_v1  ;;  %v1985_v26 = vpop.xlane.xlu1 %1984  ;;  %v2115_v1 = vsel %vm1357_vm0, %v6005_v38, 0.0  ;;  %v2268_v15 = vmul.f32 %v6010_v55, %v6010_v55 }
 0x24a   : > { %2354 = vadd.xlane.f32.xlu1 %v2353_v63  ;;  %v2142_v63 = vmul.f32 0.03125, %v1979_v39 }
 0x24b   : > { %2119 = vadd.xlane.f32.xlu0 %v2118_v22  ;;  %v6022_v22 = vsub.f32 %v5673_v19, %v2143_v46  ;;  %v2145_v19 = vmul.f32 0.03125, %v1988_v4  ;;  %v2356_v46 = vsel %vm1357_vm0, %v2268_v15, 0.0 }
 0x24c   : > { %v1994_v11 = vpop.xlane.xlu0 %1993  ;;  %v6034_v39 = vsub.f32 %v5676_v57, %v2142_v63 }
 0x24d   : > { %6882 = vst [vmem:[#allocation19_spill] sm:$0xff] %v6022_v22  ;;  %v1991_v35 = vpop.xlane.xlu1 %1990  ;;  %v2147_v63 = vmul.f32 0.03125, %v1994_v11 }
 0x24e   : > { %2351 = vadd.xlane.f32.xlu1 %v2350_v5  ;;  %v2271_v5 = vmul.f32 %v6022_v22, %v6022_v22  ;;  %v2270_v4 = vmul.f32 %v6034_v39, %v6034_v39 }
 0x24f   : > { %2116 = vadd.xlane.f32.xlu0 %v2115_v1  ;;  %v2144_v1 = vmul.f32 0.03125, %v1985_v26 }
 0x250   : > { %v2365_v57 = vsel %vm1357_vm0, %v2271_v5, 0.0 }
 0x251   : > { %v2000_v45 = vpop.xlane.xlu0 %1999 }
 0x252   : > { %2360 = vadd.xlane.f32.xlu1 %v2359_v9  ;;  %v1997_v13 = vpop.xlane.xlu1 %1996  ;;  %v6042_v9 = vsub.f32 %v5683_v12, %v2145_v19  ;;  %v2968_v12 = vld [vmem:[%s6831_s3] sm:$0xff]  ;;  %v2969_v19 = vld [vmem:[%s6831_s3 + $0x8] sm:$0xff] }
 0x253   : > { %2125 = vadd.xlane.f32.xlu0 %v2124_v14  ;;  %v6048_v14 = vsub.f32 %v5686_v40, %v2144_v1  ;;  %v2146_v40 = vmul.f32 0.03125, %v1991_v35  ;;  %v4178_v5 = vpack.c.bf16 %v2969_v19, %v2968_v12  ;;  %v6063_v1 = vsub.f32 %v5693_v34, %v2147_v63  ;;  %v2971_v34 = vld [vmem:[%s6831_s3 + $0x18] sm:$0xff] }
 0x254   : > { %6883 = vst [vmem:[#allocation20_spill] sm:$0xff] %v6042_v9  ;;  %v2273_v26 = vmul.f32 %v6042_v9, %v6042_v9  ;;  %v2149_v19 = vmul.f32 0.03125, %v2000_v45 }
 0x255   : > { %4179 = vmatprep.subr.bf16.mxu1 %v4178_v5  ;;  %v6077_v63 = vsub.f32 %v5696_v0, %v2146_v40  ;;  %v2148_v0 = vmul.f32 0.03125, %v1997_v13 }
 0x256   : > { %2357 = vadd.xlane.f32.xlu1 %v2356_v46  ;;  %v2362_v46 = vsel %vm1357_vm0, %v2270_v4, 0.0  ;;  %v2272_v4 = vmul.f32 %v6048_v14, %v6048_v14  ;;  %4181 = vmatpush3.bf16.msra.mxu1 %v4178_v5  ;;  %v6092_v45 = vsub.f32 %v5703_v3, %v2149_v19 }
 0x257   : > { %2122 = vadd.xlane.f32.xlu0 %v2121_v23  ;;  %v2006_v50 = vpop.xlane.xlu0 %2005  ;;  %v6099_v13 = vsub.f32 %v5706_v58, %v2148_v0 }
 0x258   : > { %v2003_v15 = vpop.xlane.xlu1 %2002  ;;  %v2368_v5 = vsel %vm1357_vm0, %v2272_v4, 0.0  ;;  %v2277_v19 = vmul.f32 %v6092_v45, %v6092_v45 }
 0x259   : > { %v2150_v58 = vmul.f32 0.03125, %v2003_v15 }
 0x25a   : > { %2366 = vadd.xlane.f32.xlu1 %v2365_v57 }
 0x25d   : > { %v2012_v22 = vpop.xlane.xlu0 %2011 }
 0x25e   : > { %v2153_v23 = vmul.f32 0.03125, %v2012_v22  ;;  %2363 = vadd.xlane.f32.xlu1 %v2362_v46  ;;  %v2371_v22 = vsel %vm1357_vm0, %v2273_v26, 0.0  ;;  %v2009_v35 = vpop.xlane.xlu1 %2008 }
 0x25f   : > { %v2152_v15 = vmul.f32 0.03125, %v2009_v35 }
 0x260   : > { %v6060_v11 = vsub.f32 %v5723_v17, %v2153_v23  ;;  %v2970_v17 = vld [vmem:[%s6831_s3 + $0x10] sm:$0xff] }
 0x261   : > { %v2018_v57 = vpop.xlane.xlu0 %2017  ;;  %v4182_v12 = vpack.c.bf16 %v2971_v34, %v2970_v17  ;;  %v6133_v35 = vsub.f32 %v5726_v60, %v2152_v15 }
 0x262   : > { %v2155_v46 = vmul.f32 0.03125, %v2018_v57  ;;  %v2281_v9 = vmul.f32 %v6060_v11, %v6060_v11  ;;  %2372 = vadd.xlane.f32.xlu1 %v2371_v22  ;;  %v2275_v57 = vmul.f32 %v6063_v1, %v6063_v1  ;;  %v2015_v4 = vpop.xlane.xlu1 %2014 }
 0x263   : > { %4183 = vmatprep.subr.bf16.mxu1 %v4182_v12  ;;  %v2280_v15 = vmul.f32 %v6133_v35, %v6133_v35 }
 0x264   : > { %v6080_v26 = vsub.f32 %v5733_v28, %v2155_v46  ;;  %v2395_v23 = vsel %vm1357_vm0, %v2281_v9, 0.0  ;;  %4185 = vmatpush3.bf16.msra.mxu1 %v4182_v12  ;;  %v2274_v9 = vmul.f32 %v6077_v63, %v6077_v63  ;;  %v2377_v17 = vsel %vm1357_vm0, %v2275_v57, 0.0 }
 0x265   : > { %2396 = vadd.xlane.f32.xlu0 %v2395_v23 }
 0x266   : > { %v2283_v22 = vmul.f32 %v6080_v26, %v6080_v26  ;;  %2369 = vadd.xlane.f32.xlu1 %v2368_v5  ;;  %v2374_v12 = vsel %vm1357_vm0, %v2274_v9, 0.0  ;;  %v2151_v5 = vmul.f32 0.03125, %v2006_v50  ;;  %v2276_v9 = vmul.f32 %v6099_v13, %v6099_v13 }
 0x268   : > { %v2024_v40 = vpop.xlane.xlu0 %2023  ;;  %v2401_v28 = vsel %vm1357_vm0, %v2283_v22, 0.0  ;;  %v6111_v0 = vsub.f32 %v5713_v36, %v2151_v5  ;;  %v2380_v5 = vsel %vm1357_vm0, %v2276_v9, 0.0 }
 0x269   : > { %v2157_v46 = vmul.f32 0.03125, %v2024_v40  ;;  %2402 = vadd.xlane.f32.xlu0 %v2401_v28  ;;  %v2021_v57 = vpop.xlane.xlu1 %2020  ;;  %v2383_v28 = vsel %vm1357_vm0, %v2277_v19, 0.0 }
 0x26a   : > { %2378 = vadd.xlane.f32.xlu1 %v2377_v17 }
 0x26b   : > { %v6096_v34 = vsub.f32 %v5743_v56, %v2157_v46 }
 0x26c   : > { %v2030_v23 = vpop.xlane.xlu0 %2029 }
 0x26d   : > { %v2159_v22 = vmul.f32 0.03125, %v2030_v23  ;;  %v2285_v3 = vmul.f32 %v6096_v34, %v6096_v34  ;;  %v6120_v23 = vsub.f32 %v5716_v44, %v2150_v58  ;;  %v2027_v36 = vpop.xlane.xlu1 %2026  ;;  %v2154_v58 = vmul.f32 0.03125, %v2015_v4 }
 0x26e   : > { %2375 = vadd.xlane.f32.xlu1 %v2374_v12 }
 0x26f   : > { %v6107_v40 = vsub.f32 %v5753_v48, %v2159_v22  ;;  %v2407_v56 = vsel %vm1357_vm0, %v2285_v3, 0.0  ;;  %v2279_v22 = vmul.f32 %v6111_v0, %v6111_v0  ;;  %v2278_v44 = vmul.f32 %v6120_v23, %v6120_v23 }
 0x270   : > { %2408 = vadd.xlane.f32.xlu0 %v2407_v56 }
 0x271   : > { %v2287_v50 = vmul.f32 %v6107_v40, %v6107_v40  ;;  %v2386_v4 = vsel %vm1357_vm0, %v2278_v44, 0.0 }
 0x272   : > { %v2036_v46 = vpop.xlane.xlu0 %2035  ;;  %2384 = vadd.xlane.f32.xlu1 %v2383_v28 }
 0x273   : > { %v2161_v17 = vmul.f32 0.03125, %v2036_v46  ;;  %v2413_v48 = vsel %vm1357_vm0, %v2287_v50, 0.0  ;;  %v2389_v50 = vsel %vm1357_vm0, %v2279_v22, 0.0  ;;  %v2033_v9 = vpop.xlane.xlu1 %2032  ;;  %v2158_v22 = vmul.f32 0.03125, %v2027_v36 }
 0x274   : > { %2414 = vadd.xlane.f32.xlu0 %v2413_v48  ;;  %v2156_v48 = vmul.f32 0.03125, %v2021_v57  ;;  %v2392_v57 = vsel %vm1357_vm0, %v2280_v15, 0.0 }
 0x275   : > { %v6123_v12 = vsub.f32 %v5763_v31, %v2161_v17  ;;  %v6143_v17 = vsub.f32 %v5736_v27, %v2154_v58 }
 0x276   : > { %2381 = vadd.xlane.f32.xlu1 %v2380_v5 }
 0x277   : > { %v2042_v3 = vpop.xlane.xlu0 %2041  ;;  %v2289_v19 = vmul.f32 %v6123_v12, %v6123_v12 }
 0x278   : > { %v2163_v56 = vmul.f32 0.03125, %v2042_v3  ;;  %v2039_v27 = vpop.xlane.xlu1 %2038 }
 0x279   : > { %v2419_v31 = vsel %vm1357_vm0, %v2289_v19, 0.0  ;;  %v6153_v19 = vsub.f32 %v5746_v54, %v2156_v48 }
 0x27a   : > { %v6138_v28 = vsub.f32 %v5773_v53, %v2163_v56  ;;  %2420 = vadd.xlane.f32.xlu0 %v2419_v31  ;;  %2390 = vadd.xlane.f32.xlu1 %v2389_v50  ;;  %v2282_v56 = vmul.f32 %v6143_v17, %v6143_v17  ;;  %v6161_v31 = vsub.f32 %v5756_v62, %v2158_v22  ;;  %v2160_v50 = vmul.f32 0.03125, %v2033_v9 }
 0x27c   : > { %v2291_v46 = vmul.f32 %v6138_v28, %v6138_v28  ;;  %v2398_v54 = vsel %vm1357_vm0, %v2282_v56, 0.0  ;;  %v2286_v15 = vmul.f32 %v6161_v31, %v6161_v31  ;;  %v6175_v9 = vsub.f32 %v5766_v52, %v2160_v50 }
 0x27d   : > { %v2048_v60 = vpop.xlane.xlu0 %2047 }
 0x27e   : > { %v2165_v5 = vmul.f32 0.03125, %v2048_v60  ;;  %v2425_v53 = vsel %vm1357_vm0, %v2291_v46, 0.0  ;;  %2387 = vadd.xlane.f32.xlu1 %v2386_v4  ;;  %v2284_v46 = vmul.f32 %v6153_v19, %v6153_v19  ;;  %v2045_v60 = vpop.xlane.xlu1 %2044 }
 0x27f   : > { %2426 = vadd.xlane.f32.xlu0 %v2425_v53 }
 0x280   : > { %v6150_v3 = vsub.f32 %v5783_v32, %v2165_v5  ;;  %v2162_v5 = vmul.f32 0.03125, %v2039_v27  ;;  %v2404_v22 = vsel %vm1357_vm0, %v2284_v46, 0.0 }
 0x282   : > { %v2293_v44 = vmul.f32 %v6150_v3, %v6150_v3  ;;  %2393 = vadd.xlane.f32.xlu1 %v2392_v57 }
 0x283   : > { %v2054_v58 = vpop.xlane.xlu0 %2053 }
 0x284   : > { %v2167_v36 = vmul.f32 0.03125, %v2054_v58  ;;  %v2431_v32 = vsel %vm1357_vm0, %v2293_v44, 0.0  ;;  %v2410_v44 = vsel %vm1357_vm0, %v2286_v15, 0.0  ;;  %v6184_v58 = vsub.f32 %v5776_v49, %v2162_v5  ;;  %v2051_v52 = vpop.xlane.xlu1 %2050 }
 0x285   : > { %2432 = vadd.xlane.f32.xlu0 %v2431_v32  ;;  %v2288_v32 = vmul.f32 %v6175_v9, %v6175_v9 }
 0x286   : > { %v6168_v48 = vsub.f32 %v5793_v16, %v2167_v36  ;;  %2399 = vadd.xlane.f32.xlu1 %v2398_v54  ;;  %v2164_v36 = vmul.f32 0.03125, %v2045_v60  ;;  %v2290_v60 = vmul.f32 %v6184_v58, %v6184_v58 }
 0x287   : > { %v2416_v49 = vsel %vm1357_vm0, %v2288_v32, 0.0 }
 0x288   : > { %v2060_v4 = vpop.xlane.xlu0 %2059  ;;  %v2295_v62 = vmul.f32 %v6168_v48, %v6168_v48  ;;  %v6192_v46 = vsub.f32 %v5786_v41, %v2164_v36  ;;  %v2422_v41 = vsel %vm1357_vm0, %v2290_v60, 0.0 }
 0x289   : > { %v2169_v53 = vmul.f32 0.03125, %v2060_v4 }
 0x28a   : > { %v2437_v57 = vsel %vm1357_vm0, %v2295_v62, 0.0  ;;  %2405 = vadd.xlane.f32.xlu1 %v2404_v22 }
 0x28b   : > { %v6180_v16 = vsub.f32 %v5803_v42, %v2169_v53  ;;  %2438 = vadd.xlane.f32.xlu0 %v2437_v57  ;;  %v2166_v42 = vmul.f32 0.03125, %v2051_v52  ;;  %v2292_v57 = vmul.f32 %v6192_v46, %v6192_v46 }
 0x28c   : > { %v2057_v56 = vpop.xlane.xlu0 %2056 }
 0x28d   : > { %v2297_v27 = vmul.f32 %v6180_v16, %v6180_v16  ;;  %v6201_v15 = vsub.f32 %v5796_v7, %v2166_v42  ;;  %v2168_v53 = vmul.f32 0.03125, %v2057_v56  ;;  %v6884_v7 = vld [vmem:[#allocation2_spill] sm:$0xff]  ;;  %v2428_v32 = vsel %vm1357_vm0, %v2292_v57, 0.0 }
 0x28e   : > { %2411 = vadd.xlane.f32.xlu1 %v2410_v44 }
 0x28f   : > { %v2443_v50 = vsel %vm1357_vm0, %v2297_v27, 0.0  ;;  %v6212_v52 = vsub.f32 %v6884_v7, %v2168_v53 }
 0x290   : > { %2444 = vadd.xlane.f32.xlu0 %v2443_v50  ;;  %v2066_v54 = vpop.xlane.xlu0 %2065  ;;  %v6885_v50 = vld [vmem:[#allocation4_spill] sm:$0xff] }
 0x291   : > { %v2171_v4 = vmul.f32 0.03125, %v2066_v54 }
 0x292   : > { %2417 = vadd.xlane.f32.xlu1 %v2416_v49  ;;  %v6887_v49 = vld [vmem:[#allocation3_spill] sm:$0xff] }
 0x293   : > { %v6198_v62 = vsub.f32 %v5811_v10, %v2171_v4  ;;  %v2294_v10 = vmul.f32 %v6201_v15, %v6201_v15 }
 0x294   : > { %v2063_v5 = vpop.xlane.xlu0 %2062 }
 0x295   : > { %v2299_v22 = vmul.f32 %v6198_v62, %v6198_v62  ;;  %v2170_v56 = vmul.f32 0.03125, %v2063_v5  ;;  %v2434_v4 = vsel %vm1357_vm0, %v2294_v10, 0.0  ;;  %v2296_v5 = vmul.f32 %v6212_v52, %v6212_v52 }
 0x296   : > { %2423 = vadd.xlane.f32.xlu1 %v2422_v41 }
 0x297   : > { %v2449_v44 = vsel %vm1357_vm0, %v2299_v22, 0.0  ;;  %v6220_v60 = vsub.f32 %v6887_v49, %v2170_v56  ;;  %v2440_v10 = vsel %vm1357_vm0, %v2296_v5, 0.0 }
 0x298   : > { %2450 = vadd.xlane.f32.xlu0 %v2449_v44  ;;  %v2072_v36 = vpop.xlane.xlu0 %2071  ;;  %v6889_v44 = vld [vmem:[#allocation5_spill] sm:$0xff] }
 0x299   : > { %v2173_v27 = vmul.f32 0.03125, %v2072_v36  ;;  %6888 = vst [vmem:[#allocation4_spill] sm:$0xff] %v6220_v60  ;;  %v2298_v56 = vmul.f32 %v6220_v60, %v6220_v60 }
 0x29a   : > { %2429 = vadd.xlane.f32.xlu1 %v2428_v32 }
 0x29b   : > { %v6216_v42 = vsub.f32 %v6885_v50, %v2173_v27  ;;  %v6891_v27 = vld [vmem:[#allocation6_spill] sm:$0xff]  ;;  %v2446_v49 = vsel %vm1357_vm0, %v2298_v56, 0.0 }
 0x29c   : > { %v2069_v54 = vpop.xlane.xlu0 %2068 }
 0x29d   : > { %6886 = vst [vmem:[#allocation2_spill] sm:$0xff] %v6216_v42  ;;  %v2172_v22 = vmul.f32 0.03125, %v2069_v54  ;;  %v2301_v41 = vmul.f32 %v6216_v42, %v6216_v42 }
 0x29e   : > { %2435 = vadd.xlane.f32.xlu1 %v2434_v4 }
 0x29f   : > { %v2455_v53 = vsel %vm1357_vm0, %v2301_v41, 0.0  ;;  %v6228_v36 = vsub.f32 %v6889_v44, %v2172_v22  ;;  %v6893_v41 = vld [vmem:[#allocation7_spill] sm:$0xff] }
 0x2a0   : > { %2456 = vadd.xlane.f32.xlu0 %v2455_v53  ;;  %v2078_v57 = vpop.xlane.xlu0 %2077 }
 0x2a1   : > { %6890 = vst [vmem:[#allocation3_spill] sm:$0xff] %v6228_v36  ;;  %v2175_v7 = vmul.f32 0.03125, %v2078_v57  ;;  %v2300_v22 = vmul.f32 %v6228_v36, %v6228_v36 }
 0x2a2   : > { %2441 = vadd.xlane.f32.xlu1 %v2440_v10 }
 0x2a3   : > { %v6234_v32 = vsub.f32 %v6891_v27, %v2175_v7  ;;  %v2452_v7 = vsel %vm1357_vm0, %v2300_v22, 0.0  ;;  %v6895_v27 = vld [vmem:[#allocation8_spill] sm:$0xff] }
 0x2a4   : > { %v2075_v50 = vpop.xlane.xlu0 %2074 }
 0x2a5   : > { %6892 = vst [vmem:[#allocation5_spill] sm:$0xff] %v6234_v32  ;;  %v2174_v54 = vmul.f32 0.03125, %v2075_v50  ;;  %v2303_v4 = vmul.f32 %v6234_v32, %v6234_v32 }
 0x2a6   : > { %2447 = vadd.xlane.f32.xlu1 %v2446_v49 }
 0x2a7   : > { %v6242_v5 = vsub.f32 %v6893_v41, %v2174_v54  ;;  %v2461_v53 = vsel %vm1357_vm0, %v2303_v4, 0.0  ;;  %v6897_v4 = vld [vmem:[#allocation9_spill] sm:$0xff] }
 0x2a8   : > { %2462 = vadd.xlane.f32.xlu0 %v2461_v53  ;;  %v2084_v57 = vpop.xlane.xlu0 %2083 }
 0x2a9   : > { %6894 = vst [vmem:[#allocation6_spill] sm:$0xff] %v6242_v5  ;;  %v2177_v44 = vmul.f32 0.03125, %v2084_v57  ;;  %v2302_v10 = vmul.f32 %v6242_v5, %v6242_v5 }
 0x2aa   : > { %2453 = vadd.xlane.f32.xlu1 %v2452_v7 }
 0x2ab   : > { %v6249_v56 = vsub.f32 %v6895_v27, %v2177_v44  ;;  %v2458_v49 = vsel %vm1357_vm0, %v2302_v10, 0.0 }
 0x2ac   : > { %v2081_v50 = vpop.xlane.xlu0 %2080 }
 0x2ad   : > { %6896 = vst [vmem:[#allocation7_spill] sm:$0xff] %v6249_v56  ;;  %v2176_v36 = vmul.f32 0.03125, %v2081_v50  ;;  %v2305_v54 = vmul.f32 %v6249_v56, %v6249_v56  ;;  %v6899_v50 = vld [vmem:[#allocation11_spill] sm:$0xff] }
 0x2ae   : > { %2459 = vadd.xlane.f32.xlu1 %v2458_v49 }
 0x2af   : > { %v6255_v41 = vsub.f32 %v6897_v4, %v2176_v36  ;;  %v2467_v22 = vsel %vm1357_vm0, %v2305_v54, 0.0  ;;  %v2325_v53 = vpop.xlane.xlu1 %2324 }
 0x2b0   : > { %2468 = vadd.xlane.f32.xlu0 %v2467_v22  ;;  %v2090_v57 = vpop.xlane.xlu0 %2089  ;;  %v2513_v7 = vmul.f32 0.03125, %v2325_v53  ;;  %v6901_v53 = vld [vmem:[#allocation13_spill] sm:$0xff] }
 0x2b1   : > { %6898 = vst [vmem:[#allocation8_spill] sm:$0xff] %v6255_v41  ;;  %v2179_v5 = vmul.f32 0.03125, %v2090_v57  ;;  %v2304_v44 = vmul.f32 %v6255_v41, %v6255_v41 }
 0x2b2   : > { %v2577_v27 = vadd.f32 1e-05, %v2513_v7 }
 0x2b3   : > { %v6261_v32 = vsub.f32 %v6899_v50, %v2179_v5  ;;  %v2464_v10 = vsel %vm1357_vm0, %v2304_v44, 0.0  ;;  %v2322_v49 = vpop.xlane.xlu1 %2321 }
 0x2b4   : > { %v2087_v56 = vpop.xlane.xlu0 %2086  ;;  %4325 = vrsqrt.f32 %v2577_v27  ;;  %2465 = vadd.xlane.f32.xlu1 %v2464_v10  ;;  %v2512_v36 = vmul.f32 0.03125, %v2322_v49 }
 0x2b5   : > { %6900 = vst [vmem:[#allocation9_spill] sm:$0xff] %v6261_v32  ;;  %v2178_v54 = vmul.f32 0.03125, %v2087_v56  ;;  %v2307_v4 = vmul.f32 %v6261_v32, %v6261_v32 }
 0x2b6   : > { %v2576_v22 = vadd.f32 1e-05, %v2512_v36 }
 0x2b7   : > { %v6267_v57 = vsub.f32 %v6901_v53, %v2178_v54  ;;  %v2473_v7 = vsel %vm1357_vm0, %v2307_v4, 0.0  ;;  %v2331_v41 = vpop.xlane.xlu1 %2330 }
 0x2b8   : > { %2474 = vadd.xlane.f32.xlu0 %v2473_v7  ;;  %v2096_v5 = vpop.xlane.xlu0 %2095  ;;  %4327 = vrsqrt.f32 %v2576_v22  ;;  %v2515_v44 = vmul.f32 0.03125, %v2331_v41 }
 0x2b9   : > { %6902 = vst [vmem:[#allocation11_spill] sm:$0xff] %v6267_v57  ;;  %v2181_v50 = vmul.f32 0.03125, %v2096_v5  ;;  %v2306_v27 = vmul.f32 %v6267_v57, %v6267_v57 }
 0x2ba   : > { %v2579_v10 = vadd.f32 1e-05, %v2515_v44 }
 0x2bb   : > { %v6273_v56 = vsub.f32 %v5890_v59, %v2181_v50  ;;  %v2470_v49 = vsel %vm1357_vm0, %v2306_v27, 0.0  ;;  %v2328_v36 = vpop.xlane.xlu1 %2327  ;;  %v6285_v50 = vld [vmem:[%s6829_s1 + $0x4] ss:$0 sm:$0xff] }
 0x2bc   : > { %v2093_v54 = vpop.xlane.xlu0 %2092  ;;  %2471 = vadd.xlane.f32.xlu1 %v2470_v49  ;;  %4329 = vrsqrt.f32 %v2579_v10  ;;  %v2514_v4 = vmul.f32 0.03125, %v2328_v36  ;;  %v6905_v27 = vld [vmem:[#allocation10_spill] sm:$0xff] }
 0x2bd   : > { %6903 = vst [vmem:[#allocation13_spill] sm:$0xff] %v6273_v56  ;;  %v2180_v53 = vmul.f32 0.03125, %v2093_v54  ;;  %v2309_v22 = vmul.f32 %v6273_v56, %v6273_v56 }
 0x2be   : > { %v4326_v41 = vpop.eup %4325  ;;  %v2578_v7 = vadd.f32 1e-05, %v2514_v4 }
 0x2bf   : > { %v6279_v5 = vsub.f32 %v5905_v6, %v2180_v53  ;;  %v2479_v44 = vsel %vm1357_vm0, %v2309_v22, 0.0  ;;  %v2337_v59 = vpop.xlane.xlu1 %2336  ;;  %v2705_v10 = vmul.f32 %v4326_v41, %v6905_v27  ;;  %v6298_v41 = vld [vmem:[%s6829_s1 + $0x5] ss:$0 sm:$0xff] }
 0x2c0   : > { %2480 = vadd.xlane.f32.xlu0 %v2479_v44  ;;  %v2102_v49 = vpop.xlane.xlu0 %2101  ;;  %4331 = vrsqrt.f32 %v2578_v7  ;;  %v2517_v36 = vmul.f32 0.03125, %v2337_v59  ;;  %v6907_v7 = vld [vmem:[#allocation12_spill] sm:$0xff] }
 0x2c1   : > { %6904 = vst [vmem:[#allocation21_spill] sm:$0xff] %v6279_v5  ;;  %v2183_v54 = vmul.f32 0.03125, %v2102_v49  ;;  %v2308_v4 = vmul.f32 %v6279_v5, %v6279_v5  ;;  %v2773_v22 = vmul.f32 %v6285_v50, %v2705_v10 }
 0x2c2   : > { %v4328_v6 = vpop.eup %4327  ;;  %v2581_v53 = vadd.f32 1e-05, %v2517_v36 }
 0x2c3   : > { %v6292_v56 = vsub.f32 %v5921_v24, %v2183_v54  ;;  %v2476_v57 = vsel %vm1357_vm0, %v2308_v4, 0.0  ;;  %v2334_v32 = vpop.xlane.xlu1 %2333  ;;  %v2704_v44 = vmul.f32 %v4328_v6, %v6907_v7  ;;  %v2841_v4 = vadd.f32 %v6298_v41, %v2773_v22 }
 0x2c4   : > { %v2099_v59 = vpop.xlane.xlu0 %2098  ;;  %2477 = vadd.xlane.f32.xlu1 %v2476_v57  ;;  %4333 = vrsqrt.f32 %v2581_v53  ;;  %v2516_v27 = vmul.f32 0.03125, %v2334_v32  ;;  %v6908_v53 = vld [vmem:[#allocation14_spill] sm:$0xff] }
 0x2c5   : > { %6906 = vst [vmem:[#allocation10_spill] sm:$0xff] %v6292_v56  ;;  %v2182_v49 = vmul.f32 0.03125, %v2099_v59  ;;  %v2311_v10 = vmul.f32 %v6292_v56, %v6292_v56  ;;  %v2772_v24 = vmul.f32 %v6285_v50, %v2704_v44 }
 0x2c6   : > { %v4330_v36 = vpop.eup %4329  ;;  %v2580_v54 = vadd.f32 1e-05, %v2516_v27 }
 0x2c7   : > { %v6306_v5 = vsub.f32 %v5933_v20, %v2182_v49  ;;  %v2485_v60 = vsel %vm1357_vm0, %v2311_v10, 0.0  ;;  %v2343_v6 = vpop.xlane.xlu1 %2342  ;;  %v2840_v57 = vadd.f32 %v6298_v41, %v2772_v24  ;;  %v2707_v32 = vmul.f32 %v4330_v36, %v6908_v53  ;;  %v6909_v36 = vld [vmem:[#allocation15_spill] sm:$0xff] }
 0x2c8   : > { %2486 = vadd.xlane.f32.xlu0 %v2485_v60  ;;  %v2108_v7 = vpop.xlane.xlu0 %2107  ;;  %4335 = vrsqrt.f32 %v2580_v54  ;;  %v2519_v59 = vmul.f32 0.03125, %v2343_v6  ;;  %v2905_v20 = vmax.f32 %v2841_v4, 0.0 }
 0x2c9   : > { %v2185_v56 = vmul.f32 0.03125, %v2108_v7  ;;  %v2310_v44 = vmul.f32 %v6306_v5, %v6306_v5  ;;  %v2904_v27 = vmax.f32 %v2840_v57, 0.0  ;;  %v2775_v49 = vmul.f32 %v6285_v50, %v2707_v32 }
 0x2ca   : > { %v4332_v22 = vpop.eup %4331  ;;  %v2583_v42 = vadd.f32 1e-05, %v2519_v59 }
 0x2cb   : > { %v6315_v10 = vsub.f32 %v5945_v21, %v2185_v56  ;;  %v2482_v24 = vsel %vm1357_vm0, %v2310_v44, 0.0  ;;  %4074 = vmatprep.mubr.msk.f32.mxu1 %vm1357_vm0, %v2904_v27  ;;  %v2340_v60 = vpop.xlane.xlu1 %2339  ;;  %v2706_v54 = vmul.f32 %v4332_v22, %v6909_v36  ;;  %v2843_v7 = vadd.f32 %v6298_v41, %v2775_v49 }
 0x2cc   : > { %v2105_v6 = vpop.xlane.xlu0 %2104  ;;  %2483 = vadd.xlane.f32.xlu1 %v2482_v24  ;;  %4337 = vrsqrt.f32 %v2583_v42  ;;  %v2518_v53 = vmul.f32 0.03125, %v2340_v60  ;;  %4075 = vmatmul.mubr.msk.f32.vlgmr.msra.gmra.mrb[0].mxu1 %vm1357_vm0, %v2905_v20 }
 0x2cd   : > { %v2184_v57 = vmul.f32 0.03125, %v2105_v6  ;;  %v2313_v4 = vmul.f32 %v6315_v10, %v6315_v10  ;;  %v2774_v21 = vmul.f32 %v6285_v50, %v2706_v54 }
 0x2ce   : > { %v4334_v56 = vpop.eup %4333  ;;  %v2582_v32 = vadd.f32 1e-05, %v2518_v53 }
 0x2cf   : > { %v6326_v59 = vsub.f32 %v5957_v30, %v2184_v57  ;;  %v2491_v44 = vsel %vm1357_vm0, %v2313_v4, 0.0  ;;  %v2349_v27 = vpop.xlane.xlu1 %2348  ;;  %v2842_v42 = vadd.f32 %v6298_v41, %v2774_v21  ;;  %v2709_v22 = vmul.f32 %v4334_v56, %v5912_v51 }
 0x2d0   : > { %2492 = vadd.xlane.f32.xlu0 %v2491_v44  ;;  %v2114_v20 = vpop.xlane.xlu0 %2113  ;;  %4339 = vrsqrt.f32 %v2582_v32  ;;  %v2521_v24 = vmul.f32 0.03125, %v2349_v27  ;;  %v2907_v30 = vmax.f32 %v2843_v7, 0.0 }
 0x2d1   : > { %v2187_v60 = vmul.f32 0.03125, %v2114_v20  ;;  %v2312_v36 = vmul.f32 %v6326_v59, %v6326_v59  ;;  %v2906_v54 = vmax.f32 %v2842_v42, 0.0  ;;  %v2777_v53 = vmul.f32 %v6285_v50, %v2709_v22 }
 0x2d2   : > { %v4336_v49 = vpop.eup %4335  ;;  %v2585_v6 = vadd.f32 1e-05, %v2521_v24 }
 0x2d3   : > { %v6335_v57 = vsub.f32 %v5969_v18, %v2187_v60  ;;  %v2488_v4 = vsel %vm1357_vm0, %v2312_v36, 0.0  ;;  %4077 = vmatprep.mubr.msk.f32.mxu1 %vm1357_vm0, %v2906_v54  ;;  %v2346_v51 = vpop.xlane.xlu1 %2345  ;;  %v2708_v21 = vmul.f32 %v4336_v49, %v5915_v29  ;;  %v2845_v22 = vadd.f32 %v6298_v41, %v2777_v53 }
 0x2d4   : > { %v2111_v56 = vpop.xlane.xlu0 %2110  ;;  %2489 = vadd.xlane.f32.xlu1 %v2488_v4  ;;  %4341 = vrsqrt.f32 %v2585_v6  ;;  %v2520_v32 = vmul.f32 0.03125, %v2346_v51  ;;  %4078 = vmatmul.mubr.msk.f32.gmra.mrb[2].mxu1 %vm1357_vm0, %v2907_v30 }
 0x2d5   : > { %v2186_v44 = vmul.f32 0.03125, %v2111_v56  ;;  %v2315_v7 = vmul.f32 %v6335_v57, %v6335_v57  ;;  %v2776_v18 = vmul.f32 %v6285_v50, %v2708_v21 }
 0x2d6   : > { %v4338_v27 = vpop.eup %4337  ;;  %v2584_v42 = vadd.f32 1e-05, %v2520_v32 }
 0x2d7   : > { %v6346_v20 = vsub.f32 %v5981_v43, %v2186_v44  ;;  %v2497_v29 = vsel %vm1357_vm0, %v2315_v7, 0.0  ;;  %v2355_v24 = vpop.xlane.xlu1 %2354  ;;  %v2844_v60 = vadd.f32 %v6298_v41, %v2776_v18  ;;  %v2711_v36 = vmul.f32 %v4338_v27, %v5926_v37 }
 0x2d8   : > { %2498 = vadd.xlane.f32.xlu0 %v2497_v29  ;;  %v2120_v54 = vpop.xlane.xlu0 %2119  ;;  %4343 = vrsqrt.f32 %v2584_v42  ;;  %v2523_v49 = vmul.f32 0.03125, %v2355_v24  ;;  %v2909_v43 = vmax.f32 %v2845_v22, 0.0 }
 0x2d9   : > { %v2189_v6 = vmul.f32 0.03125, %v2120_v54  ;;  %v2314_v30 = vmul.f32 %v6346_v20, %v6346_v20  ;;  %v2908_v4 = vmax.f32 %v2844_v60, 0.0  ;;  %v2779_v21 = vmul.f32 %v6285_v50, %v2711_v36 }
 0x2da   : > { %v4340_v53 = vpop.eup %4339  ;;  %v2587_v51 = vadd.f32 1e-05, %v2523_v49  ;;  %v6910_v49 = vld [vmem:[#allocation16_spill] sm:$0xff] }
 0x2db   : > { %v6355_v56 = vsub.f32 %v5993_v33, %v2189_v6  ;;  %v2494_v32 = vsel %vm1357_vm0, %v2314_v30, 0.0  ;;  %4080 = vmatprep.mubr.msk.f32.mxu1 %vm1357_vm0, %v2908_v4  ;;  %v2352_v37 = vpop.xlane.xlu1 %2351  ;;  %v2710_v44 = vmul.f32 %v4340_v53, %v5938_v47  ;;  %v2847_v24 = vadd.f32 %v6298_v41, %v2779_v21 }
 0x2dc   : > { %v2117_v7 = vpop.xlane.xlu0 %2116  ;;  %2495 = vadd.xlane.f32.xlu1 %v2494_v32  ;;  %4345 = vrsqrt.f32 %v2587_v51  ;;  %v2522_v18 = vmul.f32 0.03125, %v2352_v37  ;;  %4081 = vmatmul.mubr.msk.f32.gmra.mrb[4].mxu1 %vm1357_vm0, %v2909_v43 }
 0x2dd   : > { %v2188_v27 = vmul.f32 0.03125, %v2117_v7  ;;  %v2317_v42 = vmul.f32 %v6355_v56, %v6355_v56  ;;  %v2778_v33 = vmul.f32 %v6285_v50, %v2710_v44 }
 0x2de   : > { %v4342_v22 = vpop.eup %4341  ;;  %v2586_v29 = vadd.f32 1e-05, %v2522_v18 }
 0x2df   : > { %v6366_v60 = vsub.f32 %v6005_v38, %v2188_v27  ;;  %v2503_v47 = vsel %vm1357_vm0, %v2317_v42, 0.0  ;;  %v2361_v36 = vpop.xlane.xlu1 %2360  ;;  %v2846_v54 = vadd.f32 %v6298_v41, %v2778_v33  ;;  %v2713_v6 = vmul.f32 %v4342_v22, %v6910_v49  ;;  %v6911_v27 = vld [vmem:[#allocation17_spill] sm:$0xff] }
 0x2e0   : > { %2504 = vadd.xlane.f32.xlu0 %v2503_v47  ;;  %v2126_v30 = vpop.xlane.xlu0 %2125  ;;  %4347 = vrsqrt.f32 %v2586_v29  ;;  %v2525_v4 = vmul.f32 0.03125, %v2361_v36  ;;  %v2911_v38 = vmax.f32 %v2847_v24, 0.0 }
 0x2e1   : > { %v2191_v53 = vmul.f32 0.03125, %v2126_v30  ;;  %v2316_v51 = vmul.f32 %v6366_v60, %v6366_v60  ;;  %v2910_v43 = vmax.f32 %v2846_v54, 0.0  ;;  %v2781_v37 = vmul.f32 %v6285_v50, %v2713_v6 }
 0x2e2   : > { %v4344_v21 = vpop.eup %4343  ;;  %v2589_v32 = vadd.f32 1e-05, %v2525_v4 }
 0x2e3   : > { %v6375_v44 = vsub.f32 %v6017_v8, %v2191_v53  ;;  %v2500_v7 = vsel %vm1357_vm0, %v2316_v51, 0.0  ;;  %4083 = vmatprep.mubr.msk.f32.mxu1 %vm1357_vm0, %v2910_v43  ;;  %v2358_v18 = vpop.xlane.xlu1 %2357  ;;  %v2712_v42 = vmul.f32 %v4344_v21, %v6911_v27  ;;  %v2849_v54 = vadd.f32 %v6298_v41, %v2781_v37 }
 0x2e4   : > { %2501 = vadd.xlane.f32.xlu1 %v2500_v7  ;;  %v2123_v33 = vpop.xlane.xlu0 %2122  ;;  %4349 = vrsqrt.f32 %v2589_v32  ;;  %v2524_v22 = vmul.f32 0.03125, %v2358_v18  ;;  %4084 = vmatmul.mubr.msk.f32.gmra.mrb[6].mxu1 %vm1357_vm0, %v2911_v38 }
 0x2e5   : > { %v2190_v29 = vmul.f32 0.03125, %v2123_v33  ;;  %v2319_v24 = vmul.f32 %v6375_v44, %v6375_v44  ;;  %v2780_v8 = vmul.f32 %v6285_v50, %v2712_v42  ;;  %v2913_v37 = vmax.f32 %v2849_v54, 0.0 }
 0x2e6   : > { %v4346_v47 = vpop.eup %4345  ;;  %v2588_v36 = vadd.f32 1e-05, %v2524_v22 }
 0x2e7   : > { %v6386_v49 = vsub.f32 %v6029_v61, %v2190_v29  ;;  %v2509_v6 = vsel %vm1357_vm0, %v2319_v24, 0.0  ;;  %v2367_v30 = vpop.xlane.xlu1 %2366  ;;  %v2848_v4 = vadd.f32 %v6298_v41, %v2780_v8  ;;  %v2715_v53 = vmul.f32 %v4346_v47, %v5974_v2  ;;  %v6912_v47 = vld [vmem:[#allocation18_spill] sm:$0xff] }
 0x2e8   : > { %2510 = vadd.xlane.f32.xlu0 %v2509_v6  ;;  %4351 = vrsqrt.f32 %v2588_v36  ;;  %v2527_v51 = vmul.f32 0.03125, %v2367_v30 }
 0x2e9   : > { %v2318_v43 = vmul.f32 %v6386_v49, %v6386_v49  ;;  %v2912_v21 = vmax.f32 %v2848_v4, 0.0  ;;  %v2783_v61 = vmul.f32 %v6285_v50, %v2715_v53 }
 0x2ea   : > { %v4348_v32 = vpop.eup %4347  ;;  %v2591_v38 = vadd.f32 1e-05, %v2527_v51 }
 0x2eb   : > { %v2506_v7 = vsel %vm1357_vm0, %v2318_v43, 0.0  ;;  %4086 = vmatprep.mubr.msk.f32.mxu1 %vm1357_vm0, %v2912_v21  ;;  %v2364_v18 = vpop.xlane.xlu1 %2363  ;;  %v2714_v27 = vmul.f32 %v4348_v32, %v5986_v25  ;;  %v2851_v29 = vadd.f32 %v6298_v41, %v2783_v61 }
 0x2ec   : > { %2507 = vadd.xlane.f32.xlu1 %v2506_v7  ;;  %4353 = vrsqrt.f32 %v2591_v38  ;;  %v2526_v2 = vmul.f32 0.03125, %v2364_v18  ;;  %4087 = vmatmul.mubr.msk.f32.gmra.mrb[8].mxu1 %vm1357_vm0, %v2913_v37 }
 0x2ed   : > { %v2782_v42 = vmul.f32 %v6285_v50, %v2714_v27  ;;  %v2915_v53 = vmax.f32 %v2851_v29, 0.0 }
 0x2ee   : > { %v4350_v33 = vpop.eup %4349  ;;  %v2590_v22 = vadd.f32 1e-05, %v2526_v2 }
 0x2ef   : > { %v2373_v24 = vpop.xlane.xlu1 %2372  ;;  %v2850_v8 = vadd.f32 %v6298_v41, %v2782_v42  ;;  %v2717_v36 = vmul.f32 %v4350_v33, %v6912_v47  ;;  %v6913_v42 = vld [vmem:[#allocation19_spill] sm:$0xff] }
 0x2f0   : > { %4355 = vrsqrt.f32 %v2590_v22  ;;  %v2529_v54 = vmul.f32 0.03125, %v2373_v24 }
 0x2f1   : > { %v2914_v6 = vmax.f32 %v2850_v8, 0.0  ;;  %v2785_v51 = vmul.f32 %v6285_v50, %v2717_v36 }
 0x2f2   : > { %v4352_v25 = vpop.eup %4351  ;;  %v2397_v30 = vpop.xlane.xlu0 %2396  ;;  %v2593_v4 = vadd.f32 1e-05, %v2529_v54 }
 0x2f3   : > { %4089 = vmatprep.mubr.msk.f32.mxu1 %vm1357_vm0, %v2914_v6  ;;  %v2370_v43 = vpop.xlane.xlu1 %2369  ;;  %v2716_v21 = vmul.f32 %v4352_v25, %v6010_v55  ;;  %v2853_v7 = vadd.f32 %v6298_v41, %v2785_v51 }
 0x2f4   : > { %4357 = vrsqrt.f32 %v2593_v4  ;;  %v2528_v32 = vmul.f32 0.03125, %v2370_v43  ;;  %4090 = vmatmul.mubr.msk.f32.gmra.mrb[10].mxu1 %vm1357_vm0, %v2915_v53 }
 0x2f5   : > { %v2784_v38 = vmul.f32 %v6285_v50, %v2716_v21  ;;  %v2917_v8 = vmax.f32 %v2853_v7, 0.0 }
 0x2f6   : > { %v4354_v37 = vpop.eup %4353  ;;  %v2592_v61 = vadd.f32 1e-05, %v2528_v32  ;;  %v2403_v18 = vpop.xlane.xlu0 %2402 }
 0x2f7   : > { %v2379_v27 = vpop.xlane.xlu1 %2378  ;;  %v2852_v2 = vadd.f32 %v6298_v41, %v2784_v38  ;;  %v2719_v33 = vmul.f32 %v4354_v37, %v6913_v42  ;;  %v6914_v38 = vld [vmem:[#allocation20_spill] sm:$0xff] }
 0x2f8   : > { %4359 = vrsqrt.f32 %v2592_v61  ;;  %v2531_v22 = vmul.f32 0.03125, %v2379_v27 }
 0x2f9   : > { %v2916_v29 = vmax.f32 %v2852_v2, 0.0  ;;  %v2787_v47 = vmul.f32 %v6285_v50, %v2719_v33 }
 0x2fa   : > { %v4356_v55 = vpop.eup %4355  ;;  %v2595_v24 = vadd.f32 1e-05, %v2531_v22  ;;  %v2537_v22 = vmul.f32 0.03125, %v2397_v30 }
 0x2fb   : > { %4092 = vmatprep.mubr.msk.f32.mxu1 %vm1357_vm0, %v2916_v29  ;;  %v2376_v36 = vpop.xlane.xlu1 %2375  ;;  %v2718_v54 = vmul.f32 %v4356_v55, %v6034_v39  ;;  %v2855_v43 = vadd.f32 %v6298_v41, %v2787_v47 }
 0x2fc   : > { %4361 = vrsqrt.f32 %v2595_v24  ;;  %v2530_v6 = vmul.f32 0.03125, %v2376_v36  ;;  %4093 = vmatmul.mubr.msk.f32.gmra.mrb[12].mxu1 %vm1357_vm0, %v2917_v8 }
 0x2fd   : > { %v2409_v25 = vpop.xlane.xlu0 %2408  ;;  %v2786_v4 = vmul.f32 %v6285_v50, %v2718_v54  ;;  %v2919_v42 = vmax.f32 %v2855_v43, 0.0 }
 0x2fe   : > { %v4358_v53 = vpop.eup %4357  ;;  %v2594_v51 = vadd.f32 1e-05, %v2530_v6  ;;  %v2601_v6 = vadd.f32 1e-05, %v2537_v22 }
 0x2ff   : > { %v2385_v21 = vpop.xlane.xlu1 %2384  ;;  %v2854_v32 = vadd.f32 %v6298_v41, %v2786_v4  ;;  %v2721_v37 = vmul.f32 %v4358_v53, %v6914_v38 }
 0x300   : > { %4363 = vrsqrt.f32 %v2594_v51  ;;  %v2533_v61 = vmul.f32 0.03125, %v2385_v21 }
 0x301   : > { %v2918_v7 = vmax.f32 %v2854_v32, 0.0  ;;  %v2415_v27 = vpop.xlane.xlu0 %2414  ;;  %v2789_v33 = vmul.f32 %v6285_v50, %v2721_v37 }
 0x302   : > { %v4360_v39 = vpop.eup %4359  ;;  %v2597_v2 = vadd.f32 1e-05, %v2533_v61 }
 0x303   : > { %4095 = vmatprep.mubr.msk.f32.mxu1 %vm1357_vm0, %v2918_v7  ;;  %v2382_v29 = vpop.xlane.xlu1 %2381  ;;  %v2720_v55 = vmul.f32 %v4360_v39, %v6048_v14  ;;  %v2857_v54 = vadd.f32 %v6298_v41, %v2789_v33  ;;  %v2539_v14 = vmul.f32 0.03125, %v2403_v18 }
 0x304   : > { %4365 = vrsqrt.f32 %v2597_v2  ;;  %v2532_v24 = vmul.f32 0.03125, %v2382_v29  ;;  %4096 = vmatmul.mubr.msk.f32.gmra.mrb[14].mxu1 %vm1357_vm0, %v2919_v42  ;;  %v2541_v42 = vmul.f32 0.03125, %v2409_v25 }
 0x305   : > { %v2788_v8 = vmul.f32 %v6285_v50, %v2720_v55  ;;  %v2921_v37 = vmax.f32 %v2857_v54, 0.0  ;;  %v2543_v54 = vmul.f32 0.03125, %v2415_v27 }
 0x306   : > { %v4362_v47 = vpop.eup %4361  ;;  %v2596_v36 = vadd.f32 1e-05, %v2532_v24 }
 0x307   : > { %v2391_v4 = vpop.xlane.xlu1 %2390  ;;  %v2856_v53 = vadd.f32 %v6298_v41, %v2788_v8  ;;  %v2723_v30 = vmul.f32 %v4362_v47, %v6063_v1  ;;  %v2421_v51 = vpop.xlane.xlu0 %2420  ;;  %v2603_v1 = vadd.f32 1e-05, %v2539_v14  ;;  %v2607_v27 = vadd.f32 1e-05, %v2543_v54 }
 0x308   : > { %4367 = vrsqrt.f32 %v2596_v36  ;;  %v2535_v43 = vmul.f32 0.03125, %v2391_v4  ;;  %v2605_v36 = vadd.f32 1e-05, %v2541_v42 }
 0x309   : > { %v2920_v21 = vmax.f32 %v2856_v53, 0.0  ;;  %v2791_v61 = vmul.f32 %v6285_v50, %v2723_v30  ;;  %4369 = vrsqrt.f32 %v2601_v6 }
 0x30a   : > { %v4364_v32 = vpop.eup %4363  ;;  %v2599_v38 = vadd.f32 1e-05, %v2535_v43  ;;  %v2545_v43 = vmul.f32 0.03125, %v2421_v51 }
 0x30b   : > { %4098 = vmatprep.mubr.msk.f32.mxu1 %vm1357_vm0, %v2920_v21  ;;  %v2388_v7 = vpop.xlane.xlu1 %2387  ;;  %v2722_v39 = vmul.f32 %v4364_v32, %v6077_v63  ;;  %v2859_v55 = vadd.f32 %v6298_v41, %v2791_v61 }
 0x30c   : > { %v2534_v2 = vmul.f32 0.03125, %v2388_v7  ;;  %4099 = vmatmul.mubr.msk.f32.gmra.mrb[16].mxu1 %vm1357_vm0, %v2921_v37  ;;  %4371 = vrsqrt.f32 %v2599_v38  ;;  %v2427_v22 = vpop.xlane.xlu0 %2426  ;;  %v2609_v51 = vadd.f32 1e-05, %v2545_v43 }
 0x30d   : > { %v2790_v18 = vmul.f32 %v6285_v50, %v2722_v39  ;;  %v2923_v53 = vmax.f32 %v2859_v55, 0.0 }
 0x30e   : > { %v4366_v33 = vpop.eup %4365  ;;  %v2598_v29 = vadd.f32 1e-05, %v2534_v2  ;;  %v2547_v2 = vmul.f32 0.03125, %v2427_v22 }
 0x30f   : > { %v2394_v24 = vpop.xlane.xlu1 %2393  ;;  %v2858_v8 = vadd.f32 %v6298_v41, %v2790_v18  ;;  %v2725_v47 = vmul.f32 %v4366_v33, %v6092_v45 }
 0x310   : > { %4373 = vrsqrt.f32 %v2598_v29  ;;  %v2536_v63 = vmul.f32 0.03125, %v2394_v24  ;;  %v2611_v22 = vadd.f32 1e-05, %v2547_v2 }
 0x311   : > { %4375 = vrsqrt.f32 %v2603_v1  ;;  %v2922_v6 = vmax.f32 %v2858_v8, 0.0  ;;  %v2793_v30 = vmul.f32 %v6285_v50, %v2725_v47 }
 0x312   : > { %v4368_v25 = vpop.eup %4367  ;;  %v2600_v4 = vadd.f32 1e-05, %v2536_v63  ;;  %v2433_v32 = vpop.xlane.xlu0 %2432 }
 0x313   : > { %4101 = vmatprep.mubr.msk.f32.mxu1 %vm1357_vm0, %v2922_v6  ;;  %v2400_v14 = vpop.xlane.xlu1 %2399  ;;  %v2724_v21 = vmul.f32 %v4368_v25, %v6099_v13  ;;  %v4370_v38 = vpop.eup %4369  ;;  %v2861_v7 = vadd.f32 %v6298_v41, %v2793_v30  ;;  %v2549_v25 = vmul.f32 0.03125, %v2433_v32 }
 0x314   : > { %4377 = vrsqrt.f32 %v2600_v4  ;;  %v2538_v45 = vmul.f32 0.03125, %v2400_v14  ;;  %4102 = vmatmul.mubr.msk.f32.gmra.mrb[18].mxu1 %vm1357_vm0, %v2923_v53  ;;  %v2729_v33 = vmul.f32 %v4370_v38, %v6060_v11 }
 0x315   : > { %4379 = vrsqrt.f32 %v2605_v36  ;;  %v2792_v37 = vmul.f32 %v6285_v50, %v2724_v21  ;;  %v2925_v47 = vmax.f32 %v2861_v7, 0.0 }
 0x316   : > { %v2602_v61 = vadd.f32 1e-05, %v2538_v45  ;;  %v4372_v39 = vpop.eup %4371  ;;  %v2797_v11 = vmul.f32 %v6285_v50, %v2729_v33 }
 0x317   : > { %v2406_v1 = vpop.xlane.xlu1 %2405  ;;  %v2860_v42 = vadd.f32 %v6298_v41, %v2792_v37  ;;  %v2727_v18 = vmul.f32 %v4372_v39, %v6111_v0 }
 0x318   : > { %4381 = vrsqrt.f32 %v2602_v61  ;;  %v2540_v13 = vmul.f32 0.03125, %v2406_v1  ;;  %v2439_v24 = vpop.xlane.xlu0 %2438  ;;  %v2865_v32 = vadd.f32 %v6298_v41, %v2797_v11  ;;  %v2613_v61 = vadd.f32 1e-05, %v2549_v25 }
 0x319   : > { %4383 = vrsqrt.f32 %v2607_v27  ;;  %v2924_v29 = vmax.f32 %v2860_v42, 0.0  ;;  %v2795_v63 = vmul.f32 %v6285_v50, %v2727_v18  ;;  %v2551_v7 = vmul.f32 0.03125, %v2439_v24 }
 0x31a   : > { %v4374_v55 = vpop.eup %4373  ;;  %v2604_v8 = vadd.f32 1e-05, %v2540_v13  ;;  %4385 = vrsqrt.f32 %v2609_v51 }
 0x31b   : > { %v4376_v36 = vpop.eup %4375  ;;  %4104 = vmatprep.mubr.msk.f32.mxu1 %vm1357_vm0, %v2924_v29  ;;  %v2412_v54 = vpop.xlane.xlu1 %2411  ;;  %v2726_v6 = vmul.f32 %v4374_v55, %v6120_v23  ;;  %v2863_v43 = vadd.f32 %v6298_v41, %v2795_v63  ;;  %v2615_v63 = vadd.f32 1e-05, %v2551_v7 }
 0x31c   : > { %4387 = vrsqrt.f32 %v2604_v8  ;;  %v2542_v0 = vmul.f32 0.03125, %v2412_v54  ;;  %4105 = vmatmul.mubr.msk.f32.gmra.mrb[20].mxu1 %vm1357_vm0, %v2925_v47  ;;  %v2731_v14 = vmul.f32 %v4376_v36, %v6080_v26  ;;  %v2929_v8 = vmax.f32 %v2865_v32, 0.0 }
 0x31d   : > { %v2794_v4 = vmul.f32 %v6285_v50, %v2726_v6  ;;  %4389 = vrsqrt.f32 %v2611_v22  ;;  %v2445_v27 = vpop.xlane.xlu0 %2444  ;;  %v2927_v26 = vmax.f32 %v2863_v43, 0.0 }
 0x31e   : > { %v4378_v53 = vpop.eup %4377  ;;  %v2606_v30 = vadd.f32 1e-05, %v2542_v0  ;;  %v2799_v42 = vmul.f32 %v6285_v50, %v2731_v14  ;;  %v2553_v33 = vmul.f32 0.03125, %v2445_v27 }
 0x31f   : > { %v4380_v21 = vpop.eup %4379  ;;  %v2418_v45 = vpop.xlane.xlu1 %2417  ;;  %v2862_v23 = vadd.f32 %v6298_v41, %v2794_v4  ;;  %v2728_v38 = vmul.f32 %v4378_v53, %v6133_v35 }
 0x320   : > { %4391 = vrsqrt.f32 %v2606_v30  ;;  %v2544_v37 = vmul.f32 0.03125, %v2418_v45  ;;  %v2733_v13 = vmul.f32 %v4380_v21, %v6096_v34  ;;  %v2867_v0 = vadd.f32 %v6298_v41, %v2799_v42 }
 0x321   : > { %v2926_v39 = vmax.f32 %v2862_v23, 0.0  ;;  %v2796_v51 = vmul.f32 %v6285_v50, %v2728_v38  ;;  %v2617_v25 = vadd.f32 1e-05, %v2553_v33 }
 0x322   : > { %v4382_v2 = vpop.eup %4381  ;;  %v2608_v1 = vadd.f32 1e-05, %v2544_v37  ;;  %v2801_v11 = vmul.f32 %v6285_v50, %v2733_v13  ;;  %v2931_v37 = vmax.f32 %v2867_v0, 0.0 }
 0x323   : > { %v4384_v18 = vpop.eup %4383  ;;  %4107 = vmatprep.mubr.msk.f32.mxu1 %vm1357_vm0, %v2926_v39  ;;  %v2424_v35 = vpop.xlane.xlu1 %2423  ;;  %v2864_v29 = vadd.f32 %v6298_v41, %v2796_v51  ;;  %v2730_v55 = vmul.f32 %v4382_v2, %v6143_v17 }
 0x324   : > { %4393 = vrsqrt.f32 %v2608_v1  ;;  %v2546_v24 = vmul.f32 0.03125, %v2424_v35  ;;  %4108 = vmatmul.mubr.msk.f32.gmra.mrb[22].mxu1 %vm1357_vm0, %v2927_v26  ;;  %v4386_v47 = vpop.eup %4385  ;;  %v2735_v17 = vmul.f32 %v4384_v18, %v6107_v40  ;;  %v2869_v32 = vadd.f32 %v6298_v41, %v2801_v11 }
 0x325   : > { %4395 = vrsqrt.f32 %v2613_v61  ;;  %v2451_v36 = vpop.xlane.xlu0 %2450  ;;  %v2928_v22 = vmax.f32 %v2864_v29, 0.0  ;;  %v2798_v34 = vmul.f32 %v6285_v50, %v2730_v55  ;;  %v2737_v21 = vmul.f32 %v4386_v47, %v6123_v12 }
 0x326   : > { %v4388_v54 = vpop.eup %4387  ;;  %v2610_v6 = vadd.f32 1e-05, %v2546_v24  ;;  %v2555_v4 = vmul.f32 0.03125, %v2451_v36  ;;  %v2803_v61 = vmul.f32 %v6285_v50, %v2735_v17  ;;  %v2933_v29 = vmax.f32 %v2869_v32, 0.0 }
 0x327   : > { %4110 = vmatprep.mubr.msk.f32.mxu1 %vm1357_vm0, %v2928_v22  ;;  %v2430_v53 = vpop.xlane.xlu1 %2429  ;;  %v2866_v30 = vadd.f32 %v6298_v41, %v2798_v34  ;;  %v2732_v43 = vmul.f32 %v4388_v54, %v6153_v19  ;;  %v4390_v45 = vpop.eup %4389  ;;  %v2805_v2 = vmul.f32 %v6285_v50, %v2737_v21 }
 0x328   : > { %4397 = vrsqrt.f32 %v2610_v6  ;;  %v2548_v14 = vmul.f32 0.03125, %v2430_v53  ;;  %4111 = vmatmul.mubr.msk.f32.gmra.mrb[24].mxu1 %vm1357_vm0, %v2929_v8  ;;  %v2619_v19 = vadd.f32 1e-05, %v2555_v4  ;;  %v2739_v13 = vmul.f32 %v4390_v45, %v6138_v28 }
 0x329   : > { %4399 = vrsqrt.f32 %v2615_v63  ;;  %v2930_v23 = vmax.f32 %v2866_v30, 0.0  ;;  %v2800_v40 = vmul.f32 %v6285_v50, %v2732_v43  ;;  %v2871_v55 = vadd.f32 %v6298_v41, %v2803_v61 }
 0x32a   : > { %v4392_v38 = vpop.eup %4391  ;;  %v2612_v27 = vadd.f32 1e-05, %v2548_v14  ;;  %4401 = vrsqrt.f32 %v2617_v25  ;;  %v2873_v28 = vadd.f32 %v6298_v41, %v2805_v2  ;;  %v2807_v54 = vmul.f32 %v6285_v50, %v2739_v13 }
 0x32b   : > { %v2436_v7 = vpop.xlane.xlu1 %2435  ;;  %4113 = vmatprep.mubr.msk.f32.mxu1 %vm1357_vm0, %v2930_v23  ;;  %v2868_v39 = vadd.f32 %v6298_v41, %v2800_v40  ;;  %v2734_v12 = vmul.f32 %v4392_v38, %v6161_v31  ;;  %v2935_v11 = vmax.f32 %v2871_v55, 0.0 }
 0x32c   : > { %4403 = vrsqrt.f32 %v2612_v27  ;;  %v2550_v51 = vmul.f32 0.03125, %v2436_v7  ;;  %4114 = vmatmul.mubr.msk.f32.gmra.mrb[26].mxu1 %vm1357_vm0, %v2931_v37  ;;  %v2937_v43 = vmax.f32 %v2873_v28, 0.0 }
 0x32d   : > { %v2457_v1 = vpop.xlane.xlu0 %2456  ;;  %v2932_v26 = vmax.f32 %v2868_v39, 0.0  ;;  %v2802_v42 = vmul.f32 %v6285_v50, %v2734_v12  ;;  %4405 = vrsqrt.f32 %v2619_v19 }
 0x32e   : > { %v4394_v18 = vpop.eup %4393  ;;  %v2557_v33 = vmul.f32 0.03125, %v2457_v1  ;;  %v2614_v35 = vadd.f32 1e-05, %v2550_v51 }
 0x32f   : > { %v4396_v24 = vpop.eup %4395  ;;  %v2442_v31 = vpop.xlane.xlu1 %2441  ;;  %4116 = vmatprep.mubr.msk.f32.mxu1 %vm1357_vm0, %v2932_v26  ;;  %v2870_v8 = vadd.f32 %v6298_v41, %v2802_v42  ;;  %v2736_v47 = vmul.f32 %v4394_v18, %v6175_v9 }
 0x330   : > { %4407 = vrsqrt.f32 %v2614_v35  ;;  %v2552_v63 = vmul.f32 0.03125, %v2442_v31  ;;  %4117 = vmatmul.mubr.msk.f32.gmra.mrb[28].mxu1 %vm1357_vm0, %v2933_v29  ;;  %v2621_v36 = vadd.f32 1e-05, %v2557_v33  ;;  %v2741_v17 = vmul.f32 %v4396_v24, %v6150_v3 }
 0x331   : > { %v2934_v22 = vmax.f32 %v2870_v8, 0.0  ;;  %v2804_v34 = vmul.f32 %v6285_v50, %v2736_v47  ;;  %v2875_v3 = vadd.f32 %v6298_v41, %v2807_v54 }
 0x332   : > { %v4398_v6 = vpop.eup %4397  ;;  %v2616_v0 = vadd.f32 1e-05, %v2552_v63  ;;  %v2809_v37 = vmul.f32 %v6285_v50, %v2741_v17 }
 0x333   : > { %v4400_v25 = vpop.eup %4399  ;;  %v2448_v4 = vpop.xlane.xlu1 %2447  ;;  %4119 = vmatprep.mubr.msk.f32.mxu1 %vm1357_vm0, %v2934_v22  ;;  %v2872_v9 = vadd.f32 %v6298_v41, %v2804_v34  ;;  %v2738_v53 = vmul.f32 %v4398_v6, %v6184_v58  ;;  %v2939_v2 = vmax.f32 %v2875_v3, 0.0 }
 0x334   : > { %4409 = vrsqrt.f32 %v2616_v0  ;;  %v2554_v30 = vmul.f32 0.03125, %v2448_v4  ;;  %4120 = vmatmul.mubr.msk.f32.gmra.mrb[30].mxu1 %vm1357_vm0, %v2935_v11  ;;  %v4402_v14 = vpop.eup %4401  ;;  %v2743_v58 = vmul.f32 %v4400_v25, %v6168_v48  ;;  %v2877_v13 = vadd.f32 %v6298_v41, %v2809_v37 }
 0x335   : > { %4411 = vrsqrt.f32 %v2621_v36  ;;  %v2463_v21 = vpop.xlane.xlu0 %2462  ;;  %v2936_v45 = vmax.f32 %v2872_v9, 0.0  ;;  %v2806_v23 = vmul.f32 %v6285_v50, %v2738_v53  ;;  %v2745_v26 = vmul.f32 %v4402_v14, %v6180_v16  ;;  %v6916_v14 = vld [vmem:[#allocation4_spill] sm:$0xff] }
 0x336   : > { %v4404_v40 = vpop.eup %4403  ;;  %v2559_v38 = vmul.f32 0.03125, %v2463_v21  ;;  %v2618_v27 = vadd.f32 1e-05, %v2554_v30  ;;  %v2811_v18 = vmul.f32 %v6285_v50, %v2743_v58  ;;  %v2941_v36 = vmax.f32 %v2877_v13, 0.0  ;;  %v6915_v30 = vld [vmem:[#allocation2_spill] sm:$0xff] }
 0x337   : > { %v2454_v32 = vpop.xlane.xlu1 %2453  ;;  %4122 = vmatprep.mubr.msk.f32.mxu1 %vm1357_vm0, %v2936_v45  ;;  %v2874_v61 = vadd.f32 %v6298_v41, %v2806_v23  ;;  %v2740_v19 = vmul.f32 %v4404_v40, %v6192_v46  ;;  %v4406_v12 = vpop.eup %4405  ;;  %v2813_v31 = vmul.f32 %v6285_v50, %v2745_v26 }
 0x338   : > { %v2623_v7 = vadd.f32 1e-05, %v2559_v38  ;;  %4413 = vrsqrt.f32 %v2618_v27  ;;  %v2556_v39 = vmul.f32 0.03125, %v2454_v32  ;;  %4123 = vmatmul.mubr.msk.f32.gmra.mrb[32].mxu1 %vm1357_vm0, %v2937_v43  ;;  %v2747_v8 = vmul.f32 %v4406_v12, %v6198_v62 }
 0x339   : > { %v2938_v51 = vmax.f32 %v2874_v61, 0.0  ;;  %v2808_v1 = vmul.f32 %v6285_v50, %v2740_v19  ;;  %v2879_v22 = vadd.f32 %v6298_v41, %v2811_v18  ;;  %v2881_v17 = vadd.f32 %v6298_v41, %v2813_v31  ;;  %v6530_v61 = vld [vmem:[%s6829_s1 + $0x4] ss:$0 sm:$0xff] }
 0x33a   : > { %v4408_v48 = vpop.eup %4407  ;;  %4415 = vrsqrt.f32 %v2623_v7  ;;  %v2620_v42 = vadd.f32 1e-05, %v2556_v39  ;;  %v2815_v25 = vmul.f32 %v6285_v50, %v2747_v8  ;;  %v6917_v7 = vld [vmem:[#allocation5_spill] sm:$0xff] }
 0x33b   : > { %v2460_v46 = vpop.xlane.xlu1 %2459  ;;  %4125 = vmatprep.mubr.msk.f32.mxu1 %vm1357_vm0, %v2938_v51  ;;  %v2876_v33 = vadd.f32 %v6298_v41, %v2808_v1  ;;  %v2742_v35 = vmul.f32 %v4408_v48, %v6201_v15  ;;  %v2943_v53 = vmax.f32 %v2879_v22, 0.0  ;;  %v2945_v38 = vmax.f32 %v2881_v17, 0.0  ;;  %v6918_v51 = vld [vmem:[#allocation3_spill] sm:$0xff]  ;;  %v6921_v17 = vld [vmem:[#allocation8_spill] sm:$0xff] }
 0x33c   : > { %4417 = vrsqrt.f32 %v2620_v42  ;;  %v2558_v29 = vmul.f32 0.03125, %v2460_v46  ;;  %4126 = vmatmul.mubr.msk.f32.gmra.mrb[34].mxu1 %vm1357_vm0, %v2939_v2  ;;  %v2883_v37 = vadd.f32 %v6298_v41, %v2815_v25  ;;  %v6542_v46 = vld [vmem:[%s6829_s1 + $0x5] ss:$0 sm:$0xff] }
 0x33d   : > { %v2469_v55 = vpop.xlane.xlu0 %2468  ;;  %v2940_v16 = vmax.f32 %v2876_v33, 0.0  ;;  %v2810_v24 = vmul.f32 %v6285_v50, %v2742_v35 }
 0x33e   : > { %v4410_v47 = vpop.eup %4409  ;;  %v2561_v63 = vmul.f32 0.03125, %v2469_v55  ;;  %v2622_v28 = vadd.f32 1e-05, %v2558_v29  ;;  %v2947_v48 = vmax.f32 %v2883_v37, 0.0  ;;  %v6919_v29 = vld [vmem:[#allocation6_spill] sm:$0xff] }
 0x33f   : > { %v4412_v34 = vpop.eup %4411  ;;  %4128 = vmatprep.mubr.msk.f32.mxu1 %vm1357_vm0, %v2940_v16  ;;  %v2878_v15 = vadd.f32 %v6298_v41, %v2810_v24  ;;  %v2744_v54 = vmul.f32 %v4410_v47, %v6212_v52 }
 0x340   : > { %v2625_v6 = vadd.f32 1e-05, %v2561_v63  ;;  %4419 = vrsqrt.f32 %v2622_v28  ;;  %4129 = vmatmul.mubr.msk.f32.gmra.mrb[36].mxu1 %vm1357_vm0, %v2941_v36  ;;  %v2749_v43 = vmul.f32 %v4412_v34, %v6915_v30  ;;  %v6920_v63 = vld [vmem:[#allocation7_spill] sm:$0xff] }
 0x341   : > { %v2466_v0 = vpop.xlane.xlu1 %2465  ;;  %v2942_v11 = vmax.f32 %v2878_v15, 0.0  ;;  %v2812_v62 = vmul.f32 %v6285_v50, %v2744_v54 }
 0x342   : > { %v4414_v4 = vpop.eup %4413  ;;  %4421 = vrsqrt.f32 %v2625_v6  ;;  %v2560_v9 = vmul.f32 0.03125, %v2466_v0  ;;  %v2817_v19 = vmul.f32 %v6530_v61, %v2749_v43 }
 0x343   : > { %4131 = vmatprep.mubr.msk.f32.mxu1 %vm1357_vm0, %v2942_v11  ;;  %v2880_v52 = vadd.f32 %v6298_v41, %v2812_v62  ;;  %v2746_v21 = vmul.f32 %v4414_v4, %v6916_v14 }
 0x344   : > { %v4416_v45 = vpop.eup %4415  ;;  %v2624_v23 = vadd.f32 1e-05, %v2560_v9  ;;  %4132 = vmatmul.mubr.msk.f32.gmra.mrb[38].mxu1 %vm1357_vm0, %v2943_v53 }
 0x345   : > { %v2475_v3 = vpop.xlane.xlu0 %2474  ;;  %v2944_v40 = vmax.f32 %v2880_v52, 0.0  ;;  %v2814_v27 = vmul.f32 %v6285_v50, %v2746_v21  ;;  %v2751_v39 = vmul.f32 %v4416_v45, %v6917_v7  ;;  %v6922_v45 = vld [vmem:[#allocation9_spill] sm:$0xff] }
 0x346   : > { %v4418_v58 = vpop.eup %4417  ;;  %v2563_v32 = vmul.f32 0.03125, %v2475_v3  ;;  %4423 = vrsqrt.f32 %v2624_v23 }
 0x347   : > { %4134 = vmatprep.mubr.msk.f32.mxu1 %vm1357_vm0, %v2944_v40  ;;  %v2882_v12 = vadd.f32 %v6298_v41, %v2814_v27  ;;  %v2748_v50 = vmul.f32 %v4418_v58, %v6918_v51  ;;  %v2885_v41 = vadd.f32 %v6542_v46, %v2817_v19  ;;  %v2819_v33 = vmul.f32 %v6530_v61, %v2751_v39  ;;  %v6923_v19 = vld [vmem:[#allocation11_spill] sm:$0xff] }
 0x348   : > { %v2627_v2 = vadd.f32 1e-05, %v2563_v32  ;;  %4135 = vmatmul.mubr.msk.f32.gmra.mrb[40].mxu1 %vm1357_vm0, %v2945_v38 }
 0x349   : > { %v2472_v1 = vpop.xlane.xlu1 %2471  ;;  %v2946_v26 = vmax.f32 %v2882_v12, 0.0  ;;  %v2816_v42 = vmul.f32 %v6530_v61, %v2748_v50  ;;  %v2949_v22 = vmax.f32 %v2885_v41, 0.0  ;;  %v2887_v34 = vadd.f32 %v6542_v46, %v2819_v33 }
 0x34a   : > { %v4420_v13 = vpop.eup %4419  ;;  %4425 = vrsqrt.f32 %v2627_v2  ;;  %v2562_v18 = vmul.f32 0.03125, %v2472_v1 }
 0x34b   : > { %4137 = vmatprep.mubr.msk.f32.mxu1 %vm1357_vm0, %v2946_v26  ;;  %v2884_v35 = vadd.f32 %v6542_v46, %v2816_v42  ;;  %v2750_v55 = vmul.f32 %v4420_v13, %v6919_v29  ;;  %v2951_v9 = vmax.f32 %v2887_v34, 0.0  ;;  %v6926_v34 = vld [vmem:[#allocation10_spill] sm:$0xff] }
 0x34c   : > { %v4422_v16 = vpop.eup %4421  ;;  %v2626_v24 = vadd.f32 1e-05, %v2562_v18  ;;  %4138 = vmatmul.mubr.msk.f32.gmra.mrb[42].mxu1 %vm1357_vm0, %v2947_v48  ;;  %v6924_v48 = vld [vmem:[#allocation13_spill] sm:$0xff] }
 0x34d   : > { %v2481_v31 = vpop.xlane.xlu0 %2480  ;;  %v2948_v8 = vmax.f32 %v2884_v35, 0.0  ;;  %v2818_v47 = vmul.f32 %v6530_v61, %v2750_v55  ;;  %v2753_v28 = vmul.f32 %v4422_v16, %v6920_v63  ;;  %v6925_v16 = vld [vmem:[#allocation21_spill] sm:$0xff] }
 0x34e   : > { %v2565_v36 = vmul.f32 0.03125, %v2481_v31  ;;  %4427 = vrsqrt.f32 %v2626_v24 }
 0x34f   : > { %4140 = vmatprep.mubr.msk.f32.mxu1 %vm1357_vm0, %v2948_v8  ;;  %v2886_v15 = vadd.f32 %v6542_v46, %v2818_v47  ;;  %v2821_v0 = vmul.f32 %v6530_v61, %v2753_v28 }
 0x350   : > { %v4424_v54 = vpop.eup %4423  ;;  %v2629_v6 = vadd.f32 1e-05, %v2565_v36  ;;  %4141 = vmatmul.mubr.msk.f32.gmra.mrb[44].mxu1 %vm1357_vm0, %v2949_v22 }
 0x351   : > { %v2478_v11 = vpop.xlane.xlu1 %2477  ;;  %v2950_v62 = vmax.f32 %v2886_v15, 0.0  ;;  %v2752_v25 = vmul.f32 %v4424_v54, %v6921_v17  ;;  %v2889_v52 = vadd.f32 %v6542_v46, %v2821_v0 }
 0x352   : > { %4429 = vrsqrt.f32 %v2629_v6  ;;  %v2564_v4 = vmul.f32 0.03125, %v2478_v11 }
 0x353   : > { %4143 = vmatprep.mubr.msk.f32.mxu1 %vm1357_vm0, %v2950_v62  ;;  %v2820_v53 = vmul.f32 %v6530_v61, %v2752_v25  ;;  %v2953_v37 = vmax.f32 %v2889_v52, 0.0 }
 0x354   : > { %v4426_v30 = vpop.eup %4425  ;;  %v2628_v43 = vadd.f32 1e-05, %v2564_v4  ;;  %4144 = vmatmul.mubr.msk.f32.gmra.mrb[46].mxu1 %vm1357_vm0, %v2951_v9 }
 0x355   : > { %v2487_v14 = vpop.xlane.xlu0 %2486  ;;  %v2888_v21 = vadd.f32 %v6542_v46, %v2820_v53  ;;  %v2755_v23 = vmul.f32 %v4426_v30, %v6922_v45 }
 0x356   : > { %v2567_v3 = vmul.f32 0.03125, %v2487_v14  ;;  %4431 = vrsqrt.f32 %v2628_v43 }
 0x357   : > { %v2952_v40 = vmax.f32 %v2888_v21, 0.0  ;;  %v2823_v58 = vmul.f32 %v6530_v61, %v2755_v23 }
 0x358   : > { %v4428_v38 = vpop.eup %4427  ;;  %v2631_v27 = vadd.f32 1e-05, %v2567_v3 }
 0x359   : > { %v2484_v32 = vpop.xlane.xlu1 %2483  ;;  %4146 = vmatprep.mubr.msk.f32.mxu1 %vm1357_vm0, %v2952_v40  ;;  %v2754_v7 = vmul.f32 %v4428_v38, %v6923_v19  ;;  %v2891_v2 = vadd.f32 %v6542_v46, %v2823_v58 }
 0x35a   : > { %4433 = vrsqrt.f32 %v2631_v27  ;;  %v2566_v39 = vmul.f32 0.03125, %v2484_v32  ;;  %4147 = vmatmul.mubr.msk.f32.gmra.mrb[48].mxu1 %vm1357_vm0, %v2953_v37 }
 0x35b   : > { %v2822_v12 = vmul.f32 %v6530_v61, %v2754_v7  ;;  %v2955_v35 = vmax.f32 %v2891_v2, 0.0 }
 0x35c   : > { %v4430_v51 = vpop.eup %4429  ;;  %v2630_v50 = vadd.f32 1e-05, %v2566_v39 }
 0x35d   : > { %v2493_v1 = vpop.xlane.xlu0 %2492  ;;  %v2890_v26 = vadd.f32 %v6542_v46, %v2822_v12  ;;  %v2757_v42 = vmul.f32 %v4430_v51, %v6924_v48 }
 0x35e   : > { %v2569_v13 = vmul.f32 0.03125, %v2493_v1  ;;  %4435 = vrsqrt.f32 %v2630_v50 }
 0x35f   : > { %v2954_v18 = vmax.f32 %v2890_v26, 0.0  ;;  %v2825_v29 = vmul.f32 %v6530_v61, %v2757_v42 }
 0x360   : > { %v4432_v41 = vpop.eup %4431  ;;  %v2633_v33 = vadd.f32 1e-05, %v2569_v13 }
 0x361   : > { %v2490_v55 = vpop.xlane.xlu1 %2489  ;;  %4149 = vmatprep.mubr.msk.f32.mxu1 %vm1357_vm0, %v2954_v18  ;;  %v2756_v24 = vmul.f32 %v4432_v41, %v6925_v16  ;;  %v2893_v28 = vadd.f32 %v6542_v46, %v2825_v29 }
 0x362   : > { %4437 = vrsqrt.f32 %v2633_v33  ;;  %v2568_v31 = vmul.f32 0.03125, %v2490_v55  ;;  %4150 = vmatmul.mubr.msk.f32.gmra.mrb[50].mxu1 %vm1357_vm0, %v2955_v35 }
 0x363   : > { %v2824_v8 = vmul.f32 %v6530_v61, %v2756_v24  ;;  %v2957_v62 = vmax.f32 %v2893_v28, 0.0 }
 0x364   : > { %v4434_v47 = vpop.eup %4433  ;;  %v2632_v63 = vadd.f32 1e-05, %v2568_v31 }
 0x365   : > { %v2499_v36 = vpop.xlane.xlu0 %2498  ;;  %v2892_v22 = vadd.f32 %v6542_v46, %v2824_v8  ;;  %v2759_v15 = vmul.f32 %v4434_v47, %v6926_v34 }
 0x366   : > { %v2571_v54 = vmul.f32 0.03125, %v2499_v36  ;;  %4439 = vrsqrt.f32 %v2632_v63 }
 0x367   : > { %v2956_v6 = vmax.f32 %v2892_v22, 0.0  ;;  %v2827_v17 = vmul.f32 %v6530_v61, %v2759_v15 }
 0x368   : > { %v4436_v0 = vpop.eup %4435  ;;  %v2635_v11 = vadd.f32 1e-05, %v2571_v54 }
 0x369   : > { %v2496_v25 = vpop.xlane.xlu1 %2495  ;;  %4152 = vmatprep.mubr.msk.f32.mxu1 %vm1357_vm0, %v2956_v6  ;;  %v2758_v4 = vmul.f32 %v4436_v0, %v6306_v5  ;;  %v2895_v52 = vadd.f32 %v6542_v46, %v2827_v17 }
 0x36a   : > { %4441 = vrsqrt.f32 %v2635_v11  ;;  %v2570_v9 = vmul.f32 0.03125, %v2496_v25  ;;  %4153 = vmatmul.mubr.msk.f32.gmra.mrb[52].mxu1 %vm1357_vm0, %v2957_v62 }
 0x36b   : > { %v2826_v53 = vmul.f32 %v6530_v61, %v2758_v4  ;;  %v2959_v38 = vmax.f32 %v2895_v52, 0.0 }
 0x36c   : > { %v4438_v30 = vpop.eup %4437  ;;  %v2634_v43 = vadd.f32 1e-05, %v2570_v9 }
 0x36d   : > { %v2505_v14 = vpop.xlane.xlu0 %2504  ;;  %v2894_v21 = vadd.f32 %v6542_v46, %v2826_v53  ;;  %v2761_v45 = vmul.f32 %v4438_v30, %v6315_v10 }
 0x36e   : > { %4443 = vrsqrt.f32 %v2634_v43  ;;  %v2573_v23 = vmul.f32 0.03125, %v2505_v14 }
 0x36f   : > { %v2958_v3 = vmax.f32 %v2894_v21, 0.0  ;;  %v2829_v27 = vmul.f32 %v6530_v61, %v2761_v45 }
 0x370   : > { %v4440_v40 = vpop.eup %4439  ;;  %v2637_v5 = vadd.f32 1e-05, %v2573_v23 }
 0x371   : > { %v2502_v37 = vpop.xlane.xlu1 %2501  ;;  %4155 = vmatprep.mubr.msk.f32.mxu1 %vm1357_vm0, %v2958_v3  ;;  %v2760_v58 = vmul.f32 %v4440_v40, %v6326_v59  ;;  %v2897_v39 = vadd.f32 %v6542_v46, %v2829_v27 }
 0x372   : > { %4445 = vrsqrt.f32 %v2637_v5  ;;  %v2572_v32 = vmul.f32 0.03125, %v2502_v37  ;;  %4156 = vmatmul.mubr.msk.f32.gmra.mrb[54].mxu1 %vm1357_vm0, %v2959_v38 }
 0x373   : > { %v2828_v19 = vmul.f32 %v6530_v61, %v2760_v58  ;;  %v2961_v48 = vmax.f32 %v2897_v39, 0.0 }
 0x374   : > { %v4442_v10 = vpop.eup %4441  ;;  %v2636_v7 = vadd.f32 1e-05, %v2572_v32 }
 0x375   : > { %v2511_v12 = vpop.xlane.xlu0 %2510  ;;  %v2896_v51 = vadd.f32 %v6542_v46, %v2828_v19  ;;  %v2763_v50 = vmul.f32 %v4442_v10, %v6335_v57 }
 0x376   : > { %4447 = vrsqrt.f32 %v2636_v7  ;;  %v2575_v2 = vmul.f32 0.03125, %v2511_v12 }
 0x377   : > { %v2960_v1 = vmax.f32 %v2896_v51, 0.0  ;;  %v2831_v42 = vmul.f32 %v6530_v61, %v2763_v50 }
 0x378   : > { %v4444_v26 = vpop.eup %4443  ;;  %v2639_v59 = vadd.f32 1e-05, %v2575_v2 }
 0x379   : > { %v2508_v13 = vpop.xlane.xlu1 %2507  ;;  %4158 = vmatprep.mubr.msk.f32.mxu1 %vm1357_vm0, %v2960_v1  ;;  %v2762_v18 = vmul.f32 %v4444_v26, %v6346_v20  ;;  %v2899_v29 = vadd.f32 %v6542_v46, %v2831_v42 }
 0x37a   : > { %4449 = vrsqrt.f32 %v2639_v59  ;;  %v2574_v41 = vmul.f32 0.03125, %v2508_v13  ;;  %4159 = vmatmul.mubr.msk.f32.gmra.mrb[56].mxu1 %vm1357_vm0, %v2961_v48 }
 0x37b   : > { %v2830_v33 = vmul.f32 %v6530_v61, %v2762_v18  ;;  %v2963_v8 = vmax.f32 %v2899_v29, 0.0 }
 0x37c   : > { %v4446_v57 = vpop.eup %4445  ;;  %v2638_v35 = vadd.f32 1e-05, %v2574_v41 }
 0x37d   : > { %v2898_v55 = vadd.f32 %v6542_v46, %v2830_v33  ;;  %v2765_v16 = vmul.f32 %v4446_v57, %v6355_v56 }
 0x37e   : > { %4451 = vrsqrt.f32 %v2638_v35 }
 0x37f   : > { %v2962_v24 = vmax.f32 %v2898_v55, 0.0  ;;  %v2833_v20 = vmul.f32 %v6530_v61, %v2765_v16 }
 0x380   : > { %v4448_v31 = vpop.eup %4447 }
 0x381   : > { %4161 = vmatprep.mubr.msk.f32.mxu1 %vm1357_vm0, %v2962_v24  ;;  %v2764_v47 = vmul.f32 %v4448_v31, %v6366_v60  ;;  %v2901_v36 = vadd.f32 %v6542_v46, %v2833_v20 }
 0x382   : > { %4162 = vmatmul.mubr.msk.f32.gmra.mrb[58].mxu1 %vm1357_vm0, %v2963_v8 }
 0x383   : > { %v2832_v63 = vmul.f32 %v6530_v61, %v2764_v47  ;;  %v2965_v54 = vmax.f32 %v2901_v36, 0.0 }
 0x384   : > { %v4450_v28 = vpop.eup %4449 }
 0x385   : > { %v2767_v22 = vmul.f32 %v4450_v28, %v6375_v44  ;;  %v2900_v56 = vadd.f32 %v6542_v46, %v2832_v63 }
 0x387   : > { %v2964_v34 = vmax.f32 %v2900_v56, 0.0  ;;  %v2835_v6 = vmul.f32 %v6530_v61, %v2767_v22 }
 0x388   : > { %v4452_v15 = vpop.eup %4451 }
 0x389   : > { %v2766_v0 = vmul.f32 %v4452_v15, %v6386_v49  ;;  %4164 = vmatprep.mubr.msk.f32.mxu1 %vm1357_vm0, %v2964_v34  ;;  %v2903_v11 = vadd.f32 %v6542_v46, %v2835_v6  ;;  %v6624_v49 = vld [vmem:[%s6832_s4] ss:$0 sm:$0xff] }
 0x38a   : > { %4165 = vmatmul.mubr.msk.f32.gmra.mrb[60].mxu1 %vm1357_vm0, %v2965_v54 }
 0x38b   : > { %v2834_v60 = vmul.f32 %v6530_v61, %v2766_v0  ;;  %v2967_v17 = vmax.f32 %v2903_v11, 0.0 }
 0x38d   : > { %v2902_v44 = vadd.f32 %v6542_v46, %v2834_v60 }
 0x38f   : > { %v2966_v62 = vmax.f32 %v2902_v44, 0.0 }
 0x391   : > { %4167 = vmatprep.mubr.msk.f32.mxu1 %vm1357_vm0, %v2966_v62 }
 0x392   : > { %4168 = vmatmul.mubr.msk.f32.gmra.mrb[62].mxu1 %vm1357_vm0, %v2967_v17 }
 0x39f   : > { %v4076_v61 = vpop.f32.mrb[0].mxu1 }
 0x3a0   : > { %v3243_v46 = vadd.f32 %v4076_v61, %v6624_v49  ;;  %v3237_v25 = vpop.f32.mrb[1].mxu1 }
 0x3a1   : > { %v3238_v4 = vadd.f32 %v6624_v49, %v3237_v25 }
 0x3a2   : > { %3558 = vst.msk [vmem:[%s6631_s10 + $0x8] sm:$0xff] %vm3556_vm1, %v3243_v46 }
 0x3a3   : > { %3557 = vst.msk [vmem:[%s6631_s10] sm:$0xff] %vm3556_vm1, %v3238_v4 }
 0x3a7   : > { %v4079_v9 = vpop.f32.mrb[2].mxu1 }
 0x3a8   : > { %v3253_v53 = vadd.f32 %v4079_v9, %v6624_v49  ;;  %v3247_v30 = vpop.f32.mrb[3].mxu1 }
 0x3a9   : > { %v3248_v43 = vadd.f32 %v6624_v49, %v3247_v30 }
 0x3aa   : > { %3560 = vst.msk [vmem:[%s6631_s10 + $0x18] sm:$0xff] %vm3556_vm1, %v3253_v53 }
 0x3ab   : > { %3559 = vst.msk [vmem:[%s6631_s10 + $0x10] sm:$0xff] %vm3556_vm1, %v3248_v43 }
 0x3af   : > { %v4082_v52 = vpop.f32.mrb[4].mxu1 }
 0x3b0   : > { %v3263_v14 = vadd.f32 %v4082_v52, %v6624_v49  ;;  %v3257_v21 = vpop.f32.mrb[5].mxu1 }
 0x3b1   : > { %v3258_v45 = vadd.f32 %v6624_v49, %v3257_v21 }
 0x3b2   : > { %3562 = vst.msk [vmem:[%s6631_s10 + $0x28] sm:$0xff] %vm3556_vm1, %v3263_v14 }
 0x3b3   : > { %3561 = vst.msk [vmem:[%s6631_s10 + $0x20] sm:$0xff] %vm3556_vm1, %v3258_v45 }
 0x3b7   : > { %v4085_v23 = vpop.f32.mrb[6].mxu1 }
 0x3b8   : > { %v3273_v3 = vadd.f32 %v4085_v23, %v6624_v49  ;;  %v3267_v40 = vpop.f32.mrb[7].mxu1 }
 0x3b9   : > { %v3268_v5 = vadd.f32 %v6624_v49, %v3267_v40 }
 0x3ba   : > { %3564 = vst.msk [vmem:[%s6631_s10 + $0x38] sm:$0xff] %vm3556_vm1, %v3273_v3 }
 0x3bb   : > { %3563 = vst.msk [vmem:[%s6631_s10 + $0x30] sm:$0xff] %vm3556_vm1, %v3268_v5 }
 0x3bf   : > { %v4088_v38 = vpop.f32.mrb[8].mxu1 }
 0x3c0   : > { %v3283_v27 = vadd.f32 %v4088_v38, %v6624_v49  ;;  %v3277_v37 = vpop.f32.mrb[9].mxu1 }
 0x3c1   : > { %v3278_v58 = vadd.f32 %v6624_v49, %v3277_v37 }
 0x3c2   : > { %3566 = vst.msk [vmem:[%s6631_s10 + $0x48] sm:$0xff] %vm3556_vm1, %v3283_v27 }
 0x3c3   : > { %3565 = vst.msk [vmem:[%s6631_s10 + $0x40] sm:$0xff] %vm3556_vm1, %v3278_v58 }
 0x3c7   : > { %v4091_v32 = vpop.f32.mrb[10].mxu1 }
 0x3c8   : > { %v3293_v19 = vadd.f32 %v4091_v32, %v6624_v49  ;;  %v3287_v10 = vpop.f32.mrb[11].mxu1 }
 0x3c9   : > { %v3288_v7 = vadd.f32 %v6624_v49, %v3287_v10 }
 0x3ca   : > { %3568 = vst.msk [vmem:[%s6631_s10 + $0x58] sm:$0xff] %vm3556_vm1, %v3293_v19 }
 0x3cb   : > { %3567 = vst.msk [vmem:[%s6631_s10 + $0x50] sm:$0xff] %vm3556_vm1, %v3288_v7 }
 0x3cf   : > { %v4094_v39 = vpop.f32.mrb[12].mxu1 }
 0x3d0   : > { %v3303_v12 = vadd.f32 %v4094_v39, %v6624_v49  ;;  %v3297_v51 = vpop.f32.mrb[13].mxu1 }
 0x3d1   : > { %v3298_v50 = vadd.f32 %v6624_v49, %v3297_v51 }
 0x3d2   : > { %3570 = vst.msk [vmem:[%s6631_s10 + $0x68] sm:$0xff] %vm3556_vm1, %v3303_v12 }
 0x3d3   : > { %3569 = vst.msk [vmem:[%s6631_s10 + $0x60] sm:$0xff] %vm3556_vm1, %v3298_v50 }
 0x3d7   : > { %v4097_v2 = vpop.f32.mrb[14].mxu1 }
 0x3d8   : > { %v3313_v1 = vadd.f32 %v4097_v2, %v6624_v49  ;;  %v3307_v26 = vpop.f32.mrb[15].mxu1 }
 0x3d9   : > { %v3308_v59 = vadd.f32 %v6624_v49, %v3307_v26 }
 0x3da   : > { %3572 = vst.msk [vmem:[%s6631_s10 + $0x78] sm:$0xff] %vm3556_vm1, %v3313_v1 }
 0x3db   : > { %3571 = vst.msk [vmem:[%s6631_s10 + $0x70] sm:$0xff] %vm3556_vm1, %v3308_v59 }
 0x3df   : > { %v4100_v48 = vpop.f32.mrb[16].mxu1 }
 0x3e0   : > { %v3323_v42 = vadd.f32 %v4100_v48, %v6624_v49  ;;  %v3317_v13 = vpop.f32.mrb[17].mxu1 }
 0x3e1   : > { %v3318_v18 = vadd.f32 %v6624_v49, %v3317_v13 }
 0x3e2   : > { %3574 = vst.msk [vmem:[%s6631_s10 + $0x88] sm:$0xff] %vm3556_vm1, %v3323_v42 }
 0x3e3   : > { %3573 = vst.msk [vmem:[%s6631_s10 + $0x80] sm:$0xff] %vm3556_vm1, %v3318_v18 }
 0x3e7   : > { %v4103_v41 = vpop.f32.mrb[18].mxu1 }
 0x3e8   : > { %v3333_v33 = vadd.f32 %v4103_v41, %v6624_v49  ;;  %v3327_v57 = vpop.f32.mrb[19].mxu1 }
 0x3e9   : > { %v3328_v35 = vadd.f32 %v6624_v49, %v3327_v57 }
 0x3ea   : > { %3576 = vst.msk [vmem:[%s6631_s10 + $0x98] sm:$0xff] %vm3556_vm1, %v3333_v33 }
 0x3eb   : > { %3575 = vst.msk [vmem:[%s6631_s10 + $0x90] sm:$0xff] %vm3556_vm1, %v3328_v35 }
 0x3ef   : > { %v4106_v29 = vpop.f32.mrb[20].mxu1 }
 0x3f0   : > { %v3343_v55 = vadd.f32 %v4106_v29, %v6624_v49  ;;  %v3337_v16 = vpop.f32.mrb[21].mxu1 }
 0x3f1   : > { %v3338_v24 = vadd.f32 %v6624_v49, %v3337_v16 }
 0x3f2   : > { %3578 = vst.msk [vmem:[%s6631_s10 + $0xa8] sm:$0xff] %vm3556_vm1, %v3343_v55 }
 0x3f3   : > { %3577 = vst.msk [vmem:[%s6631_s10 + $0xa0] sm:$0xff] %vm3556_vm1, %v3338_v24 }
 0x3f7   : > { %v4109_v31 = vpop.f32.mrb[22].mxu1 }
 0x3f8   : > { %v3353_v8 = vadd.f32 %v4109_v31, %v6624_v49  ;;  %v3347_v20 = vpop.f32.mrb[23].mxu1 }
 0x3f9   : > { %v3348_v47 = vadd.f32 %v6624_v49, %v3347_v20 }
 0x3fa   : > { %3580 = vst.msk [vmem:[%s6631_s10 + $0xb8] sm:$0xff] %vm3556_vm1, %v3353_v8 }
 0x3fb   : > { %3579 = vst.msk [vmem:[%s6631_s10 + $0xb0] sm:$0xff] %vm3556_vm1, %v3348_v47  ;;  %v4112_v63 = vpop.f32.mrb[24].mxu1 }
 0x3fc   : > { %v3363_v28 = vadd.f32 %v4112_v63, %v6624_v49  ;;  %v3357_v36 = vpop.f32.mrb[25].mxu1 }
 0x3fd   : > { %v3358_v22 = vadd.f32 %v6624_v49, %v3357_v36 }
 0x3fe   : > { %3582 = vst.msk [vmem:[%s6631_s10 + $0xc8] sm:$0xff] %vm3556_vm1, %v3363_v28 }
 0x3ff   : > { %3581 = vst.msk [vmem:[%s6631_s10 + $0xc0] sm:$0xff] %vm3556_vm1, %v3358_v22  ;;  %v4115_v56 = vpop.f32.mrb[26].mxu1 }
 0x400   : > { %v3373_v34 = vadd.f32 %v4115_v56, %v6624_v49  ;;  %v3367_v15 = vpop.f32.mrb[27].mxu1 }
 0x401   : > { %v3368_v54 = vadd.f32 %v6624_v49, %v3367_v15 }
 0x402   : > { %3584 = vst.msk [vmem:[%s6631_s10 + $0xd8] sm:$0xff] %vm3556_vm1, %v3373_v34 }
 0x403   : > { %3583 = vst.msk [vmem:[%s6631_s10 + $0xd0] sm:$0xff] %vm3556_vm1, %v3368_v54  ;;  %v4118_v6 = vpop.f32.mrb[28].mxu1 }
 0x404   : > { %v3383_v0 = vadd.f32 %v4118_v6, %v6624_v49  ;;  %v3377_v60 = vpop.f32.mrb[29].mxu1 }
 0x405   : > { %v3378_v11 = vadd.f32 %v6624_v49, %v3377_v60 }
 0x406   : > { %3586 = vst.msk [vmem:[%s6631_s10 + $0xe8] sm:$0xff] %vm3556_vm1, %v3383_v0 }
 0x407   : > { %3585 = vst.msk [vmem:[%s6631_s10 + $0xe0] sm:$0xff] %vm3556_vm1, %v3378_v11  ;;  %v4121_v44 = vpop.f32.mrb[30].mxu1 }
 0x408   : > { %v3393_v62 = vadd.f32 %v4121_v44, %v6624_v49  ;;  %v3387_v17 = vpop.f32.mrb[31].mxu1 }
 0x409   : > { %v3388_v61 = vadd.f32 %v6624_v49, %v3387_v17 }
 0x40a   : > { %3588 = vst.msk [vmem:[%s6631_s10 + $0xf8] sm:$0xff] %vm3556_vm1, %v3393_v62 }
 0x40b   : > { %3587 = vst.msk [vmem:[%s6631_s10 + $0xf0] sm:$0xff] %vm3556_vm1, %v3388_v61  ;;  %v4124_v46 = vpop.f32.mrb[32].mxu1 }
 0x40c   : > { %v3403_v25 = vadd.f32 %v4124_v46, %v6624_v49  ;;  %v3397_v4 = vpop.f32.mrb[33].mxu1 }
 0x40d   : > { %v3398_v9 = vadd.f32 %v6624_v49, %v3397_v4 }
 0x40e   : > { %3590 = vst.msk [vmem:[%s6631_s10 + $0x108] sm:$0xff] %vm3556_vm1, %v3403_v25 }
 0x40f   : > { %3589 = vst.msk [vmem:[%s6631_s10 + $0x100] sm:$0xff] %vm3556_vm1, %v3398_v9  ;;  %v4127_v53 = vpop.f32.mrb[34].mxu1 }
 0x410   : > { %v3413_v30 = vadd.f32 %v4127_v53, %v6624_v49  ;;  %v3407_v43 = vpop.f32.mrb[35].mxu1 }
 0x411   : > { %v3408_v52 = vadd.f32 %v6624_v49, %v3407_v43 }
 0x412   : > { %3592 = vst.msk [vmem:[%s6631_s10 + $0x118] sm:$0xff] %vm3556_vm1, %v3413_v30 }
 0x413   : > { %3591 = vst.msk [vmem:[%s6631_s10 + $0x110] sm:$0xff] %vm3556_vm1, %v3408_v52  ;;  %v4130_v14 = vpop.f32.mrb[36].mxu1 }
 0x414   : > { %v3423_v21 = vadd.f32 %v4130_v14, %v6624_v49  ;;  %v3417_v45 = vpop.f32.mrb[37].mxu1 }
 0x415   : > { %v3418_v23 = vadd.f32 %v6624_v49, %v3417_v45 }
 0x416   : > { %3594 = vst.msk [vmem:[%s6631_s10 + $0x128] sm:$0xff] %vm3556_vm1, %v3423_v21 }
 0x417   : > { %3593 = vst.msk [vmem:[%s6631_s10 + $0x120] sm:$0xff] %vm3556_vm1, %v3418_v23  ;;  %v4133_v3 = vpop.f32.mrb[38].mxu1 }
 0x418   : > { %v3433_v40 = vadd.f32 %v4133_v3, %v6624_v49  ;;  %v3427_v5 = vpop.f32.mrb[39].mxu1 }
 0x419   : > { %v3428_v38 = vadd.f32 %v6624_v49, %v3427_v5 }
 0x41a   : > { %3596 = vst.msk [vmem:[%s6631_s10 + $0x138] sm:$0xff] %vm3556_vm1, %v3433_v40 }
 0x41b   : > { %3595 = vst.msk [vmem:[%s6631_s10 + $0x130] sm:$0xff] %vm3556_vm1, %v3428_v38  ;;  %v4136_v27 = vpop.f32.mrb[40].mxu1 }
 0x41c   : > { %v3443_v37 = vadd.f32 %v4136_v27, %v6624_v49  ;;  %v3437_v58 = vpop.f32.mrb[41].mxu1 }
 0x41d   : > { %v3438_v32 = vadd.f32 %v6624_v49, %v3437_v58 }
 0x41e   : > { %3598 = vst.msk [vmem:[%s6631_s10 + $0x148] sm:$0xff] %vm3556_vm1, %v3443_v37 }
 0x41f   : > { %3597 = vst.msk [vmem:[%s6631_s10 + $0x140] sm:$0xff] %vm3556_vm1, %v3438_v32  ;;  %v4139_v19 = vpop.f32.mrb[42].mxu1 }
 0x420   : > { %v3453_v10 = vadd.f32 %v4139_v19, %v6624_v49  ;;  %v3447_v7 = vpop.f32.mrb[43].mxu1 }
 0x421   : > { %v3448_v39 = vadd.f32 %v6624_v49, %v3447_v7 }
 0x422   : > { %3600 = vst.msk [vmem:[%s6631_s10 + $0x158] sm:$0xff] %vm3556_vm1, %v3453_v10 }
 0x423   : > { %3599 = vst.msk [vmem:[%s6631_s10 + $0x150] sm:$0xff] %vm3556_vm1, %v3448_v39  ;;  %v4142_v12 = vpop.f32.mrb[44].mxu1 }
 0x424   : > { %v3463_v51 = vadd.f32 %v4142_v12, %v6624_v49  ;;  %v3457_v50 = vpop.f32.mrb[45].mxu1 }
 0x425   : > { %v3458_v2 = vadd.f32 %v6624_v49, %v3457_v50 }
 0x426   : > { %3602 = vst.msk [vmem:[%s6631_s10 + $0x168] sm:$0xff] %vm3556_vm1, %v3463_v51 }
 0x427   : > { %3601 = vst.msk [vmem:[%s6631_s10 + $0x160] sm:$0xff] %vm3556_vm1, %v3458_v2  ;;  %v4145_v1 = vpop.f32.mrb[46].mxu1 }
 0x428   : > { %v3473_v26 = vadd.f32 %v4145_v1, %v6624_v49  ;;  %v3467_v59 = vpop.f32.mrb[47].mxu1 }
 0x429   : > { %v3468_v48 = vadd.f32 %v6624_v49, %v3467_v59 }
 0x42a   : > { %3604 = vst.msk [vmem:[%s6631_s10 + $0x178] sm:$0xff] %vm3556_vm1, %v3473_v26 }
 0x42b   : > { %3603 = vst.msk [vmem:[%s6631_s10 + $0x170] sm:$0xff] %vm3556_vm1, %v3468_v48 }
 0x42d   : > { %v4148_v42 = vpop.f32.mrb[48].mxu1 }
 0x42e   : > { %v3483_v13 = vadd.f32 %v4148_v42, %v6624_v49  ;;  %v3477_v18 = vpop.f32.mrb[49].mxu1 }
 0x42f   : > { %v3478_v41 = vadd.f32 %v6624_v49, %v3477_v18 }
 0x430   : > { %3606 = vst.msk [vmem:[%s6631_s10 + $0x188] sm:$0xff] %vm3556_vm1, %v3483_v13 }
 0x431   : > { %3605 = vst.msk [vmem:[%s6631_s10 + $0x180] sm:$0xff] %vm3556_vm1, %v3478_v41 }
 0x435   : > { %v4151_v33 = vpop.f32.mrb[50].mxu1 }
 0x436   : > { %v3493_v57 = vadd.f32 %v4151_v33, %v6624_v49  ;;  %v3487_v35 = vpop.f32.mrb[51].mxu1 }
 0x437   : > { %v3488_v29 = vadd.f32 %v6624_v49, %v3487_v35 }
 0x438   : > { %3608 = vst.msk [vmem:[%s6631_s10 + $0x198] sm:$0xff] %vm3556_vm1, %v3493_v57 }
 0x439   : > { %3607 = vst.msk [vmem:[%s6631_s10 + $0x190] sm:$0xff] %vm3556_vm1, %v3488_v29 }
 0x43d   : > { %v4154_v55 = vpop.f32.mrb[52].mxu1 }
 0x43e   : > { %v3503_v16 = vadd.f32 %v4154_v55, %v6624_v49  ;;  %v3497_v24 = vpop.f32.mrb[53].mxu1 }
 0x43f   : > { %v3498_v31 = vadd.f32 %v6624_v49, %v3497_v24 }
 0x440   : > { %3610 = vst.msk [vmem:[%s6631_s10 + $0x1a8] sm:$0xff] %vm3556_vm1, %v3503_v16 }
 0x441   : > { %3609 = vst.msk [vmem:[%s6631_s10 + $0x1a0] sm:$0xff] %vm3556_vm1, %v3498_v31 }
 0x445   : > { %v4157_v8 = vpop.f32.mrb[54].mxu1 }
 0x446   : > { %v3513_v20 = vadd.f32 %v4157_v8, %v6624_v49  ;;  %v3507_v47 = vpop.f32.mrb[55].mxu1 }
 0x447   : > { %v3508_v63 = vadd.f32 %v6624_v49, %v3507_v47 }
 0x448   : > { %3612 = vst.msk [vmem:[%s6631_s10 + $0x1b8] sm:$0xff] %vm3556_vm1, %v3513_v20 }
 0x449   : > { %3611 = vst.msk [vmem:[%s6631_s10 + $0x1b0] sm:$0xff] %vm3556_vm1, %v3508_v63 }
 0x44d   : > { %v4160_v28 = vpop.f32.mrb[56].mxu1 }
 0x44e   : > { %v3523_v36 = vadd.f32 %v4160_v28, %v6624_v49  ;;  %v3517_v22 = vpop.f32.mrb[57].mxu1 }
 0x44f   : > { %v3518_v56 = vadd.f32 %v6624_v49, %v3517_v22 }
 0x450   : > { %3614 = vst.msk [vmem:[%s6631_s10 + $0x1c8] sm:$0xff] %vm3556_vm1, %v3523_v36 }
 0x451   : > { %3613 = vst.msk [vmem:[%s6631_s10 + $0x1c0] sm:$0xff] %vm3556_vm1, %v3518_v56 }
 0x455   : > { %v4163_v34 = vpop.f32.mrb[58].mxu1 }
 0x456   : > { %v3533_v15 = vadd.f32 %v4163_v34, %v6624_v49  ;;  %v3527_v54 = vpop.f32.mrb[59].mxu1 }
 0x457   : > { %v3528_v6 = vadd.f32 %v6624_v49, %v3527_v54 }
 0x458   : > { %3616 = vst.msk [vmem:[%s6631_s10 + $0x1d8] sm:$0xff] %vm3556_vm1, %v3533_v15 }
 0x459   : > { %3615 = vst.msk [vmem:[%s6631_s10 + $0x1d0] sm:$0xff] %vm3556_vm1, %v3528_v6 }
 0x45d   : > { %v4166_v0 = vpop.f32.mrb[60].mxu1 }
 0x45e   : > { %v3543_v60 = vadd.f32 %v4166_v0, %v6624_v49  ;;  %v3537_v11 = vpop.f32.mrb[61].mxu1 }
 0x45f   : > { %v3538_v44 = vadd.f32 %v6624_v49, %v3537_v11 }
 0x460   : > { %3618 = vst.msk [vmem:[%s6631_s10 + $0x1e8] sm:$0xff] %vm3556_vm1, %v3543_v60 }
 0x461   : > { %3617 = vst.msk [vmem:[%s6631_s10 + $0x1e0] sm:$0xff] %vm3556_vm1, %v3538_v44 }
 0x465   : > { %v4169_v62 = vpop.f32.mrb[62].mxu1 }
 0x466   : > { %v3553_v17 = vadd.f32 %v4169_v62, %v6624_v49  ;;  %v3547_v61 = vpop.f32.mrb[63].mxu1 }
 0x467   : > { %v3548_v46 = vadd.f32 %v6624_v49, %v3547_v61 }
 0x468   : > { %3620 = vst.msk [vmem:[%s6631_s10 + $0x1f8] sm:$0xff] %vm3556_vm1, %v3553_v17 }
 0x469   : > { %3619 = vst.msk [vmem:[%s6631_s10 + $0x1f0] sm:$0xff] %vm3556_vm1, %v3548_v46 }
 0x46a PF: > { %s15_s18 = sadd.s32 1, %s4467_s18  }
 0x46b   : > { %p12_p4 = scmp.ge.s32.totalorder %s15_s18, 4  }
 0x46d   :  { %14 = sbr.rel (!%p12_p4) target bundleno = 1 (0x1), region = 70 }

</bundles_post_ra>
